<compile_context>
chip_gen: v7x
topology: tpu7x:2x2x1
jax: 0.10.0
libtpu: 0.0.40
codegen_flags: <defaults>
</compile_context>

<pallas_src>
import functools

import jax
import jax.numpy as jnp
from jax import lax
from jax.experimental import pallas as pl
from jax.experimental.pallas import tpu as pltpu

YETA = 0.1

# padded channel / lane sizes
CIN_P = 8     # conv1 input channels  3 -> 8 (zero padded)
C1_P = 8      # conv1 output channels 6 -> 8 (zero padded)
C2_P = 16     # conv2 output channels
F_P = 128     # fc-head lane width (120 / 84 -> 128)

# lane geometry (32x32 input, two valid 5x5 convs, two 2x2 max pools);
# a sample lives as a (C, 1024) tile with lane = 32*h + w.
_W1A = 892    # conv1 lanes: L = 32*oh +  ow   (oh,ow < 28)
_W1P = 859    # pool1 lanes: L = 64*po + 2*pw  (po,pw < 14)
_W2A = 595    # conv2 lanes: L = 64*oh + 2*ow  (oh,ow < 10)
_W2P = 529    # pool2 lanes: L = 128*qo + 4*qw (qo,qw <  5)


def _ceil_to(n, m):
    return ((n + m - 1) // m) * m


# ---------------------------------------------------------------------------
# The fused kernel: bt samples per grid step, everything stays on chip.
# ---------------------------------------------------------------------------
def _fedcon_kernel(x_ref, w1_ref, b1_ref, w2_ref, b2_ref, sel_ref,
                   wf1_ref, bf1_ref, wf2_ref, bf2_ref, prom_ref,
                   wl1_ref, bl1_ref, wl2_ref, bl2_ref, wl3_ref, bl3_ref,
                   out_ref, s1_scr, s2_scr, a_scr, *, bt, yeta):
    f32 = jnp.float32
    mm = w1_ref.dtype                        # matmul operand dtype (f32 / bf16)

    w1 = w1_ref[...]                         # (8, 200)   stacked conv1 taps
    w2 = w2_ref[...]                         # (16, 200)  stacked conv2 taps
    b1 = b1_ref[...]                         # (8, 1)
    b2 = b2_ref[...]                         # (16, 1)
    sel = sel_ref[...]                       # (529, 32)  exact 0/1 compaction

    # ---- conv trunk: one sample at a time; intermediates stay in VMEM/vregs
    def conv_trunk(b, carry):
        xt = x_ref[b]                        # (8, 1024), already mm dtype
        # stack the 25 shifted conv1 tap slices -> (200, 892) scratch, then
        # ONE deep-contraction matmul instead of 25 contraction-8 ones.
        for kh in range(5):
            for kw in range(5):
                t = 5 * kh + kw
                s = 32 * kh + kw
                s1_scr[8 * t:8 * t + 8, :] = xt[:, s:s + _W1A]
        acc1 = jnp.dot(w1, s1_scr[...], preferred_element_type=f32)   # (8,892)
        r1 = jnp.maximum(acc1 + b1, 0.0)
        # fused 2x2 maxpool (pooled grid kept in strided-lane layout)
        m1 = jnp.maximum(jnp.maximum(r1[:, 0:_W1P], r1[:, 1:1 + _W1P]),
                         jnp.maximum(r1[:, 32:32 + _W1P], r1[:, 33:33 + _W1P]))
        m1 = m1.astype(mm)                   # single hoisted cast
        # conv2: same stacked-tap trick, contraction depth 200
        for kh in range(5):
            for kw in range(5):
                t = 5 * kh + kw
                s = 64 * kh + 2 * kw
                s2_scr[8 * t:8 * t + 8, :] = m1[:, s:s + _W2A]
        acc2 = jnp.dot(w2, s2_scr[...], preferred_element_type=f32)   # (16,595)
        r2 = jnp.maximum(acc2 + b2, 0.0)
        m2 = jnp.maximum(jnp.maximum(r2[:, 0:_W2P], r2[:, 2:2 + _W2P]),
                         jnp.maximum(r2[:, 64:64 + _W2P], r2[:, 66:66 + _W2P]))
        # compact the valid strided lanes -> A[c, 5*qo + qw]  (exact 0/1 dot)
        a_scr[b] = jnp.dot(m2.astype(mm), sel, preferred_element_type=f32)
        return carry

    lax.fori_loop(0, bt, conv_trunk, 0)

    # ---- fc / prompt head: ONCE for the whole (bt, .) batch ----------------
    zacc = jnp.zeros((bt, F_P), f32)
    for c in range(C2_P):                    # 16 dots with (bt, 32) lhs
        zacc = zacc + jnp.dot(a_scr[:, c, :].astype(mm), wf1_ref[c],
                              preferred_element_type=f32)
    z = jnp.maximum(zacc + bf1_ref[...], 0.0)                         # fc1
    h = jnp.maximum(jnp.dot(z.astype(mm), wf2_ref[...],
                            preferred_element_type=f32) + bf2_ref[...], 0.0)
    mix = (1.0 - yeta) * h + yeta * prom_ref[...]                     # level c1
    x1 = jnp.maximum(jnp.dot(mix.astype(mm), wl1_ref[...],
                             preferred_element_type=f32) + bl1_ref[...], 0.0)
    x2 = jnp.dot(x1.astype(mm), wl2_ref[...],
                 preferred_element_type=f32) + bl2_ref[...]
    y = jnp.dot(x2.astype(mm), wl3_ref[...],
                preferred_element_type=f32) + bl3_ref[...]

    # single merged, lane-dense output block (one DMA per grid step)
    op = x2.shape[1]
    out_ref[:, 0:F_P] = h
    out_ref[:, F_P:F_P + op] = x2
    out_ref[:, F_P + op:] = y


# ---------------------------------------------------------------------------
# Wrapper: grid over batch chunks of `bt` samples.
# ---------------------------------------------------------------------------
def _const_spec(arr):
    zeros = (0,) * arr.ndim
    return pl.BlockSpec(arr.shape, lambda i, z=zeros: z)


def fedcon_prompt_forward(x_nchw, packed, out_dim, n_classes, *,
                          bt=8, yeta=YETA):
    """Fused forward.  `bt` = samples per grid step (multiple of 8).
    On v7x keep bt <= B/2 so both TensorCores get at least one grid step."""
    B = x_nchw.shape[0]
    assert x_nchw.shape[1:] == (3, 32, 32), "simple-cnn expects 3x32x32 inputs"
    assert bt % 8 == 0, "bt must be a multiple of 8"
    op = _ceil_to(out_dim, 128)
    cp = _ceil_to(n_classes, 128)
    mm_dtype = packed[0].dtype
    Bp = _ceil_to(B, bt)

    # NCHW -> per-sample (channel, 32*h + w) tile; pad channels 3 -> 8 and the
    # batch up to a multiple of bt (zero rows flow through harmlessly).
    xr = x_nchw.reshape(B, 3, 32 * 32).astype(mm_dtype)
    xr = jnp.pad(xr, ((0, Bp - B), (0, CIN_P - 3), (0, 0)))   # (Bp, 8, 1024)

    kernel = functools.partial(_fedcon_kernel, bt=bt, yeta=yeta)

    in_specs = [pl.BlockSpec((bt, CIN_P, 1024), lambda i: (i, 0, 0))]
    in_specs += [_const_spec(a) for a in packed]

    width = F_P + op + cp
    out_shape = jax.ShapeDtypeStruct((Bp, width), jnp.float32)
    out_specs = pl.BlockSpec((bt, width), lambda i: (i, 0))

    out = pl.pallas_call(
        kernel,
        out_shape=out_shape,
        grid_spec=pltpu.PrefetchScalarGridSpec(
            num_scalar_prefetch=0,
            grid=(Bp // bt,),
            in_specs=in_specs,
            out_specs=out_specs,
            scratch_shapes=[pltpu.VMEM((25 * CIN_P, _W1A), mm_dtype),
                            pltpu.VMEM((25 * C1_P, _W2A), mm_dtype),
                            pltpu.VMEM((bt, C2_P, 32), jnp.float32)]),
        compiler_params=pltpu.CompilerParams(
            dimension_semantics=("parallel",),
            vmem_limit_bytes=32 * 1024 * 1024),
    )(xr, *packed)

    h = out[:B, 0:84]
    x2 = out[:B, F_P:F_P + out_dim]
    y = out[:B, F_P + op:F_P + op + n_classes]
    return h, x2, y


# ---------------------------------------------------------------------------
# Parameters: PyTorch-shaped init + packing into lane-padded kernel operands.
# ---------------------------------------------------------------------------
def init_torch_params(key, out_dim, n_classes):
    ks = jax.random.split(key, 15)
    rnd = lambda k, s, std: std * jax.random.normal(k, s, jnp.float32)
    return {
        "conv1_w": rnd(ks[0], (6, 3, 5, 5), 0.10), "conv1_b": rnd(ks[1], (6,), 0.10),
        "conv2_w": rnd(ks[2], (16, 6, 5, 5), 0.10), "conv2_b": rnd(ks[3], (16,), 0.10),
        "fc1_w": rnd(ks[4], (120, 400), 0.05),  "fc1_b": rnd(ks[5], (120,), 0.05),
        "fc2_w": rnd(ks[6], (84, 120), 0.05),   "fc2_b": rnd(ks[7], (84,), 0.05),
        "prompt_h": rnd(ks[8], (1, 84), 0.50),  # nn.init.normal_(std=0.5)
        "l1_w": rnd(ks[9], (84, 84), 0.05),     "l1_b": rnd(ks[10], (84,), 0.05),
        "l2_w": rnd(ks[11], (out_dim, 84), 0.05), "l2_b": rnd(ks[12], (out_dim,), 0.05),
        "l3_w": rnd(ks[13], (n_classes, out_dim), 0.05),
        "l3_b": rnd(ks[14], (n_classes,), 0.05),
    }


def pack_params(p, out_dim, n_classes, *, mm_dtype=jnp.float32):
    f32 = jnp.float32
    op = _ceil_to(out_dim, 128)
    cp = _ceil_to(n_classes, 128)

    # stacked conv taps: W[co, 8*(5*kh+kw) + ci] = conv_w[co, ci, kh, kw]
    w1t = jnp.transpose(p["conv1_w"], (0, 2, 3, 1)).reshape(6, 25, 3)
    w1 = (jnp.zeros((C1_P, 25, CIN_P), f32).at[:6, :, :3].set(w1t)
          .reshape(C1_P, 25 * CIN_P))
    b1 = jnp.zeros((C1_P, 1), f32).at[:6, 0].set(p["conv1_b"])
    w2t = jnp.transpose(p["conv2_w"], (0, 2, 3, 1)).reshape(16, 25, 6)
    w2 = (jnp.zeros((C2_P, 25, C1_P), f32).at[:, :, :6].set(w2t)
          .reshape(C2_P, 25 * C1_P))
    b2 = jnp.zeros((C2_P, 1), f32).at[:, 0].set(p["conv2_b"])

    # pool2 lane-compaction selection matrix (exact 0/1 values)
    qo = jnp.arange(5)
    qw = jnp.arange(5)
    rows = (128 * qo[:, None] + 4 * qw[None, :]).reshape(-1)
    cols = jnp.arange(25)
    sel = jnp.zeros((_W2P, 32), f32).at[rows, cols].set(1.0)

    # fc1 with the channel-major flatten folded in: wf1[c, s, j] = fc1_w[j, 25c+s]
    wf1 = jnp.zeros((C2_P, 32, F_P), f32).at[:, :25, :120].set(
        p["fc1_w"].T.reshape(16, 25, 120))
    bf1 = jnp.zeros((1, F_P), f32).at[0, :120].set(p["fc1_b"])
    wf2 = jnp.zeros((F_P, F_P), f32).at[:120, :84].set(p["fc2_w"].T)
    bf2 = jnp.zeros((1, F_P), f32).at[0, :84].set(p["fc2_b"])
    prom = jnp.zeros((1, F_P), f32).at[0, :84].set(p["prompt_h"][0])
    wl1 = jnp.zeros((F_P, F_P), f32).at[:84, :84].set(p["l1_w"].T)
    bl1 = jnp.zeros((1, F_P), f32).at[0, :84].set(p["l1_b"])
    wl2 = jnp.zeros((F_P, op), f32).at[:84, :out_dim].set(p["l2_w"].T)
    bl2 = jnp.zeros((1, op), f32).at[0, :out_dim].set(p["l2_b"])
    wl3 = jnp.zeros((op, cp), f32).at[:out_dim, :n_classes].set(p["l3_w"].T)
    bl3 = jnp.zeros((1, cp), f32).at[0, :n_classes].set(p["l3_b"])

    c = lambda a: a.astype(mm_dtype)         # matmul operands only; biases stay f32
    return (c(w1), b1, c(w2), b2, c(sel), c(wf1), bf1, c(wf2), bf2, prom,
            c(wl1), bl1, c(wl2), bl2, c(wl3), bl3)


# ---------------------------------------------------------------------------
# Pure-JAX reference of the PyTorch forward (numerical sanity check).
# ---------------------------------------------------------------------------
def reference_forward(x, p, *, yeta=YETA):
    hp = lax.Precision.HIGHEST

    def conv(inp, w, b):
        out = lax.conv_general_dilated(
            inp, w, (1, 1), "VALID",
            dimension_numbers=("NCHW", "OIHW", "NCHW"), precision=hp)
        return out + b.reshape(1, -1, 1, 1)

    def pool(t):
        n, c, hh, ww = t.shape
        return t.reshape(n, c, hh // 2, 2, ww // 2, 2).max(axis=(3, 5))

    a = pool(jax.nn.relu(conv(x, p["conv1_w"], p["conv1_b"])))
    a = pool(jax.nn.relu(conv(a, p["conv2_w"], p["conv2_b"])))
    flat = a.reshape(a.shape[0], 16 * 5 * 5)
    z = jax.nn.relu(jnp.dot(flat, p["fc1_w"].T, precision=hp) + p["fc1_b"])
    h = jax.nn.relu(jnp.dot(z, p["fc2_w"].T, precision=hp) + p["fc2_b"])
    mix = (1.0 - yeta) * h + yeta * p["prompt_h"]
    x1 = jax.nn.relu(jnp.dot(mix, p["l1_w"].T, precision=hp) + p["l1_b"])
    x2 = jnp.dot(x1, p["l2_w"].T, precision=hp) + p["l2_b"]
    y = jnp.dot(x2, p["l3_w"].T, precision=hp) + p["l3_b"]
    return h, x2, y


if __name__ == "__main__":
    out_dim, n_classes, batch, bt = 64, 10, 16, 8   # grid = 2 steps of 8 samples
    key = jax.random.PRNGKey(0)
    kx, kp = jax.random.split(key)

    params = init_torch_params(kp, out_dim, n_classes)
    packed = pack_params(params, out_dim, n_classes, mm_dtype=jnp.float32)
    x = jax.random.normal(kx, (batch, 3, 32, 32), jnp.float32)

    fwd = jax.jit(functools.partial(fedcon_prompt_forward,
                                    out_dim=out_dim, n_classes=n_classes, bt=bt))
    h, x2, y = fwd(x, packed)
    jax.block_until_ready((h, x2, y))

    assert h.shape == (batch, 84)
    assert x2.shape == (batch, out_dim)
    assert y.shape == (batch, n_classes)

    # numerical sanity vs. pure-JAX reference of the PyTorch module
    # (tight tolerance for the f32 path so lane-layout regressions are caught;
    #  use ~5e-2 if pack_params(mm_dtype=jnp.bfloat16) is used instead)
    h_r, x2_r, y_r = reference_forward(x, params)
    tol = 5e-3
    for name, a, b in (("h", h, h_r), ("x2", x2, x2_r), ("y", y, y_r)):
        err = float(jnp.max(jnp.abs(a - b)))
        assert err < tol, f"{name} mismatch: max abs err {err}"

    print("KERNEL_OK")
</pallas_src>

<mosaic_0001>
module attributes {stable_mosaic.version = 11 : i64} {
  func.func @_fedcon_kernel(%arg0: i32, %arg1: memref<8x8x1024xf32, #tpu.memory_space<vmem>>, %arg2: memref<8x200xf32, #tpu.memory_space<vmem>>, %arg3: memref<8x1xf32, #tpu.memory_space<vmem>>, %arg4: memref<16x200xf32, #tpu.memory_space<vmem>>, %arg5: memref<16x1xf32, #tpu.memory_space<vmem>>, %arg6: memref<529x32xf32, #tpu.memory_space<vmem>>, %arg7: memref<16x32x128xf32, #tpu.memory_space<vmem>>, %arg8: memref<1x128xf32, #tpu.memory_space<vmem>>, %arg9: memref<128x128xf32, #tpu.memory_space<vmem>>, %arg10: memref<1x128xf32, #tpu.memory_space<vmem>>, %arg11: memref<1x128xf32, #tpu.memory_space<vmem>>, %arg12: memref<128x128xf32, #tpu.memory_space<vmem>>, %arg13: memref<1x128xf32, #tpu.memory_space<vmem>>, %arg14: memref<128x128xf32, #tpu.memory_space<vmem>>, %arg15: memref<1x128xf32, #tpu.memory_space<vmem>>, %arg16: memref<128x128xf32, #tpu.memory_space<vmem>>, %arg17: memref<1x128xf32, #tpu.memory_space<vmem>>, %arg18: memref<8x384xf32, #tpu.memory_space<vmem>>, %arg19: memref<200x892xf32, #tpu.memory_space<vmem>>, %arg20: memref<200x595xf32, #tpu.memory_space<vmem>>, %arg21: memref<8x16x32xf32, #tpu.memory_space<vmem>>) attributes {dimension_semantics = [#tpu.dimension_semantics<parallel>], iteration_bounds = array<i64: 2>, scalar_prefetch = 0 : i64, scratch_operands = 3 : i64, tpu.core_type = #tpu.core_type<tc>, window_params = [{transform_indices = @transform_0, window_bounds = array<i64: 8, 8, 1024>}, {pipeline_mode = #tpu.pipeline_mode<synchronous>, transform_indices = @transform_1, window_bounds = array<i64: 8, 200>}, {pipeline_mode = #tpu.pipeline_mode<synchronous>, transform_indices = @transform_2, window_bounds = array<i64: 8, 1>}, {pipeline_mode = #tpu.pipeline_mode<synchronous>, transform_indices = @transform_3, window_bounds = array<i64: 16, 200>}, {pipeline_mode = #tpu.pipeline_mode<synchronous>, transform_indices = @transform_4, window_bounds = array<i64: 16, 1>}, {pipeline_mode = #tpu.pipeline_mode<synchronous>, transform_indices = @transform_5, window_bounds = array<i64: 529, 32>}, {pipeline_mode = #tpu.pipeline_mode<synchronous>, transform_indices = @transform_6, window_bounds = array<i64: 16, 32, 128>}, {pipeline_mode = #tpu.pipeline_mode<synchronous>, transform_indices = @transform_7, window_bounds = array<i64: 1, 128>}, {pipeline_mode = #tpu.pipeline_mode<synchronous>, transform_indices = @transform_8, window_bounds = array<i64: 128, 128>}, {pipeline_mode = #tpu.pipeline_mode<synchronous>, transform_indices = @transform_9, window_bounds = array<i64: 1, 128>}, {pipeline_mode = #tpu.pipeline_mode<synchronous>, transform_indices = @transform_10, window_bounds = array<i64: 1, 128>}, {pipeline_mode = #tpu.pipeline_mode<synchronous>, transform_indices = @transform_11, window_bounds = array<i64: 128, 128>}, {pipeline_mode = #tpu.pipeline_mode<synchronous>, transform_indices = @transform_12, window_bounds = array<i64: 1, 128>}, {pipeline_mode = #tpu.pipeline_mode<synchronous>, transform_indices = @transform_13, window_bounds = array<i64: 128, 128>}, {pipeline_mode = #tpu.pipeline_mode<synchronous>, transform_indices = @transform_14, window_bounds = array<i64: 1, 128>}, {pipeline_mode = #tpu.pipeline_mode<synchronous>, transform_indices = @transform_15, window_bounds = array<i64: 128, 128>}, {pipeline_mode = #tpu.pipeline_mode<synchronous>, transform_indices = @transform_16, window_bounds = array<i64: 1, 128>}, {transform_indices = @transform_17, window_bounds = array<i64: 8, 384>}]} {
    %c0 = arith.constant 0 : index
    %c0_0 = arith.constant 0 : index
    %0 = vector.load %arg2[%c0, %c0_0] : memref<8x200xf32, #tpu.memory_space<vmem>>, vector<8x200xf32>
    %c0_1 = arith.constant 0 : index
    %c0_2 = arith.constant 0 : index
    %1 = vector.load %arg4[%c0_1, %c0_2] : memref<16x200xf32, #tpu.memory_space<vmem>>, vector<16x200xf32>
    %c0_3 = arith.constant 0 : index
    %c0_4 = arith.constant 0 : index
    %2 = vector.load %arg3[%c0_3, %c0_4] : memref<8x1xf32, #tpu.memory_space<vmem>>, vector<8x1xf32>
    %c0_5 = arith.constant 0 : index
    %c0_6 = arith.constant 0 : index
    %3 = vector.load %arg5[%c0_5, %c0_6] : memref<16x1xf32, #tpu.memory_space<vmem>>, vector<16x1xf32>
    %c0_7 = arith.constant 0 : index
    %c0_8 = arith.constant 0 : index
    %4 = vector.load %arg6[%c0_7, %c0_8] : memref<529x32xf32, #tpu.memory_space<vmem>>, vector<529x32xf32>
    %c0_i32 = arith.constant 0 : i32
    %c8_i32 = arith.constant 8 : i32
    %5 = arith.addi %c0_i32, %c8_i32 : i32
    %c1_i32 = arith.constant 1 : i32
    scf.for %arg22 = %c0_i32 to %5 step %c1_i32  : i32 {
      %142 = arith.index_cast %arg22 : i32 to index
      %c0_140 = arith.constant 0 : index
      %c0_141 = arith.constant 0 : index
      %143 = vector.load %arg1[%142, %c0_140, %c0_141] : memref<8x8x1024xf32, #tpu.memory_space<vmem>>, vector<1x8x1024xf32>
      %144 = vector.shape_cast %143 : vector<1x8x1024xf32> to vector<8x1024xf32>
      %145 = vector.extract_strided_slice %144 {offsets = [0, 0], sizes = [8, 892], strides = [1, 1]} : vector<8x1024xf32> to vector<8x892xf32>
      %c0_142 = arith.constant 0 : index
      %c0_143 = arith.constant 0 : index
      %146 = vector.load %arg19[%c0_142, %c0_143] : memref<200x892xf32, #tpu.memory_space<vmem>>, vector<8x892xf32>
      tpu.vector_store %arg19[%c0_142, %c0_143], %145 {strides = array<i32>} : memref<200x892xf32, #tpu.memory_space<vmem>>, vector<8x892xf32>,
      %147 = vector.extract_strided_slice %144 {offsets = [0, 1], sizes = [8, 892], strides = [1, 1]} : vector<8x1024xf32> to vector<8x892xf32>
      %c8_144 = arith.constant 8 : index
      %c0_145 = arith.constant 0 : index
      %148 = vector.load %arg19[%c8_144, %c0_145] : memref<200x892xf32, #tpu.memory_space<vmem>>, vector<8x892xf32>
      tpu.vector_store %arg19[%c8_144, %c0_145], %147 {strides = array<i32>} : memref<200x892xf32, #tpu.memory_space<vmem>>, vector<8x892xf32>,
      %149 = vector.extract_strided_slice %144 {offsets = [0, 2], sizes = [8, 892], strides = [1, 1]} : vector<8x1024xf32> to vector<8x892xf32>
      %c16 = arith.constant 16 : index
      %c0_146 = arith.constant 0 : index
      %150 = vector.load %arg19[%c16, %c0_146] : memref<200x892xf32, #tpu.memory_space<vmem>>, vector<8x892xf32>
      tpu.vector_store %arg19[%c16, %c0_146], %149 {strides = array<i32>} : memref<200x892xf32, #tpu.memory_space<vmem>>, vector<8x892xf32>,
      %151 = vector.extract_strided_slice %144 {offsets = [0, 3], sizes = [8, 892], strides = [1, 1]} : vector<8x1024xf32> to vector<8x892xf32>
      %c24 = arith.constant 24 : index
      %c0_147 = arith.constant 0 : index
      %152 = vector.load %arg19[%c24, %c0_147] : memref<200x892xf32, #tpu.memory_space<vmem>>, vector<8x892xf32>
      tpu.vector_store %arg19[%c24, %c0_147], %151 {strides = array<i32>} : memref<200x892xf32, #tpu.memory_space<vmem>>, vector<8x892xf32>,
      %153 = vector.extract_strided_slice %144 {offsets = [0, 4], sizes = [8, 892], strides = [1, 1]} : vector<8x1024xf32> to vector<8x892xf32>
      %c32 = arith.constant 32 : index
      %c0_148 = arith.constant 0 : index
      %154 = vector.load %arg19[%c32, %c0_148] : memref<200x892xf32, #tpu.memory_space<vmem>>, vector<8x892xf32>
      tpu.vector_store %arg19[%c32, %c0_148], %153 {strides = array<i32>} : memref<200x892xf32, #tpu.memory_space<vmem>>, vector<8x892xf32>,
      %155 = vector.extract_strided_slice %144 {offsets = [0, 32], sizes = [8, 892], strides = [1, 1]} : vector<8x1024xf32> to vector<8x892xf32>
      %c40 = arith.constant 40 : index
      %c0_149 = arith.constant 0 : index
      %156 = vector.load %arg19[%c40, %c0_149] : memref<200x892xf32, #tpu.memory_space<vmem>>, vector<8x892xf32>
      tpu.vector_store %arg19[%c40, %c0_149], %155 {strides = array<i32>} : memref<200x892xf32, #tpu.memory_space<vmem>>, vector<8x892xf32>,
      %157 = vector.extract_strided_slice %144 {offsets = [0, 33], sizes = [8, 892], strides = [1, 1]} : vector<8x1024xf32> to vector<8x892xf32>
      %c48 = arith.constant 48 : index
      %c0_150 = arith.constant 0 : index
      %158 = vector.load %arg19[%c48, %c0_150] : memref<200x892xf32, #tpu.memory_space<vmem>>, vector<8x892xf32>
      tpu.vector_store %arg19[%c48, %c0_150], %157 {strides = array<i32>} : memref<200x892xf32, #tpu.memory_space<vmem>>, vector<8x892xf32>,
      %159 = vector.extract_strided_slice %144 {offsets = [0, 34], sizes = [8, 892], strides = [1, 1]} : vector<8x1024xf32> to vector<8x892xf32>
      %c56 = arith.constant 56 : index
      %c0_151 = arith.constant 0 : index
      %160 = vector.load %arg19[%c56, %c0_151] : memref<200x892xf32, #tpu.memory_space<vmem>>, vector<8x892xf32>
      tpu.vector_store %arg19[%c56, %c0_151], %159 {strides = array<i32>} : memref<200x892xf32, #tpu.memory_space<vmem>>, vector<8x892xf32>,
      %161 = vector.extract_strided_slice %144 {offsets = [0, 35], sizes = [8, 892], strides = [1, 1]} : vector<8x1024xf32> to vector<8x892xf32>
      %c64 = arith.constant 64 : index
      %c0_152 = arith.constant 0 : index
      %162 = vector.load %arg19[%c64, %c0_152] : memref<200x892xf32, #tpu.memory_space<vmem>>, vector<8x892xf32>
      tpu.vector_store %arg19[%c64, %c0_152], %161 {strides = array<i32>} : memref<200x892xf32, #tpu.memory_space<vmem>>, vector<8x892xf32>,
      %163 = vector.extract_strided_slice %144 {offsets = [0, 36], sizes = [8, 892], strides = [1, 1]} : vector<8x1024xf32> to vector<8x892xf32>
      %c72 = arith.constant 72 : index
      %c0_153 = arith.constant 0 : index
      %164 = vector.load %arg19[%c72, %c0_153] : memref<200x892xf32, #tpu.memory_space<vmem>>, vector<8x892xf32>
      tpu.vector_store %arg19[%c72, %c0_153], %163 {strides = array<i32>} : memref<200x892xf32, #tpu.memory_space<vmem>>, vector<8x892xf32>,
      %165 = vector.extract_strided_slice %144 {offsets = [0, 64], sizes = [8, 892], strides = [1, 1]} : vector<8x1024xf32> to vector<8x892xf32>
      %c80 = arith.constant 80 : index
      %c0_154 = arith.constant 0 : index
      %166 = vector.load %arg19[%c80, %c0_154] : memref<200x892xf32, #tpu.memory_space<vmem>>, vector<8x892xf32>
      tpu.vector_store %arg19[%c80, %c0_154], %165 {strides = array<i32>} : memref<200x892xf32, #tpu.memory_space<vmem>>, vector<8x892xf32>,
      %167 = vector.extract_strided_slice %144 {offsets = [0, 65], sizes = [8, 892], strides = [1, 1]} : vector<8x1024xf32> to vector<8x892xf32>
      %c88 = arith.constant 88 : index
      %c0_155 = arith.constant 0 : index
      %168 = vector.load %arg19[%c88, %c0_155] : memref<200x892xf32, #tpu.memory_space<vmem>>, vector<8x892xf32>
      tpu.vector_store %arg19[%c88, %c0_155], %167 {strides = array<i32>} : memref<200x892xf32, #tpu.memory_space<vmem>>, vector<8x892xf32>,
      %169 = vector.extract_strided_slice %144 {offsets = [0, 66], sizes = [8, 892], strides = [1, 1]} : vector<8x1024xf32> to vector<8x892xf32>
      %c96 = arith.constant 96 : index
      %c0_156 = arith.constant 0 : index
      %170 = vector.load %arg19[%c96, %c0_156] : memref<200x892xf32, #tpu.memory_space<vmem>>, vector<8x892xf32>
      tpu.vector_store %arg19[%c96, %c0_156], %169 {strides = array<i32>} : memref<200x892xf32, #tpu.memory_space<vmem>>, vector<8x892xf32>,
      %171 = vector.extract_strided_slice %144 {offsets = [0, 67], sizes = [8, 892], strides = [1, 1]} : vector<8x1024xf32> to vector<8x892xf32>
      %c104 = arith.constant 104 : index
      %c0_157 = arith.constant 0 : index
      %172 = vector.load %arg19[%c104, %c0_157] : memref<200x892xf32, #tpu.memory_space<vmem>>, vector<8x892xf32>
      tpu.vector_store %arg19[%c104, %c0_157], %171 {strides = array<i32>} : memref<200x892xf32, #tpu.memory_space<vmem>>, vector<8x892xf32>,
      %173 = vector.extract_strided_slice %144 {offsets = [0, 68], sizes = [8, 892], strides = [1, 1]} : vector<8x1024xf32> to vector<8x892xf32>
      %c112 = arith.constant 112 : index
      %c0_158 = arith.constant 0 : index
      %174 = vector.load %arg19[%c112, %c0_158] : memref<200x892xf32, #tpu.memory_space<vmem>>, vector<8x892xf32>
      tpu.vector_store %arg19[%c112, %c0_158], %173 {strides = array<i32>} : memref<200x892xf32, #tpu.memory_space<vmem>>, vector<8x892xf32>,
      %175 = vector.extract_strided_slice %144 {offsets = [0, 96], sizes = [8, 892], strides = [1, 1]} : vector<8x1024xf32> to vector<8x892xf32>
      %c120 = arith.constant 120 : index
      %c0_159 = arith.constant 0 : index
      %176 = vector.load %arg19[%c120, %c0_159] : memref<200x892xf32, #tpu.memory_space<vmem>>, vector<8x892xf32>
      tpu.vector_store %arg19[%c120, %c0_159], %175 {strides = array<i32>} : memref<200x892xf32, #tpu.memory_space<vmem>>, vector<8x892xf32>,
      %177 = vector.extract_strided_slice %144 {offsets = [0, 97], sizes = [8, 892], strides = [1, 1]} : vector<8x1024xf32> to vector<8x892xf32>
      %c128_160 = arith.constant 128 : index
      %c0_161 = arith.constant 0 : index
      %178 = vector.load %arg19[%c128_160, %c0_161] : memref<200x892xf32, #tpu.memory_space<vmem>>, vector<8x892xf32>
      tpu.vector_store %arg19[%c128_160, %c0_161], %177 {strides = array<i32>} : memref<200x892xf32, #tpu.memory_space<vmem>>, vector<8x892xf32>,
      %179 = vector.extract_strided_slice %144 {offsets = [0, 98], sizes = [8, 892], strides = [1, 1]} : vector<8x1024xf32> to vector<8x892xf32>
      %c136 = arith.constant 136 : index
      %c0_162 = arith.constant 0 : index
      %180 = vector.load %arg19[%c136, %c0_162] : memref<200x892xf32, #tpu.memory_space<vmem>>, vector<8x892xf32>
      tpu.vector_store %arg19[%c136, %c0_162], %179 {strides = array<i32>} : memref<200x892xf32, #tpu.memory_space<vmem>>, vector<8x892xf32>,
      %181 = vector.extract_strided_slice %144 {offsets = [0, 99], sizes = [8, 892], strides = [1, 1]} : vector<8x1024xf32> to vector<8x892xf32>
      %c144 = arith.constant 144 : index
      %c0_163 = arith.constant 0 : index
      %182 = vector.load %arg19[%c144, %c0_163] : memref<200x892xf32, #tpu.memory_space<vmem>>, vector<8x892xf32>
      tpu.vector_store %arg19[%c144, %c0_163], %181 {strides = array<i32>} : memref<200x892xf32, #tpu.memory_space<vmem>>, vector<8x892xf32>,
      %183 = vector.extract_strided_slice %144 {offsets = [0, 100], sizes = [8, 892], strides = [1, 1]} : vector<8x1024xf32> to vector<8x892xf32>
      %c152 = arith.constant 152 : index
      %c0_164 = arith.constant 0 : index
      %184 = vector.load %arg19[%c152, %c0_164] : memref<200x892xf32, #tpu.memory_space<vmem>>, vector<8x892xf32>
      tpu.vector_store %arg19[%c152, %c0_164], %183 {strides = array<i32>} : memref<200x892xf32, #tpu.memory_space<vmem>>, vector<8x892xf32>,
      %185 = vector.extract_strided_slice %144 {offsets = [0, 128], sizes = [8, 892], strides = [1, 1]} : vector<8x1024xf32> to vector<8x892xf32>
      %c160 = arith.constant 160 : index
      %c0_165 = arith.constant 0 : index
      %186 = vector.load %arg19[%c160, %c0_165] : memref<200x892xf32, #tpu.memory_space<vmem>>, vector<8x892xf32>
      tpu.vector_store %arg19[%c160, %c0_165], %185 {strides = array<i32>} : memref<200x892xf32, #tpu.memory_space<vmem>>, vector<8x892xf32>,
      %187 = vector.extract_strided_slice %144 {offsets = [0, 129], sizes = [8, 892], strides = [1, 1]} : vector<8x1024xf32> to vector<8x892xf32>
      %c168 = arith.constant 168 : index
      %c0_166 = arith.constant 0 : index
      %188 = vector.load %arg19[%c168, %c0_166] : memref<200x892xf32, #tpu.memory_space<vmem>>, vector<8x892xf32>
      tpu.vector_store %arg19[%c168, %c0_166], %187 {strides = array<i32>} : memref<200x892xf32, #tpu.memory_space<vmem>>, vector<8x892xf32>,
      %189 = vector.extract_strided_slice %144 {offsets = [0, 130], sizes = [8, 892], strides = [1, 1]} : vector<8x1024xf32> to vector<8x892xf32>
      %c176 = arith.constant 176 : index
      %c0_167 = arith.constant 0 : index
      %190 = vector.load %arg19[%c176, %c0_167] : memref<200x892xf32, #tpu.memory_space<vmem>>, vector<8x892xf32>
      tpu.vector_store %arg19[%c176, %c0_167], %189 {strides = array<i32>} : memref<200x892xf32, #tpu.memory_space<vmem>>, vector<8x892xf32>,
      %191 = vector.extract_strided_slice %144 {offsets = [0, 131], sizes = [8, 892], strides = [1, 1]} : vector<8x1024xf32> to vector<8x892xf32>
      %c184 = arith.constant 184 : index
      %c0_168 = arith.constant 0 : index
      %192 = vector.load %arg19[%c184, %c0_168] : memref<200x892xf32, #tpu.memory_space<vmem>>, vector<8x892xf32>
      tpu.vector_store %arg19[%c184, %c0_168], %191 {strides = array<i32>} : memref<200x892xf32, #tpu.memory_space<vmem>>, vector<8x892xf32>,
      %193 = vector.extract_strided_slice %144 {offsets = [0, 132], sizes = [8, 892], strides = [1, 1]} : vector<8x1024xf32> to vector<8x892xf32>
      %c192 = arith.constant 192 : index
      %c0_169 = arith.constant 0 : index
      %194 = vector.load %arg19[%c192, %c0_169] : memref<200x892xf32, #tpu.memory_space<vmem>>, vector<8x892xf32>
      tpu.vector_store %arg19[%c192, %c0_169], %193 {strides = array<i32>} : memref<200x892xf32, #tpu.memory_space<vmem>>, vector<8x892xf32>,
      %c0_170 = arith.constant 0 : index
      %c0_171 = arith.constant 0 : index
      %195 = vector.load %arg19[%c0_170, %c0_171] : memref<200x892xf32, #tpu.memory_space<vmem>>, vector<200x892xf32>
      %cst_172 = arith.constant dense<0.000000e+00> : vector<8x892xf32>
      %196 = tpu.matmul %0, %195, %cst_172 {dimension_numbers = #tpu.dot_dimension_numbers<[1], [0], [0], [1], [0, 0, 1, 1], [], []>} : vector<8x200xf32>, vector<200x892xf32>, vector<8x892xf32> -> vector<8x892xf32>
      %197 = vector.broadcast %2 : vector<8x1xf32> to vector<8x892xf32>
      %198 = arith.addf %196, %197 : vector<8x892xf32>
      %cst_173 = arith.constant 0.000000e+00 : f32
      %199 = vector.broadcast %cst_173 : f32 to vector<8x892xf32>
      %200 = arith.maximumf %198, %199 : vector<8x892xf32>
      %201 = vector.extract_strided_slice %200 {offsets = [0, 0], sizes = [8, 859], strides = [1, 1]} : vector<8x892xf32> to vector<8x859xf32>
      %202 = vector.extract_strided_slice %200 {offsets = [0, 1], sizes = [8, 859], strides = [1, 1]} : vector<8x892xf32> to vector<8x859xf32>
      %203 = arith.maximumf %201, %202 : vector<8x859xf32>
      %204 = vector.extract_strided_slice %200 {offsets = [0, 32], sizes = [8, 859], strides = [1, 1]} : vector<8x892xf32> to vector<8x859xf32>
      %205 = vector.extract_strided_slice %200 {offsets = [0, 33], sizes = [8, 859], strides = [1, 1]} : vector<8x892xf32> to vector<8x859xf32>
      %206 = arith.maximumf %204, %205 : vector<8x859xf32>
      %207 = arith.maximumf %203, %206 : vector<8x859xf32>
      %208 = vector.extract_strided_slice %207 {offsets = [0, 0], sizes = [8, 595], strides = [1, 1]} : vector<8x859xf32> to vector<8x595xf32>
      %c0_174 = arith.constant 0 : index
      %c0_175 = arith.constant 0 : index
      %209 = vector.load %arg20[%c0_174, %c0_175] : memref<200x595xf32, #tpu.memory_space<vmem>>, vector<8x595xf32>
      tpu.vector_store %arg20[%c0_174, %c0_175], %208 {strides = array<i32>} : memref<200x595xf32, #tpu.memory_space<vmem>>, vector<8x595xf32>,
      %210 = vector.extract_strided_slice %207 {offsets = [0, 2], sizes = [8, 595], strides = [1, 1]} : vector<8x859xf32> to vector<8x595xf32>
      %c8_176 = arith.constant 8 : index
      %c0_177 = arith.constant 0 : index
      %211 = vector.load %arg20[%c8_176, %c0_177] : memref<200x595xf32, #tpu.memory_space<vmem>>, vector<8x595xf32>
      tpu.vector_store %arg20[%c8_176, %c0_177], %210 {strides = array<i32>} : memref<200x595xf32, #tpu.memory_space<vmem>>, vector<8x595xf32>,
      %212 = vector.extract_strided_slice %207 {offsets = [0, 4], sizes = [8, 595], strides = [1, 1]} : vector<8x859xf32> to vector<8x595xf32>
      %c16_178 = arith.constant 16 : index
      %c0_179 = arith.constant 0 : index
      %213 = vector.load %arg20[%c16_178, %c0_179] : memref<200x595xf32, #tpu.memory_space<vmem>>, vector<8x595xf32>
      tpu.vector_store %arg20[%c16_178, %c0_179], %212 {strides = array<i32>} : memref<200x595xf32, #tpu.memory_space<vmem>>, vector<8x595xf32>,
      %214 = vector.extract_strided_slice %207 {offsets = [0, 6], sizes = [8, 595], strides = [1, 1]} : vector<8x859xf32> to vector<8x595xf32>
      %c24_180 = arith.constant 24 : index
      %c0_181 = arith.constant 0 : index
      %215 = vector.load %arg20[%c24_180, %c0_181] : memref<200x595xf32, #tpu.memory_space<vmem>>, vector<8x595xf32>
      tpu.vector_store %arg20[%c24_180, %c0_181], %214 {strides = array<i32>} : memref<200x595xf32, #tpu.memory_space<vmem>>, vector<8x595xf32>,
      %216 = vector.extract_strided_slice %207 {offsets = [0, 8], sizes = [8, 595], strides = [1, 1]} : vector<8x859xf32> to vector<8x595xf32>
      %c32_182 = arith.constant 32 : index
      %c0_183 = arith.constant 0 : index
      %217 = vector.load %arg20[%c32_182, %c0_183] : memref<200x595xf32, #tpu.memory_space<vmem>>, vector<8x595xf32>
      tpu.vector_store %arg20[%c32_182, %c0_183], %216 {strides = array<i32>} : memref<200x595xf32, #tpu.memory_space<vmem>>, vector<8x595xf32>,
      %218 = vector.extract_strided_slice %207 {offsets = [0, 64], sizes = [8, 595], strides = [1, 1]} : vector<8x859xf32> to vector<8x595xf32>
      %c40_184 = arith.constant 40 : index
      %c0_185 = arith.constant 0 : index
      %219 = vector.load %arg20[%c40_184, %c0_185] : memref<200x595xf32, #tpu.memory_space<vmem>>, vector<8x595xf32>
      tpu.vector_store %arg20[%c40_184, %c0_185], %218 {strides = array<i32>} : memref<200x595xf32, #tpu.memory_space<vmem>>, vector<8x595xf32>,
      %220 = vector.extract_strided_slice %207 {offsets = [0, 66], sizes = [8, 595], strides = [1, 1]} : vector<8x859xf32> to vector<8x595xf32>
      %c48_186 = arith.constant 48 : index
      %c0_187 = arith.constant 0 : index
      %221 = vector.load %arg20[%c48_186, %c0_187] : memref<200x595xf32, #tpu.memory_space<vmem>>, vector<8x595xf32>
      tpu.vector_store %arg20[%c48_186, %c0_187], %220 {strides = array<i32>} : memref<200x595xf32, #tpu.memory_space<vmem>>, vector<8x595xf32>,
      %222 = vector.extract_strided_slice %207 {offsets = [0, 68], sizes = [8, 595], strides = [1, 1]} : vector<8x859xf32> to vector<8x595xf32>
      %c56_188 = arith.constant 56 : index
      %c0_189 = arith.constant 0 : index
      %223 = vector.load %arg20[%c56_188, %c0_189] : memref<200x595xf32, #tpu.memory_space<vmem>>, vector<8x595xf32>
      tpu.vector_store %arg20[%c56_188, %c0_189], %222 {strides = array<i32>} : memref<200x595xf32, #tpu.memory_space<vmem>>, vector<8x595xf32>,
      %224 = vector.extract_strided_slice %207 {offsets = [0, 70], sizes = [8, 595], strides = [1, 1]} : vector<8x859xf32> to vector<8x595xf32>
      %c64_190 = arith.constant 64 : index
      %c0_191 = arith.constant 0 : index
      %225 = vector.load %arg20[%c64_190, %c0_191] : memref<200x595xf32, #tpu.memory_space<vmem>>, vector<8x595xf32>
      tpu.vector_store %arg20[%c64_190, %c0_191], %224 {strides = array<i32>} : memref<200x595xf32, #tpu.memory_space<vmem>>, vector<8x595xf32>,
      %226 = vector.extract_strided_slice %207 {offsets = [0, 72], sizes = [8, 595], strides = [1, 1]} : vector<8x859xf32> to vector<8x595xf32>
      %c72_192 = arith.constant 72 : index
      %c0_193 = arith.constant 0 : index
      %227 = vector.load %arg20[%c72_192, %c0_193] : memref<200x595xf32, #tpu.memory_space<vmem>>, vector<8x595xf32>
      tpu.vector_store %arg20[%c72_192, %c0_193], %226 {strides = array<i32>} : memref<200x595xf32, #tpu.memory_space<vmem>>, vector<8x595xf32>,
      %228 = vector.extract_strided_slice %207 {offsets = [0, 128], sizes = [8, 595], strides = [1, 1]} : vector<8x859xf32> to vector<8x595xf32>
      %c80_194 = arith.constant 80 : index
      %c0_195 = arith.constant 0 : index
      %229 = vector.load %arg20[%c80_194, %c0_195] : memref<200x595xf32, #tpu.memory_space<vmem>>, vector<8x595xf32>
      tpu.vector_store %arg20[%c80_194, %c0_195], %228 {strides = array<i32>} : memref<200x595xf32, #tpu.memory_space<vmem>>, vector<8x595xf32>,
      %230 = vector.extract_strided_slice %207 {offsets = [0, 130], sizes = [8, 595], strides = [1, 1]} : vector<8x859xf32> to vector<8x595xf32>
      %c88_196 = arith.constant 88 : index
      %c0_197 = arith.constant 0 : index
      %231 = vector.load %arg20[%c88_196, %c0_197] : memref<200x595xf32, #tpu.memory_space<vmem>>, vector<8x595xf32>
      tpu.vector_store %arg20[%c88_196, %c0_197], %230 {strides = array<i32>} : memref<200x595xf32, #tpu.memory_space<vmem>>, vector<8x595xf32>,
      %232 = vector.extract_strided_slice %207 {offsets = [0, 132], sizes = [8, 595], strides = [1, 1]} : vector<8x859xf32> to vector<8x595xf32>
      %c96_198 = arith.constant 96 : index
      %c0_199 = arith.constant 0 : index
      %233 = vector.load %arg20[%c96_198, %c0_199] : memref<200x595xf32, #tpu.memory_space<vmem>>, vector<8x595xf32>
      tpu.vector_store %arg20[%c96_198, %c0_199], %232 {strides = array<i32>} : memref<200x595xf32, #tpu.memory_space<vmem>>, vector<8x595xf32>,
      %234 = vector.extract_strided_slice %207 {offsets = [0, 134], sizes = [8, 595], strides = [1, 1]} : vector<8x859xf32> to vector<8x595xf32>
      %c104_200 = arith.constant 104 : index
      %c0_201 = arith.constant 0 : index
      %235 = vector.load %arg20[%c104_200, %c0_201] : memref<200x595xf32, #tpu.memory_space<vmem>>, vector<8x595xf32>
      tpu.vector_store %arg20[%c104_200, %c0_201], %234 {strides = array<i32>} : memref<200x595xf32, #tpu.memory_space<vmem>>, vector<8x595xf32>,
      %236 = vector.extract_strided_slice %207 {offsets = [0, 136], sizes = [8, 595], strides = [1, 1]} : vector<8x859xf32> to vector<8x595xf32>
      %c112_202 = arith.constant 112 : index
      %c0_203 = arith.constant 0 : index
      %237 = vector.load %arg20[%c112_202, %c0_203] : memref<200x595xf32, #tpu.memory_space<vmem>>, vector<8x595xf32>
      tpu.vector_store %arg20[%c112_202, %c0_203], %236 {strides = array<i32>} : memref<200x595xf32, #tpu.memory_space<vmem>>, vector<8x595xf32>,
      %238 = vector.extract_strided_slice %207 {offsets = [0, 192], sizes = [8, 595], strides = [1, 1]} : vector<8x859xf32> to vector<8x595xf32>
      %c120_204 = arith.constant 120 : index
      %c0_205 = arith.constant 0 : index
      %239 = vector.load %arg20[%c120_204, %c0_205] : memref<200x595xf32, #tpu.memory_space<vmem>>, vector<8x595xf32>
      tpu.vector_store %arg20[%c120_204, %c0_205], %238 {strides = array<i32>} : memref<200x595xf32, #tpu.memory_space<vmem>>, vector<8x595xf32>,
      %240 = vector.extract_strided_slice %207 {offsets = [0, 194], sizes = [8, 595], strides = [1, 1]} : vector<8x859xf32> to vector<8x595xf32>
      %c128_206 = arith.constant 128 : index
      %c0_207 = arith.constant 0 : index
      %241 = vector.load %arg20[%c128_206, %c0_207] : memref<200x595xf32, #tpu.memory_space<vmem>>, vector<8x595xf32>
      tpu.vector_store %arg20[%c128_206, %c0_207], %240 {strides = array<i32>} : memref<200x595xf32, #tpu.memory_space<vmem>>, vector<8x595xf32>,
      %242 = vector.extract_strided_slice %207 {offsets = [0, 196], sizes = [8, 595], strides = [1, 1]} : vector<8x859xf32> to vector<8x595xf32>
      %c136_208 = arith.constant 136 : index
      %c0_209 = arith.constant 0 : index
      %243 = vector.load %arg20[%c136_208, %c0_209] : memref<200x595xf32, #tpu.memory_space<vmem>>, vector<8x595xf32>
      tpu.vector_store %arg20[%c136_208, %c0_209], %242 {strides = array<i32>} : memref<200x595xf32, #tpu.memory_space<vmem>>, vector<8x595xf32>,
      %244 = vector.extract_strided_slice %207 {offsets = [0, 198], sizes = [8, 595], strides = [1, 1]} : vector<8x859xf32> to vector<8x595xf32>
      %c144_210 = arith.constant 144 : index
      %c0_211 = arith.constant 0 : index
      %245 = vector.load %arg20[%c144_210, %c0_211] : memref<200x595xf32, #tpu.memory_space<vmem>>, vector<8x595xf32>
      tpu.vector_store %arg20[%c144_210, %c0_211], %244 {strides = array<i32>} : memref<200x595xf32, #tpu.memory_space<vmem>>, vector<8x595xf32>,
      %246 = vector.extract_strided_slice %207 {offsets = [0, 200], sizes = [8, 595], strides = [1, 1]} : vector<8x859xf32> to vector<8x595xf32>
      %c152_212 = arith.constant 152 : index
      %c0_213 = arith.constant 0 : index
      %247 = vector.load %arg20[%c152_212, %c0_213] : memref<200x595xf32, #tpu.memory_space<vmem>>, vector<8x595xf32>
      tpu.vector_store %arg20[%c152_212, %c0_213], %246 {strides = array<i32>} : memref<200x595xf32, #tpu.memory_space<vmem>>, vector<8x595xf32>,
      %248 = vector.extract_strided_slice %207 {offsets = [0, 256], sizes = [8, 595], strides = [1, 1]} : vector<8x859xf32> to vector<8x595xf32>
      %c160_214 = arith.constant 160 : index
      %c0_215 = arith.constant 0 : index
      %249 = vector.load %arg20[%c160_214, %c0_215] : memref<200x595xf32, #tpu.memory_space<vmem>>, vector<8x595xf32>
      tpu.vector_store %arg20[%c160_214, %c0_215], %248 {strides = array<i32>} : memref<200x595xf32, #tpu.memory_space<vmem>>, vector<8x595xf32>,
      %250 = vector.extract_strided_slice %207 {offsets = [0, 258], sizes = [8, 595], strides = [1, 1]} : vector<8x859xf32> to vector<8x595xf32>
      %c168_216 = arith.constant 168 : index
      %c0_217 = arith.constant 0 : index
      %251 = vector.load %arg20[%c168_216, %c0_217] : memref<200x595xf32, #tpu.memory_space<vmem>>, vector<8x595xf32>
      tpu.vector_store %arg20[%c168_216, %c0_217], %250 {strides = array<i32>} : memref<200x595xf32, #tpu.memory_space<vmem>>, vector<8x595xf32>,
      %252 = vector.extract_strided_slice %207 {offsets = [0, 260], sizes = [8, 595], strides = [1, 1]} : vector<8x859xf32> to vector<8x595xf32>
      %c176_218 = arith.constant 176 : index
      %c0_219 = arith.constant 0 : index
      %253 = vector.load %arg20[%c176_218, %c0_219] : memref<200x595xf32, #tpu.memory_space<vmem>>, vector<8x595xf32>
      tpu.vector_store %arg20[%c176_218, %c0_219], %252 {strides = array<i32>} : memref<200x595xf32, #tpu.memory_space<vmem>>, vector<8x595xf32>,
      %254 = vector.extract_strided_slice %207 {offsets = [0, 262], sizes = [8, 595], strides = [1, 1]} : vector<8x859xf32> to vector<8x595xf32>
      %c184_220 = arith.constant 184 : index
      %c0_221 = arith.constant 0 : index
      %255 = vector.load %arg20[%c184_220, %c0_221] : memref<200x595xf32, #tpu.memory_space<vmem>>, vector<8x595xf32>
      tpu.vector_store %arg20[%c184_220, %c0_221], %254 {strides = array<i32>} : memref<200x595xf32, #tpu.memory_space<vmem>>, vector<8x595xf32>,
      %256 = vector.extract_strided_slice %207 {offsets = [0, 264], sizes = [8, 595], strides = [1, 1]} : vector<8x859xf32> to vector<8x595xf32>
      %c192_222 = arith.constant 192 : index
      %c0_223 = arith.constant 0 : index
      %257 = vector.load %arg20[%c192_222, %c0_223] : memref<200x595xf32, #tpu.memory_space<vmem>>, vector<8x595xf32>
      tpu.vector_store %arg20[%c192_222, %c0_223], %256 {strides = array<i32>} : memref<200x595xf32, #tpu.memory_space<vmem>>, vector<8x595xf32>,
      %c0_224 = arith.constant 0 : index
      %c0_225 = arith.constant 0 : index
      %258 = vector.load %arg20[%c0_224, %c0_225] : memref<200x595xf32, #tpu.memory_space<vmem>>, vector<200x595xf32>
      %cst_226 = arith.constant dense<0.000000e+00> : vector<16x595xf32>
      %259 = tpu.matmul %1, %258, %cst_226 {dimension_numbers = #tpu.dot_dimension_numbers<[1], [0], [0], [1], [0, 0, 1, 1], [], []>} : vector<16x200xf32>, vector<200x595xf32>, vector<16x595xf32> -> vector<16x595xf32>
      %260 = vector.broadcast %3 : vector<16x1xf32> to vector<16x595xf32>
      %261 = arith.addf %259, %260 : vector<16x595xf32>
      %cst_227 = arith.constant 0.000000e+00 : f32
      %262 = vector.broadcast %cst_227 : f32 to vector<16x595xf32>
      %263 = arith.maximumf %261, %262 : vector<16x595xf32>
      %264 = vector.extract_strided_slice %263 {offsets = [0, 0], sizes = [16, 529], strides = [1, 1]} : vector<16x595xf32> to vector<16x529xf32>
      %265 = vector.extract_strided_slice %263 {offsets = [0, 2], sizes = [16, 529], strides = [1, 1]} : vector<16x595xf32> to vector<16x529xf32>
      %266 = arith.maximumf %264, %265 : vector<16x529xf32>
      %267 = vector.extract_strided_slice %263 {offsets = [0, 64], sizes = [16, 529], strides = [1, 1]} : vector<16x595xf32> to vector<16x529xf32>
      %268 = vector.extract_strided_slice %263 {offsets = [0, 66], sizes = [16, 529], strides = [1, 1]} : vector<16x595xf32> to vector<16x529xf32>
      %269 = arith.maximumf %267, %268 : vector<16x529xf32>
      %270 = arith.maximumf %266, %269 : vector<16x529xf32>
      %cst_228 = arith.constant dense<0.000000e+00> : vector<16x32xf32>
      %271 = tpu.matmul %270, %4, %cst_228 {dimension_numbers = #tpu.dot_dimension_numbers<[1], [0], [0], [1], [0, 0, 1, 1], [], []>} : vector<16x529xf32>, vector<529x32xf32>, vector<16x32xf32> -> vector<16x32xf32>
      %272 = arith.index_cast %arg22 : i32 to index
      %c0_229 = arith.constant 0 : index
      %c0_230 = arith.constant 0 : index
      %273 = vector.load %arg21[%272, %c0_229, %c0_230] : memref<8x16x32xf32, #tpu.memory_space<vmem>>, vector<1x16x32xf32>
      %274 = vector.shape_cast %273 : vector<1x16x32xf32> to vector<16x32xf32>
      %275 = vector.shape_cast %271 : vector<16x32xf32> to vector<1x16x32xf32>
      tpu.vector_store %arg21[%272, %c0_229, %c0_230], %275 {strides = array<i32>} : memref<8x16x32xf32, #tpu.memory_space<vmem>>, vector<1x16x32xf32>,
    }
    %c8_i32_9 = arith.constant 8 : i32
    %cst = arith.constant 0.000000e+00 : f32
    %6 = vector.broadcast %cst : f32 to vector<8x128xf32>
    %c0_10 = arith.constant 0 : index
    %c0_11 = arith.constant 0 : index
    %c0_12 = arith.constant 0 : index
    %7 = vector.load %arg21[%c0_10, %c0_11, %c0_12] : memref<8x16x32xf32, #tpu.memory_space<vmem>>, vector<8x1x32xf32>
    %8 = vector.shape_cast %7 : vector<8x1x32xf32> to vector<8x32xf32>
    %c0_13 = arith.constant 0 : index
    %c0_14 = arith.constant 0 : index
    %c0_15 = arith.constant 0 : index
    %9 = vector.load %arg7[%c0_13, %c0_14, %c0_15] : memref<16x32x128xf32, #tpu.memory_space<vmem>>, vector<1x32x128xf32>
    %10 = vector.shape_cast %9 : vector<1x32x128xf32> to vector<32x128xf32>
    %cst_16 = arith.constant dense<0.000000e+00> : vector<8x128xf32>
    %11 = tpu.matmul %8, %10, %cst_16 {dimension_numbers = #tpu.dot_dimension_numbers<[1], [0], [0], [1], [0, 0, 1, 1], [], []>} : vector<8x32xf32>, vector<32x128xf32>, vector<8x128xf32> -> vector<8x128xf32>
    %12 = arith.addf %6, %11 : vector<8x128xf32>
    %c0_17 = arith.constant 0 : index
    %c1 = arith.constant 1 : index
    %c0_18 = arith.constant 0 : index
    %13 = vector.load %arg21[%c0_17, %c1, %c0_18] : memref<8x16x32xf32, #tpu.memory_space<vmem>>, vector<8x1x32xf32>
    %14 = vector.shape_cast %13 : vector<8x1x32xf32> to vector<8x32xf32>
    %c1_19 = arith.constant 1 : index
    %c0_20 = arith.constant 0 : index
    %c0_21 = arith.constant 0 : index
    %15 = vector.load %arg7[%c1_19, %c0_20, %c0_21] : memref<16x32x128xf32, #tpu.memory_space<vmem>>, vector<1x32x128xf32>
    %16 = vector.shape_cast %15 : vector<1x32x128xf32> to vector<32x128xf32>
    %cst_22 = arith.constant dense<0.000000e+00> : vector<8x128xf32>
    %17 = tpu.matmul %14, %16, %cst_22 {dimension_numbers = #tpu.dot_dimension_numbers<[1], [0], [0], [1], [0, 0, 1, 1], [], []>} : vector<8x32xf32>, vector<32x128xf32>, vector<8x128xf32> -> vector<8x128xf32>
    %18 = arith.addf %12, %17 : vector<8x128xf32>
    %c0_23 = arith.constant 0 : index
    %c2 = arith.constant 2 : index
    %c0_24 = arith.constant 0 : index
    %19 = vector.load %arg21[%c0_23, %c2, %c0_24] : memref<8x16x32xf32, #tpu.memory_space<vmem>>, vector<8x1x32xf32>
    %20 = vector.shape_cast %19 : vector<8x1x32xf32> to vector<8x32xf32>
    %c2_25 = arith.constant 2 : index
    %c0_26 = arith.constant 0 : index
    %c0_27 = arith.constant 0 : index
    %21 = vector.load %arg7[%c2_25, %c0_26, %c0_27] : memref<16x32x128xf32, #tpu.memory_space<vmem>>, vector<1x32x128xf32>
    %22 = vector.shape_cast %21 : vector<1x32x128xf32> to vector<32x128xf32>
    %cst_28 = arith.constant dense<0.000000e+00> : vector<8x128xf32>
    %23 = tpu.matmul %20, %22, %cst_28 {dimension_numbers = #tpu.dot_dimension_numbers<[1], [0], [0], [1], [0, 0, 1, 1], [], []>} : vector<8x32xf32>, vector<32x128xf32>, vector<8x128xf32> -> vector<8x128xf32>
    %24 = arith.addf %18, %23 : vector<8x128xf32>
    %c0_29 = arith.constant 0 : index
    %c3 = arith.constant 3 : index
    %c0_30 = arith.constant 0 : index
    %25 = vector.load %arg21[%c0_29, %c3, %c0_30] : memref<8x16x32xf32, #tpu.memory_space<vmem>>, vector<8x1x32xf32>
    %26 = vector.shape_cast %25 : vector<8x1x32xf32> to vector<8x32xf32>
    %c3_31 = arith.constant 3 : index
    %c0_32 = arith.constant 0 : index
    %c0_33 = arith.constant 0 : index
    %27 = vector.load %arg7[%c3_31, %c0_32, %c0_33] : memref<16x32x128xf32, #tpu.memory_space<vmem>>, vector<1x32x128xf32>
    %28 = vector.shape_cast %27 : vector<1x32x128xf32> to vector<32x128xf32>
    %cst_34 = arith.constant dense<0.000000e+00> : vector<8x128xf32>
    %29 = tpu.matmul %26, %28, %cst_34 {dimension_numbers = #tpu.dot_dimension_numbers<[1], [0], [0], [1], [0, 0, 1, 1], [], []>} : vector<8x32xf32>, vector<32x128xf32>, vector<8x128xf32> -> vector<8x128xf32>
    %30 = arith.addf %24, %29 : vector<8x128xf32>
    %c0_35 = arith.constant 0 : index
    %c4 = arith.constant 4 : index
    %c0_36 = arith.constant 0 : index
    %31 = vector.load %arg21[%c0_35, %c4, %c0_36] : memref<8x16x32xf32, #tpu.memory_space<vmem>>, vector<8x1x32xf32>
    %32 = vector.shape_cast %31 : vector<8x1x32xf32> to vector<8x32xf32>
    %c4_37 = arith.constant 4 : index
    %c0_38 = arith.constant 0 : index
    %c0_39 = arith.constant 0 : index
    %33 = vector.load %arg7[%c4_37, %c0_38, %c0_39] : memref<16x32x128xf32, #tpu.memory_space<vmem>>, vector<1x32x128xf32>
    %34 = vector.shape_cast %33 : vector<1x32x128xf32> to vector<32x128xf32>
    %cst_40 = arith.constant dense<0.000000e+00> : vector<8x128xf32>
    %35 = tpu.matmul %32, %34, %cst_40 {dimension_numbers = #tpu.dot_dimension_numbers<[1], [0], [0], [1], [0, 0, 1, 1], [], []>} : vector<8x32xf32>, vector<32x128xf32>, vector<8x128xf32> -> vector<8x128xf32>
    %36 = arith.addf %30, %35 : vector<8x128xf32>
    %c0_41 = arith.constant 0 : index
    %c5 = arith.constant 5 : index
    %c0_42 = arith.constant 0 : index
    %37 = vector.load %arg21[%c0_41, %c5, %c0_42] : memref<8x16x32xf32, #tpu.memory_space<vmem>>, vector<8x1x32xf32>
    %38 = vector.shape_cast %37 : vector<8x1x32xf32> to vector<8x32xf32>
    %c5_43 = arith.constant 5 : index
    %c0_44 = arith.constant 0 : index
    %c0_45 = arith.constant 0 : index
    %39 = vector.load %arg7[%c5_43, %c0_44, %c0_45] : memref<16x32x128xf32, #tpu.memory_space<vmem>>, vector<1x32x128xf32>
    %40 = vector.shape_cast %39 : vector<1x32x128xf32> to vector<32x128xf32>
    %cst_46 = arith.constant dense<0.000000e+00> : vector<8x128xf32>
    %41 = tpu.matmul %38, %40, %cst_46 {dimension_numbers = #tpu.dot_dimension_numbers<[1], [0], [0], [1], [0, 0, 1, 1], [], []>} : vector<8x32xf32>, vector<32x128xf32>, vector<8x128xf32> -> vector<8x128xf32>
    %42 = arith.addf %36, %41 : vector<8x128xf32>
    %c0_47 = arith.constant 0 : index
    %c6 = arith.constant 6 : index
    %c0_48 = arith.constant 0 : index
    %43 = vector.load %arg21[%c0_47, %c6, %c0_48] : memref<8x16x32xf32, #tpu.memory_space<vmem>>, vector<8x1x32xf32>
    %44 = vector.shape_cast %43 : vector<8x1x32xf32> to vector<8x32xf32>
    %c6_49 = arith.constant 6 : index
    %c0_50 = arith.constant 0 : index
    %c0_51 = arith.constant 0 : index
    %45 = vector.load %arg7[%c6_49, %c0_50, %c0_51] : memref<16x32x128xf32, #tpu.memory_space<vmem>>, vector<1x32x128xf32>
    %46 = vector.shape_cast %45 : vector<1x32x128xf32> to vector<32x128xf32>
    %cst_52 = arith.constant dense<0.000000e+00> : vector<8x128xf32>
    %47 = tpu.matmul %44, %46, %cst_52 {dimension_numbers = #tpu.dot_dimension_numbers<[1], [0], [0], [1], [0, 0, 1, 1], [], []>} : vector<8x32xf32>, vector<32x128xf32>, vector<8x128xf32> -> vector<8x128xf32>
    %48 = arith.addf %42, %47 : vector<8x128xf32>
    %c0_53 = arith.constant 0 : index
    %c7 = arith.constant 7 : index
    %c0_54 = arith.constant 0 : index
    %49 = vector.load %arg21[%c0_53, %c7, %c0_54] : memref<8x16x32xf32, #tpu.memory_space<vmem>>, vector<8x1x32xf32>
    %50 = vector.shape_cast %49 : vector<8x1x32xf32> to vector<8x32xf32>
    %c7_55 = arith.constant 7 : index
    %c0_56 = arith.constant 0 : index
    %c0_57 = arith.constant 0 : index
    %51 = vector.load %arg7[%c7_55, %c0_56, %c0_57] : memref<16x32x128xf32, #tpu.memory_space<vmem>>, vector<1x32x128xf32>
    %52 = vector.shape_cast %51 : vector<1x32x128xf32> to vector<32x128xf32>
    %cst_58 = arith.constant dense<0.000000e+00> : vector<8x128xf32>
    %53 = tpu.matmul %50, %52, %cst_58 {dimension_numbers = #tpu.dot_dimension_numbers<[1], [0], [0], [1], [0, 0, 1, 1], [], []>} : vector<8x32xf32>, vector<32x128xf32>, vector<8x128xf32> -> vector<8x128xf32>
    %54 = arith.addf %48, %53 : vector<8x128xf32>
    %c0_59 = arith.constant 0 : index
    %c8 = arith.constant 8 : index
    %c0_60 = arith.constant 0 : index
    %55 = vector.load %arg21[%c0_59, %c8, %c0_60] : memref<8x16x32xf32, #tpu.memory_space<vmem>>, vector<8x1x32xf32>
    %56 = vector.shape_cast %55 : vector<8x1x32xf32> to vector<8x32xf32>
    %c8_61 = arith.constant 8 : index
    %c0_62 = arith.constant 0 : index
    %c0_63 = arith.constant 0 : index
    %57 = vector.load %arg7[%c8_61, %c0_62, %c0_63] : memref<16x32x128xf32, #tpu.memory_space<vmem>>, vector<1x32x128xf32>
    %58 = vector.shape_cast %57 : vector<1x32x128xf32> to vector<32x128xf32>
    %cst_64 = arith.constant dense<0.000000e+00> : vector<8x128xf32>
    %59 = tpu.matmul %56, %58, %cst_64 {dimension_numbers = #tpu.dot_dimension_numbers<[1], [0], [0], [1], [0, 0, 1, 1], [], []>} : vector<8x32xf32>, vector<32x128xf32>, vector<8x128xf32> -> vector<8x128xf32>
    %60 = arith.addf %54, %59 : vector<8x128xf32>
    %c0_65 = arith.constant 0 : index
    %c9 = arith.constant 9 : index
    %c0_66 = arith.constant 0 : index
    %61 = vector.load %arg21[%c0_65, %c9, %c0_66] : memref<8x16x32xf32, #tpu.memory_space<vmem>>, vector<8x1x32xf32>
    %62 = vector.shape_cast %61 : vector<8x1x32xf32> to vector<8x32xf32>
    %c9_67 = arith.constant 9 : index
    %c0_68 = arith.constant 0 : index
    %c0_69 = arith.constant 0 : index
    %63 = vector.load %arg7[%c9_67, %c0_68, %c0_69] : memref<16x32x128xf32, #tpu.memory_space<vmem>>, vector<1x32x128xf32>
    %64 = vector.shape_cast %63 : vector<1x32x128xf32> to vector<32x128xf32>
    %cst_70 = arith.constant dense<0.000000e+00> : vector<8x128xf32>
    %65 = tpu.matmul %62, %64, %cst_70 {dimension_numbers = #tpu.dot_dimension_numbers<[1], [0], [0], [1], [0, 0, 1, 1], [], []>} : vector<8x32xf32>, vector<32x128xf32>, vector<8x128xf32> -> vector<8x128xf32>
    %66 = arith.addf %60, %65 : vector<8x128xf32>
    %c0_71 = arith.constant 0 : index
    %c10 = arith.constant 10 : index
    %c0_72 = arith.constant 0 : index
    %67 = vector.load %arg21[%c0_71, %c10, %c0_72] : memref<8x16x32xf32, #tpu.memory_space<vmem>>, vector<8x1x32xf32>
    %68 = vector.shape_cast %67 : vector<8x1x32xf32> to vector<8x32xf32>
    %c10_73 = arith.constant 10 : index
    %c0_74 = arith.constant 0 : index
    %c0_75 = arith.constant 0 : index
    %69 = vector.load %arg7[%c10_73, %c0_74, %c0_75] : memref<16x32x128xf32, #tpu.memory_space<vmem>>, vector<1x32x128xf32>
    %70 = vector.shape_cast %69 : vector<1x32x128xf32> to vector<32x128xf32>
    %cst_76 = arith.constant dense<0.000000e+00> : vector<8x128xf32>
    %71 = tpu.matmul %68, %70, %cst_76 {dimension_numbers = #tpu.dot_dimension_numbers<[1], [0], [0], [1], [0, 0, 1, 1], [], []>} : vector<8x32xf32>, vector<32x128xf32>, vector<8x128xf32> -> vector<8x128xf32>
    %72 = arith.addf %66, %71 : vector<8x128xf32>
    %c0_77 = arith.constant 0 : index
    %c11 = arith.constant 11 : index
    %c0_78 = arith.constant 0 : index
    %73 = vector.load %arg21[%c0_77, %c11, %c0_78] : memref<8x16x32xf32, #tpu.memory_space<vmem>>, vector<8x1x32xf32>
    %74 = vector.shape_cast %73 : vector<8x1x32xf32> to vector<8x32xf32>
    %c11_79 = arith.constant 11 : index
    %c0_80 = arith.constant 0 : index
    %c0_81 = arith.constant 0 : index
    %75 = vector.load %arg7[%c11_79, %c0_80, %c0_81] : memref<16x32x128xf32, #tpu.memory_space<vmem>>, vector<1x32x128xf32>
    %76 = vector.shape_cast %75 : vector<1x32x128xf32> to vector<32x128xf32>
    %cst_82 = arith.constant dense<0.000000e+00> : vector<8x128xf32>
    %77 = tpu.matmul %74, %76, %cst_82 {dimension_numbers = #tpu.dot_dimension_numbers<[1], [0], [0], [1], [0, 0, 1, 1], [], []>} : vector<8x32xf32>, vector<32x128xf32>, vector<8x128xf32> -> vector<8x128xf32>
    %78 = arith.addf %72, %77 : vector<8x128xf32>
    %c0_83 = arith.constant 0 : index
    %c12 = arith.constant 12 : index
    %c0_84 = arith.constant 0 : index
    %79 = vector.load %arg21[%c0_83, %c12, %c0_84] : memref<8x16x32xf32, #tpu.memory_space<vmem>>, vector<8x1x32xf32>
    %80 = vector.shape_cast %79 : vector<8x1x32xf32> to vector<8x32xf32>
    %c12_85 = arith.constant 12 : index
    %c0_86 = arith.constant 0 : index
    %c0_87 = arith.constant 0 : index
    %81 = vector.load %arg7[%c12_85, %c0_86, %c0_87] : memref<16x32x128xf32, #tpu.memory_space<vmem>>, vector<1x32x128xf32>
    %82 = vector.shape_cast %81 : vector<1x32x128xf32> to vector<32x128xf32>
    %cst_88 = arith.constant dense<0.000000e+00> : vector<8x128xf32>
    %83 = tpu.matmul %80, %82, %cst_88 {dimension_numbers = #tpu.dot_dimension_numbers<[1], [0], [0], [1], [0, 0, 1, 1], [], []>} : vector<8x32xf32>, vector<32x128xf32>, vector<8x128xf32> -> vector<8x128xf32>
    %84 = arith.addf %78, %83 : vector<8x128xf32>
    %c0_89 = arith.constant 0 : index
    %c13 = arith.constant 13 : index
    %c0_90 = arith.constant 0 : index
    %85 = vector.load %arg21[%c0_89, %c13, %c0_90] : memref<8x16x32xf32, #tpu.memory_space<vmem>>, vector<8x1x32xf32>
    %86 = vector.shape_cast %85 : vector<8x1x32xf32> to vector<8x32xf32>
    %c13_91 = arith.constant 13 : index
    %c0_92 = arith.constant 0 : index
    %c0_93 = arith.constant 0 : index
    %87 = vector.load %arg7[%c13_91, %c0_92, %c0_93] : memref<16x32x128xf32, #tpu.memory_space<vmem>>, vector<1x32x128xf32>
    %88 = vector.shape_cast %87 : vector<1x32x128xf32> to vector<32x128xf32>
    %cst_94 = arith.constant dense<0.000000e+00> : vector<8x128xf32>
    %89 = tpu.matmul %86, %88, %cst_94 {dimension_numbers = #tpu.dot_dimension_numbers<[1], [0], [0], [1], [0, 0, 1, 1], [], []>} : vector<8x32xf32>, vector<32x128xf32>, vector<8x128xf32> -> vector<8x128xf32>
    %90 = arith.addf %84, %89 : vector<8x128xf32>
    %c0_95 = arith.constant 0 : index
    %c14 = arith.constant 14 : index
    %c0_96 = arith.constant 0 : index
    %91 = vector.load %arg21[%c0_95, %c14, %c0_96] : memref<8x16x32xf32, #tpu.memory_space<vmem>>, vector<8x1x32xf32>
    %92 = vector.shape_cast %91 : vector<8x1x32xf32> to vector<8x32xf32>
    %c14_97 = arith.constant 14 : index
    %c0_98 = arith.constant 0 : index
    %c0_99 = arith.constant 0 : index
    %93 = vector.load %arg7[%c14_97, %c0_98, %c0_99] : memref<16x32x128xf32, #tpu.memory_space<vmem>>, vector<1x32x128xf32>
    %94 = vector.shape_cast %93 : vector<1x32x128xf32> to vector<32x128xf32>
    %cst_100 = arith.constant dense<0.000000e+00> : vector<8x128xf32>
    %95 = tpu.matmul %92, %94, %cst_100 {dimension_numbers = #tpu.dot_dimension_numbers<[1], [0], [0], [1], [0, 0, 1, 1], [], []>} : vector<8x32xf32>, vector<32x128xf32>, vector<8x128xf32> -> vector<8x128xf32>
    %96 = arith.addf %90, %95 : vector<8x128xf32>
    %c0_101 = arith.constant 0 : index
    %c15 = arith.constant 15 : index
    %c0_102 = arith.constant 0 : index
    %97 = vector.load %arg21[%c0_101, %c15, %c0_102] : memref<8x16x32xf32, #tpu.memory_space<vmem>>, vector<8x1x32xf32>
    %98 = vector.shape_cast %97 : vector<8x1x32xf32> to vector<8x32xf32>
    %c15_103 = arith.constant 15 : index
    %c0_104 = arith.constant 0 : index
    %c0_105 = arith.constant 0 : index
    %99 = vector.load %arg7[%c15_103, %c0_104, %c0_105] : memref<16x32x128xf32, #tpu.memory_space<vmem>>, vector<1x32x128xf32>
    %100 = vector.shape_cast %99 : vector<1x32x128xf32> to vector<32x128xf32>
    %cst_106 = arith.constant dense<0.000000e+00> : vector<8x128xf32>
    %101 = tpu.matmul %98, %100, %cst_106 {dimension_numbers = #tpu.dot_dimension_numbers<[1], [0], [0], [1], [0, 0, 1, 1], [], []>} : vector<8x32xf32>, vector<32x128xf32>, vector<8x128xf32> -> vector<8x128xf32>
    %102 = arith.addf %96, %101 : vector<8x128xf32>
    %c0_107 = arith.constant 0 : index
    %c0_108 = arith.constant 0 : index
    %103 = vector.load %arg8[%c0_107, %c0_108] : memref<1x128xf32, #tpu.memory_space<vmem>>, vector<1x128xf32>
    %104 = vector.broadcast %103 : vector<1x128xf32> to vector<8x128xf32>
    %105 = arith.addf %102, %104 : vector<8x128xf32>
    %cst_109 = arith.constant 0.000000e+00 : f32
    %106 = vector.broadcast %cst_109 : f32 to vector<8x128xf32>
    %107 = arith.maximumf %105, %106 : vector<8x128xf32>
    %c0_110 = arith.constant 0 : index
    %c0_111 = arith.constant 0 : index
    %108 = vector.load %arg9[%c0_110, %c0_111] : memref<128x128xf32, #tpu.memory_space<vmem>>, vector<128x128xf32>
    %cst_112 = arith.constant dense<0.000000e+00> : vector<8x128xf32>
    %109 = tpu.matmul %107, %108, %cst_112 {dimension_numbers = #tpu.dot_dimension_numbers<[1], [0], [0], [1], [0, 0, 1, 1], [], []>} : vector<8x128xf32>, vector<128x128xf32>, vector<8x128xf32> -> vector<8x128xf32>
    %c0_113 = arith.constant 0 : index
    %c0_114 = arith.constant 0 : index
    %110 = vector.load %arg10[%c0_113, %c0_114] : memref<1x128xf32, #tpu.memory_space<vmem>>, vector<1x128xf32>
    %111 = vector.broadcast %110 : vector<1x128xf32> to vector<8x128xf32>
    %112 = arith.addf %109, %111 : vector<8x128xf32>
    %cst_115 = arith.constant 0.000000e+00 : f32
    %113 = vector.broadcast %cst_115 : f32 to vector<8x128xf32>
    %114 = arith.maximumf %112, %113 : vector<8x128xf32>
    %cst_116 = arith.constant 0.899999976 : f32
    %115 = vector.broadcast %cst_116 : f32 to vector<8x128xf32>
    %116 = arith.mulf %115, %114 : vector<8x128xf32>
    %c0_117 = arith.constant 0 : index
    %c0_118 = arith.constant 0 : index
    %117 = vector.load %arg11[%c0_117, %c0_118] : memref<1x128xf32, #tpu.memory_space<vmem>>, vector<1x128xf32>
    %cst_119 = arith.constant 1.000000e-01 : f32
    %118 = vector.broadcast %cst_119 : f32 to vector<1x128xf32>
    %119 = arith.mulf %118, %117 : vector<1x128xf32>
    %120 = vector.broadcast %119 : vector<1x128xf32> to vector<8x128xf32>
    %121 = arith.addf %116, %120 : vector<8x128xf32>
    %c0_120 = arith.constant 0 : index
    %c0_121 = arith.constant 0 : index
    %122 = vector.load %arg12[%c0_120, %c0_121] : memref<128x128xf32, #tpu.memory_space<vmem>>, vector<128x128xf32>
    %cst_122 = arith.constant dense<0.000000e+00> : vector<8x128xf32>
    %123 = tpu.matmul %121, %122, %cst_122 {dimension_numbers = #tpu.dot_dimension_numbers<[1], [0], [0], [1], [0, 0, 1, 1], [], []>} : vector<8x128xf32>, vector<128x128xf32>, vector<8x128xf32> -> vector<8x128xf32>
    %c0_123 = arith.constant 0 : index
    %c0_124 = arith.constant 0 : index
    %124 = vector.load %arg13[%c0_123, %c0_124] : memref<1x128xf32, #tpu.memory_space<vmem>>, vector<1x128xf32>
    %125 = vector.broadcast %124 : vector<1x128xf32> to vector<8x128xf32>
    %126 = arith.addf %123, %125 : vector<8x128xf32>
    %cst_125 = arith.constant 0.000000e+00 : f32
    %127 = vector.broadcast %cst_125 : f32 to vector<8x128xf32>
    %128 = arith.maximumf %126, %127 : vector<8x128xf32>
    %c0_126 = arith.constant 0 : index
    %c0_127 = arith.constant 0 : index
    %129 = vector.load %arg14[%c0_126, %c0_127] : memref<128x128xf32, #tpu.memory_space<vmem>>, vector<128x128xf32>
    %cst_128 = arith.constant dense<0.000000e+00> : vector<8x128xf32>
    %130 = tpu.matmul %128, %129, %cst_128 {dimension_numbers = #tpu.dot_dimension_numbers<[1], [0], [0], [1], [0, 0, 1, 1], [], []>} : vector<8x128xf32>, vector<128x128xf32>, vector<8x128xf32> -> vector<8x128xf32>
    %c0_129 = arith.constant 0 : index
    %c0_130 = arith.constant 0 : index
    %131 = vector.load %arg15[%c0_129, %c0_130] : memref<1x128xf32, #tpu.memory_space<vmem>>, vector<1x128xf32>
    %132 = vector.broadcast %131 : vector<1x128xf32> to vector<8x128xf32>
    %133 = arith.addf %130, %132 : vector<8x128xf32>
    %c0_131 = arith.constant 0 : index
    %c0_132 = arith.constant 0 : index
    %134 = vector.load %arg16[%c0_131, %c0_132] : memref<128x128xf32, #tpu.memory_space<vmem>>, vector<128x128xf32>
    %cst_133 = arith.constant dense<0.000000e+00> : vector<8x128xf32>
    %135 = tpu.matmul %133, %134, %cst_133 {dimension_numbers = #tpu.dot_dimension_numbers<[1], [0], [0], [1], [0, 0, 1, 1], [], []>} : vector<8x128xf32>, vector<128x128xf32>, vector<8x128xf32> -> vector<8x128xf32>
    %c0_134 = arith.constant 0 : index
    %c0_135 = arith.constant 0 : index
    %136 = vector.load %arg17[%c0_134, %c0_135] : memref<1x128xf32, #tpu.memory_space<vmem>>, vector<1x128xf32>
    %137 = vector.broadcast %136 : vector<1x128xf32> to vector<8x128xf32>
    %138 = arith.addf %135, %137 : vector<8x128xf32>
    %c0_136 = arith.constant 0 : index
    %c0_137 = arith.constant 0 : index
    %139 = vector.load %arg18[%c0_136, %c0_137] : memref<8x384xf32, #tpu.memory_space<vmem>>, vector<8x128xf32>
    tpu.vector_store %arg18[%c0_136, %c0_137], %114 {strides = array<i32>} : memref<8x384xf32, #tpu.memory_space<vmem>>, vector<8x128xf32>,
    %c0_138 = arith.constant 0 : index
    %c128 = arith.constant 128 : index
    %140 = vector.load %arg18[%c0_138, %c128] : memref<8x384xf32, #tpu.memory_space<vmem>>, vector<8x128xf32>
    tpu.vector_store %arg18[%c0_138, %c128], %133 {strides = array<i32>} : memref<8x384xf32, #tpu.memory_space<vmem>>, vector<8x128xf32>,
    %c0_139 = arith.constant 0 : index
    %c256 = arith.constant 256 : index
    %141 = vector.load %arg18[%c0_139, %c256] : memref<8x384xf32, #tpu.memory_space<vmem>>, vector<8x128xf32>
    tpu.vector_store %arg18[%c0_139, %c256], %138 {strides = array<i32>} : memref<8x384xf32, #tpu.memory_space<vmem>>, vector<8x128xf32>,
    return
  }
  func.func @transform_0(%arg0: i32) -> (i32, i32, i32) {
    %c0_i32 = arith.constant 0 : i32
    %c0_i32_0 = arith.constant 0 : i32
    %c0_i32_1 = arith.constant 0 : i32
    return %arg0, %c0_i32, %c0_i32_0 : i32, i32, i32
  }
  func.func @transform_1(%arg0: i32) -> (i32, i32) {
    %c0_i32 = arith.constant 0 : i32
    %c0_i32_0 = arith.constant 0 : i32
    %c0_i32_1 = arith.constant 0 : i32
    return %c0_i32, %c0_i32_0 : i32, i32
  }
  func.func @transform_2(%arg0: i32) -> (i32, i32) {
    %c0_i32 = arith.constant 0 : i32
    %c0_i32_0 = arith.constant 0 : i32
    %c0_i32_1 = arith.constant 0 : i32
    return %c0_i32, %c0_i32_0 : i32, i32
  }
  func.func @transform_3(%arg0: i32) -> (i32, i32) {
    %c0_i32 = arith.constant 0 : i32
    %c0_i32_0 = arith.constant 0 : i32
    %c0_i32_1 = arith.constant 0 : i32
    return %c0_i32, %c0_i32_0 : i32, i32
  }
  func.func @transform_4(%arg0: i32) -> (i32, i32) {
    %c0_i32 = arith.constant 0 : i32
    %c0_i32_0 = arith.constant 0 : i32
    %c0_i32_1 = arith.constant 0 : i32
    return %c0_i32, %c0_i32_0 : i32, i32
  }
  func.func @transform_5(%arg0: i32) -> (i32, i32) {
    %c0_i32 = arith.constant 0 : i32
    %c0_i32_0 = arith.constant 0 : i32
    %c0_i32_1 = arith.constant 0 : i32
    return %c0_i32, %c0_i32_0 : i32, i32
  }
  func.func @transform_6(%arg0: i32) -> (i32, i32, i32) {
    %c0_i32 = arith.constant 0 : i32
    %c0_i32_0 = arith.constant 0 : i32
    %c0_i32_1 = arith.constant 0 : i32
    %c0_i32_2 = arith.constant 0 : i32
    return %c0_i32, %c0_i32_0, %c0_i32_1 : i32, i32, i32
  }
  func.func @transform_7(%arg0: i32) -> (i32, i32) {
    %c0_i32 = arith.constant 0 : i32
    %c0_i32_0 = arith.constant 0 : i32
    %c0_i32_1 = arith.constant 0 : i32
    return %c0_i32, %c0_i32_0 : i32, i32
  }
  func.func @transform_8(%arg0: i32) -> (i32, i32) {
    %c0_i32 = arith.constant 0 : i32
    %c0_i32_0 = arith.constant 0 : i32
    %c0_i32_1 = arith.constant 0 : i32
    return %c0_i32, %c0_i32_0 : i32, i32
  }
  func.func @transform_9(%arg0: i32) -> (i32, i32) {
    %c0_i32 = arith.constant 0 : i32
    %c0_i32_0 = arith.constant 0 : i32
    %c0_i32_1 = arith.constant 0 : i32
    return %c0_i32, %c0_i32_0 : i32, i32
  }
  func.func @transform_10(%arg0: i32) -> (i32, i32) {
    %c0_i32 = arith.constant 0 : i32
    %c0_i32_0 = arith.constant 0 : i32
    %c0_i32_1 = arith.constant 0 : i32
    return %c0_i32, %c0_i32_0 : i32, i32
  }
  func.func @transform_11(%arg0: i32) -> (i32, i32) {
    %c0_i32 = arith.constant 0 : i32
    %c0_i32_0 = arith.constant 0 : i32
    %c0_i32_1 = arith.constant 0 : i32
    return %c0_i32, %c0_i32_0 : i32, i32
  }
  func.func @transform_12(%arg0: i32) -> (i32, i32) {
    %c0_i32 = arith.constant 0 : i32
    %c0_i32_0 = arith.constant 0 : i32
    %c0_i32_1 = arith.constant 0 : i32
    return %c0_i32, %c0_i32_0 : i32, i32
  }
  func.func @transform_13(%arg0: i32) -> (i32, i32) {
    %c0_i32 = arith.constant 0 : i32
    %c0_i32_0 = arith.constant 0 : i32
    %c0_i32_1 = arith.constant 0 : i32
    return %c0_i32, %c0_i32_0 : i32, i32
  }
  func.func @transform_14(%arg0: i32) -> (i32, i32) {
    %c0_i32 = arith.constant 0 : i32
    %c0_i32_0 = arith.constant 0 : i32
    %c0_i32_1 = arith.constant 0 : i32
    return %c0_i32, %c0_i32_0 : i32, i32
  }
  func.func @transform_15(%arg0: i32) -> (i32, i32) {
    %c0_i32 = arith.constant 0 : i32
    %c0_i32_0 = arith.constant 0 : i32
    %c0_i32_1 = arith.constant 0 : i32
    return %c0_i32, %c0_i32_0 : i32, i32
  }
  func.func @transform_16(%arg0: i32) -> (i32, i32) {
    %c0_i32 = arith.constant 0 : i32
    %c0_i32_0 = arith.constant 0 : i32
    %c0_i32_1 = arith.constant 0 : i32
    return %c0_i32, %c0_i32_0 : i32, i32
  }
  func.func @transform_17(%arg0: i32) -> (i32, i32) {
    %c0_i32 = arith.constant 0 : i32
    %c0_i32_0 = arith.constant 0 : i32
    return %arg0, %c0_i32 : i32, i32
  }
}

</mosaic_0001>

<bundles_post_ra>
// kernel: fedcon_prompt_forward.1
= control target key start
LH: loop header
LB: loop body
LE: loop exit
PB: predicated region body
PF: predicated region fallthrough
CT: control target
= control target key end

     0   :  { %s6749_s24 = smov 0   ;;  %s9321_s0 = inlined_call_operand.vmem [shape: f32[16,8,1024], index: 0, kind: input, shape index: {}]   ;;  %s9322_s1 = inlined_call_operand.vmem [shape: f32[8,200], index: 1, kind: input, shape index: {}]   ;;  %s9323_s2 = inlined_call_operand.vmem [shape: f32[8,1], index: 2, kind: input, shape index: {}]   ;;  %s9324_s3 = inlined_call_operand.vmem [shape: f32[16,200], index: 3, kind: input, shape index: {}]   ;;  %s9325_s4 = inlined_call_operand.vmem [shape: f32[16,1], index: 4, kind: input, shape index: {}]   ;;  %s9326_s5 = inlined_call_operand.vmem [shape: f32[529,32], index: 5, kind: input, shape index: {}]   ;;  %s9327_s6 = inlined_call_operand.vmem [shape: f32[16,32,128], index: 6, kind: input, shape index: {}]   ;;  %s9328_s7 = inlined_call_operand.vmem [shape: f32[1,128], index: 7, kind: input, shape index: {}]   ;;  %s9329_s8 = inlined_call_operand.vmem [shape: f32[128,128], index: 8, kind: input, shape index: {}]   ;;  %s9330_s9 = inlined_call_operand.vmem [shape: f32[1,128], index: 9, kind: input, shape index: {}]   ;;  %s9331_s10 = inlined_call_operand.vmem [shape: f32[1,128], index: 10, kind: input, shape index: {}]   ;;  %s9332_s11 = inlined_call_operand.vmem [shape: f32[128,128], index: 11, kind: input, shape index: {}]   ;;  %s9333_s12 = inlined_call_operand.vmem [shape: f32[1,128], index: 12, kind: input, shape index: {}]   ;;  %s9334_s13 = inlined_call_operand.vmem [shape: f32[128,128], index: 13, kind: input, shape index: {}]   ;;  %s9335_s14 = inlined_call_operand.vmem [shape: f32[1,128], index: 14, kind: input, shape index: {}]   ;;  %s9336_s15 = inlined_call_operand.vmem [shape: f32[128,128], index: 15, kind: input, shape index: {}]   ;;  %s9337_s16 = inlined_call_operand.vmem [shape: f32[1,128], index: 16, kind: input, shape index: {}]   ;;  %s9338_s17 = inlined_call_operand.vmem [shape: f32[16,384], index: 17, kind: output, shape index: {}]  }
   0x1   :  { %9385 = sst [smem:[#allocation61_spill]] %s9321_s0 }
   0x2   :  { %9386 = sst [smem:[#allocation62_spill]] %s9322_s1 }
   0x3   :  { %9387 = sst [smem:[#allocation63_spill]] %s9323_s2 }
   0x4   :  { %9388 = sst [smem:[#allocation64_spill]] %s9324_s3 }
   0x5   :  { %9389 = sst [smem:[#allocation65_spill]] %s9325_s4 }
   0x6 LB: > { %s5295_s25 = sadd.s32 4294967295, %s6624_s24   ;;  %p5299_p0 = scmp.ge.s32.totalorder %s6624_s24, 1  ;;  %s6624_s24 = sphi %s6749_s24, %s27_s24  }
   0x7   : > { %p489_p1 = scmp.lt.s32.totalorder %s6624_s24, 3 }
   0x9   : > { %p490_p2 = pnand %p5299_p0, %p489_p1 }
   0xb   : > { %493 = sbr.rel (%p490_p2) target bundleno = 3023 (0xbcf), region = 88 }
  0x12   : > { %s5300_s26 = sshll.u32 %s5295_s25, 3  ;;  %p549_p3 = scmp.lt.s32.totalorder %s5295_s25, 1  ;;  %v6805_v9 = vld [vmem:[%s9326_s5] sm:$0xff]  ;;  %v6810_v10 = vld [vmem:[%s9326_s5 + $0x8] sm:$0xff]  ;;  %v6815_v11 = vld [vmem:[%s9326_s5 + $0x10] sm:$0xff] }
  0x13   : > { %s9390_s29 = sld [smem:[#allocation62_spill]]  ;;  %s9391_s3 = sld [smem:[#allocation64_spill]]  ;;  %v6820_v12 = vld [vmem:[%s9326_s5 + $0x18] sm:$0xff]  ;;  %v6825_v13 = vld [vmem:[%s9326_s5 + $0x20] sm:$0xff]  ;;  %v6830_v14 = vld [vmem:[%s9326_s5 + $0x28] sm:$0xff] }
  0x14   : > { %p543_p4 = scmp.lt.s32.totalorder %s5300_s26, 15  ;;  %s9563_s25 = smov (!%p549_p3, %s5295_s25), 1  ;;  %9394 = vst [vmem:[#allocation5_spill] sm:$0xff] %v6830_v14  ;;  %v6835_v15 = vld [vmem:[%s9326_s5 + $0x30] sm:$0xff]  ;;  %v6840_v16 = vld [vmem:[%s9326_s5 + $0x38] sm:$0xff]  ;;  %v6845_v17 = vld [vmem:[%s9326_s5 + $0x40] sm:$0xff] }
  0x15   : > { %s9392_s2 = sld [smem:[#allocation63_spill]]  ;;  %s9393_s4 = sld [smem:[#allocation65_spill]]  ;;  %9395 = vst [vmem:[#allocation6_spill] sm:$0xff] %v6835_v15  ;;  %9396 = vst [vmem:[#allocation7_spill] sm:$0xff] %v6840_v16  ;;  %v6860_v18 = vld [vmem:[%s9326_s5 + $0x48] sm:$0xff]  ;;  %v6865_v19 = vld [vmem:[%s9326_s5 + $0x50] sm:$0xff] }
  0x16   : > { %s9565_s26 = smov (!%p543_p4, %s5300_s26), 15  ;;  %s6531_s0 = smul.u32 24, %s9563_s25  ;;  %9397 = vst [vmem:[#allocation8_spill] sm:$0xff] %v6845_v17  ;;  %9399 = vst [vmem:[#allocation9_spill] sm:$0xff] %v6860_v18  ;;  %v6870_v20 = vld [vmem:[%s9326_s5 + $0x58] sm:$0xff]  ;;  %v6875_v21 = vld [vmem:[%s9326_s5 + $0x60] sm:$0xff] }
  0x17   : > { %s5403_s22 = sshll.u32 %s9565_s26, 6  ;;  %s9398_s20 = sld [smem:[#allocation61_spill]]  ;;  %9400 = vst [vmem:[#allocation10_spill] sm:$0xff] %v6865_v19  ;;  %9401 = vst [vmem:[#allocation11_spill] sm:$0xff] %v6870_v20  ;;  %v6880_v22 = vld [vmem:[%s9326_s5 + $0x68] sm:$0xff]  ;;  %v6885_v23 = vld [vmem:[%s9326_s5 + $0x70] sm:$0xff] }
  0x18   : > { %s6855_s23 = scalar_lea.vmem %s9338_s17, %s6531_s0  ;;  %9402 = vst [vmem:[#allocation12_spill] sm:$0xff] %v6875_v21  ;;  %9403 = vst [vmem:[#allocation13_spill] sm:$0xff] %v6880_v22  ;;  %v6890_v24 = vld [vmem:[%s9326_s5 + $0x78] sm:$0xff]  ;;  %v6895_v25 = vld [vmem:[%s9326_s5 + $0x80] sm:$0xff] }
  0x19   : > { %v6760_v0 = vld [vmem:[%s9390_s29] sm:$0xff]  ;;  %v6765_v1 = vld [vmem:[%s9390_s29 + $0x8] sm:$0xff]  ;;  %v6780_v4 = vld [vmem:[%s9391_s3 + $0x10] sm:$0xff]  ;;  %9404 = vst [vmem:[#allocation14_spill] sm:$0xff] %v6885_v23 }
  0x1a   : > { %v6770_v2 = vld [vmem:[%s9391_s3] sm:$0xff]  ;;  %v6775_v3 = vld [vmem:[%s9391_s3 + $0x8] sm:$0xff]  ;;  %v6785_v5 = vld [vmem:[%s9391_s3 + $0x18] sm:$0xff]  ;;  %9405 = vst [vmem:[#allocation15_spill] sm:$0xff] %v6890_v24 }
  0x1b   : > { %v6790_v6 = vld [vmem:[%s9392_s2] sm:$0xff]  ;;  %v6800_v8 = vld [vmem:[%s9393_s4 + $0x8] sm:$0xff]  ;;  %v6905_v27 = vld [vmem:[%s9326_s5 + $0x90] sm:$0xff] }
  0x1c   : > { %v6795_v7 = vld [vmem:[%s9393_s4] sm:$0xff]  ;;  %v6900_v26 = vld [vmem:[%s9326_s5 + $0x88] sm:$0xff]  ;;  %v6910_v28 = vld [vmem:[%s9326_s5 + $0x98] sm:$0xff] }
  0x1d   : > { %s6850_s21 = scalar_lea.vmem %s9398_s20, %s5403_s22  ;;  %v6915_v29 = vld [vmem:[%s9326_s5 + $0xa0] sm:$0xff]  ;;  %v6920_v30 = vld [vmem:[%s9326_s5 + $0xa8] sm:$0xff]  ;;  %v6925_v31 = vld [vmem:[%s9326_s5 + $0xb0] sm:$0xff]  ;;  %s7147_s20 = smov 0  }
  0x1e   : > { %9406 = vst [vmem:[#allocation16_spill] sm:$0xff] %v6925_v31  ;;  %v6930_v32 = vld [vmem:[%s9326_s5 + $0xb8] sm:$0xff]  ;;  %v6935_v33 = vld [vmem:[%s9326_s5 + $0xc0] sm:$0xff]  ;;  %v6940_v34 = vld [vmem:[%s9326_s5 + $0xc8] sm:$0xff] }
  0x1f   : > { %9407 = vst [vmem:[#allocation17_spill] sm:$0xff] %v6930_v32  ;;  %9408 = vst [vmem:[#allocation18_spill] sm:$0xff] %v6935_v33  ;;  %v6945_v35 = vld [vmem:[%s9326_s5 + $0xd0] sm:$0xff]  ;;  %v6950_v36 = vld [vmem:[%s9326_s5 + $0xd8] sm:$0xff] }
  0x20   : > { %9409 = vst [vmem:[#allocation19_spill] sm:$0xff] %v6940_v34  ;;  %9410 = vst [vmem:[#allocation20_spill] sm:$0xff] %v6945_v35  ;;  %v6955_v37 = vld [vmem:[%s9326_s5 + $0xe0] sm:$0xff]  ;;  %v6960_v38 = vld [vmem:[%s9326_s5 + $0xe8] sm:$0xff] }
  0x21   : > { %9411 = vst [vmem:[#allocation21_spill] sm:$0xff] %v6950_v36  ;;  %9412 = vst [vmem:[#allocation22_spill] sm:$0xff] %v6955_v37  ;;  %v6965_v39 = vld [vmem:[%s9326_s5 + $0xf0] sm:$0xff]  ;;  %v6970_v40 = vld [vmem:[%s9326_s5 + $0xf8] sm:$0xff] }
  0x22   : > { %9413 = vst [vmem:[#allocation23_spill] sm:$0xff] %v6960_v38  ;;  %9414 = vst [vmem:[#allocation24_spill] sm:$0xff] %v6965_v39  ;;  %v6975_v41 = vld [vmem:[%s9326_s5 + $0x100] sm:$0xff]  ;;  %v6980_v42 = vld [vmem:[%s9326_s5 + $0x108] sm:$0xff] }
  0x23   : > { %9415 = vst [vmem:[#allocation25_spill] sm:$0xff] %v6970_v40  ;;  %9416 = vst [vmem:[#allocation26_spill] sm:$0xff] %v6975_v41  ;;  %v6985_v43 = vld [vmem:[%s9326_s5 + $0x110] sm:$0xff]  ;;  %v6990_v44 = vld [vmem:[%s9326_s5 + $0x118] sm:$0xff] }
  0x24   : > { %9417 = vst [vmem:[#allocation27_spill] sm:$0xff] %v6980_v42  ;;  %9418 = vst [vmem:[#allocation28_spill] sm:$0xff] %v6985_v43  ;;  %v6995_v45 = vld [vmem:[%s9326_s5 + $0x120] sm:$0xff]  ;;  %v7000_v46 = vld [vmem:[%s9326_s5 + $0x128] sm:$0xff] }
  0x25   : > { %9419 = vst [vmem:[#allocation29_spill] sm:$0xff] %v6990_v44  ;;  %9420 = vst [vmem:[#allocation30_spill] sm:$0xff] %v6995_v45  ;;  %v7005_v47 = vld [vmem:[%s9326_s5 + $0x130] sm:$0xff]  ;;  %v7010_v48 = vld [vmem:[%s9326_s5 + $0x138] sm:$0xff] }
  0x26   : > { %9421 = vst [vmem:[#allocation31_spill] sm:$0xff] %v7000_v46  ;;  %9422 = vst [vmem:[#allocation32_spill] sm:$0xff] %v7005_v47  ;;  %v7015_v49 = vld [vmem:[%s9326_s5 + $0x140] sm:$0xff]  ;;  %v7020_v50 = vld [vmem:[%s9326_s5 + $0x148] sm:$0xff] }
  0x27   : > { %9423 = vst [vmem:[#allocation33_spill] sm:$0xff] %v7010_v48  ;;  %9424 = vst [vmem:[#allocation34_spill] sm:$0xff] %v7015_v49  ;;  %v7025_v51 = vld [vmem:[%s9326_s5 + $0x150] sm:$0xff]  ;;  %v7030_v52 = vld [vmem:[%s9326_s5 + $0x158] sm:$0xff] }
  0x28   : > { %9425 = vst [vmem:[#allocation35_spill] sm:$0xff] %v7020_v50  ;;  %9426 = vst [vmem:[#allocation36_spill] sm:$0xff] %v7025_v51  ;;  %v7035_v53 = vld [vmem:[%s9326_s5 + $0x160] sm:$0xff]  ;;  %v7040_v54 = vld [vmem:[%s9326_s5 + $0x168] sm:$0xff] }
  0x29   : > { %9427 = vst [vmem:[#allocation37_spill] sm:$0xff] %v7030_v52  ;;  %9428 = vst [vmem:[#allocation38_spill] sm:$0xff] %v7035_v53  ;;  %v7045_v55 = vld [vmem:[%s9326_s5 + $0x170] sm:$0xff]  ;;  %v7050_v56 = vld [vmem:[%s9326_s5 + $0x178] sm:$0xff] }
  0x2a   : > { %9429 = vst [vmem:[#allocation39_spill] sm:$0xff] %v7040_v54  ;;  %9430 = vst [vmem:[#allocation40_spill] sm:$0xff] %v7045_v55  ;;  %v7055_v57 = vld [vmem:[%s9326_s5 + $0x180] sm:$0xff]  ;;  %v7060_v58 = vld [vmem:[%s9326_s5 + $0x188] sm:$0xff] }
  0x2b   : > { %9431 = vst [vmem:[#allocation41_spill] sm:$0xff] %v7050_v56  ;;  %9432 = vst [vmem:[#allocation42_spill] sm:$0xff] %v7055_v57  ;;  %v7065_v59 = vld [vmem:[%s9326_s5 + $0x190] sm:$0xff]  ;;  %v7070_v60 = vld [vmem:[%s9326_s5 + $0x198] sm:$0xff] }
  0x2c   : > { %9433 = vst [vmem:[#allocation43_spill] sm:$0xff] %v7060_v58  ;;  %9434 = vst [vmem:[#allocation44_spill] sm:$0xff] %v7065_v59  ;;  %v7075_v61 = vld [vmem:[%s9326_s5 + $0x1a0] sm:$0xff]  ;;  %v7080_v62 = vld [vmem:[%s9326_s5 + $0x1a8] sm:$0xff] }
  0x2d   : > { %9435 = vst [vmem:[#allocation45_spill] sm:$0xff] %v7070_v60  ;;  %9436 = vst [vmem:[#allocation46_spill] sm:$0xff] %v7075_v61  ;;  %v7085_v63 = vld [vmem:[%s9326_s5 + $0x1b0] sm:$0xff]  ;;  %v7090_v56 = vld [vmem:[%s9326_s5 + $0x1b8] sm:$0xff] }
  0x2e   : > { %9437 = vst [vmem:[#allocation47_spill] sm:$0xff] %v7080_v62  ;;  %9438 = vst [vmem:[#allocation48_spill] sm:$0xff] %v7085_v63  ;;  %v7095_v55 = vld [vmem:[%s9326_s5 + $0x1c0] sm:$0xff]  ;;  %v7100_v54 = vld [vmem:[%s9326_s5 + $0x1c8] sm:$0xff] }
  0x2f   : > { %9439 = vst [vmem:[#allocation49_spill] sm:$0xff] %v7090_v56  ;;  %9440 = vst [vmem:[#allocation50_spill] sm:$0xff] %v7095_v55  ;;  %v7105_v53 = vld [vmem:[%s9326_s5 + $0x1d0] sm:$0xff]  ;;  %v7110_v52 = vld [vmem:[%s9326_s5 + $0x1d8] sm:$0xff] }
  0x30   : > { %9441 = vst [vmem:[#allocation51_spill] sm:$0xff] %v7100_v54  ;;  %9442 = vst [vmem:[#allocation52_spill] sm:$0xff] %v7105_v53  ;;  %v7115_v51 = vld [vmem:[%s9326_s5 + $0x1e0] sm:$0xff]  ;;  %v7120_v50 = vld [vmem:[%s9326_s5 + $0x1e8] sm:$0xff] }
  0x31   : > { %9443 = vst [vmem:[#allocation53_spill] sm:$0xff] %v7110_v52  ;;  %9444 = vst [vmem:[#allocation54_spill] sm:$0xff] %v7115_v51  ;;  %v7125_v49 = vld [vmem:[%s9326_s5 + $0x1f0] sm:$0xff]  ;;  %v7130_v53 = vld [vmem:[%s9326_s5 + $0x1f8] sm:$0xff] }
  0x32   : > { %9445 = vst [vmem:[#allocation55_spill] sm:$0xff] %v7120_v50  ;;  %9446 = vst [vmem:[#allocation56_spill] sm:$0xff] %v7125_v49  ;;  %v7135_v52 = vld [vmem:[%s9326_s5 + $0x200] sm:$0xff]  ;;  %v7140_v51 = vld [vmem:[%s9326_s5 + $0x208] sm:$0xff] }
  0x33   : > { %9447 = vst [vmem:[#allocation57_spill] sm:$0xff] %v7130_v53  ;;  %9448 = vst [vmem:[#allocation58_spill] sm:$0xff] %v7135_v52  ;;  %v7145_v50 = vld [vmem:[%s9326_s5 + $0x210] sm:$0x1] }
  0x34   : > { %9449 = vst [vmem:[#allocation59_spill] sm:$0xff] %v7140_v51  ;;  %9450 = vst [vmem:[#allocation60_spill] sm:$0xff] %v7145_v50 }
  0x35 LB: >> { %s5404_s26 = sshll.u32 %s6628_s20, 6  ;;  %s9340_s25 = smov 127   ;;  %vm653_vm0 = vcmask 1014784   ;;  %vm9383_vm1 = vcmask 1039360   ;;  %vm9382_vm2 = vcmask 1031168   ;;  %vm9381_vm3 = vcmask 1022976   ;;  %s6628_s20 = sphi %s7147_s20, %s635_s20  }
  0x36   : >> { %s7154_s27 = scalar_lea.vmem %s6850_s21, %s5404_s26  ;;  %s9346_s28 = smov 126   ;;  %vm818_vm4 = vcmask 785408   ;;  %vm9371_vm5 = vcmask 777216   ;;  %vm9374_vm6 = vcmask 769024   ;;  %vm9377_vm7 = vcmask 760832  }
  0x37   : >> { %v7157_v53 = vld [vmem:[%s7154_s27 + $0x8] sm:$0xff]  ;;  %v7160_v49 = vld [vmem:[%s7154_s27] sm:$0xff]  ;;  %v7163_v54 = vld [vmem:[%s7154_s27 + $0x10] sm:$0xff]  ;;  %s9344_s30 = smov 125   ;;  %s9365_s18 = smov 124   ;;  %vm9380_vm8 = vcmask 752640  }
  0x38   : >> { %664 = vrot.lane.b32.xlu0 %v7157_v53, %s9340_s25  ;;  %1372 = vst [vmem:[#allocation2 + $0x460] sm:$0xff] %v7157_v53  ;;  %662 = vrot.lane.b32.xlu1 %v7160_v49, %s9340_s25  ;;  %1373 = vst [vmem:[#allocation2 + $0x468] sm:$0xff] %v7163_v54  ;;  %v7172_v55 = vld [vmem:[%s7154_s27 + $0x18] sm:$0xff]  ;;  %v7175_v48 = vld [vmem:[%s7154_s27 + $0x20] sm:$0xff]  ;;  %s9348_s22 = smov 96   ;;  %s6635_s19 = smov 95  }
  0x39   : >> { %1374 = vst [vmem:[#allocation2 + $0x470] sm:$0xff] %v7172_v55  ;;  %651 = vst [vmem:[#allocation2 + $0x20] sm:$0xff] %v7175_v48  ;;  %s9351_s2 = smov 94   ;;  %s9353_s0 = smov 93   ;;  %v7221_v47 = vld [vmem:[%s7154_s27 + $0x28] sm:$0xff]  ;;  %v7229_v56 = vld [vmem:[%s7154_s27 + $0x30] sm:$0xff] }
  0x3a   : >> { %1375 = vst [vmem:[#allocation2 + $0x478] sm:$0xff] %v7175_v48  ;;  %s9355_s3 = smov 92   ;;  %1376 = vst [vmem:[#allocation2 + $0x480] sm:$0xff] %v7221_v47  ;;  %s9372_s1 = smov 64   ;;  %v7299_v63 = vld [vmem:[%s7154_s27 + $0x38] sm:$0xff]  ;;  %vm1607_vm9 = vcmask 588800  }
  0x3b   : >> { %654 = vst.msk [vmem:[#allocation2 + $0x30] sm:$0xff] %vm653_vm0, %v7229_v56  ;;  %1377 = vst [vmem:[#allocation2 + $0x488] sm:$0xff] %v7229_v56  ;;  %s9342_s26 = smov 63   ;;  %s9369_s27 = smov 30   ;;  %5306 = vmatprep.mubr.msk.f32.mxu0 %vm1607_vm9, %v6765_v1  ;;  %5307 = vmatprep.mubr.msk.f32.mxu1 %vm1607_vm9, %v6765_v1  ;;  %vm1008_vm10 = vcmask 523264   ;;  %vm1046_vm11 = vcmask 515072  }
  0x3c   : >> { %666 = vrot.lane.b32.xlu0 %v7163_v54, %s9340_s25  ;;  %699 = vrot.lane.b32.xlu1 %v7157_v53, %s9346_s28  ;;  %1378 = vst.msk [vmem:[#allocation2 + $0x490] sm:$0xff] %vm653_vm0, %v7299_v63  ;;  %vm1084_vm12 = vcmask 506880   ;;  %vm1122_vm13 = vcmask 498688   ;;  %vm1160_vm14 = vcmask 490496   ;;  %vm1198_vm15 = vcmask 261120   ;;  %s9466_s4 = smov 62  }
  0x3f   : >> { %v1567_v14 = vld [vmem:[#allocation2 + $0x460] sm:$0xff] }
  0x40   : >> { %701 = vrot.lane.b32.xlu0 %v7163_v54, %s9346_s28  ;;  %734 = vrot.lane.b32.xlu1 %v7157_v53, %s9344_s30 }
  0x44   : >> { %736 = vrot.lane.b32.xlu0 %v7163_v54, %s9344_s30  ;;  %697 = vrot.lane.b32.xlu1 %v7160_v49, %s9346_s28 }
  0x48   : >> { %732 = vrot.lane.b32.xlu0 %v7160_v49, %s9344_s30  ;;  %769 = vrot.lane.b32.xlu1 %v7157_v53, %s9365_s18 }
  0x4c   : >> { %771 = vrot.lane.b32.xlu0 %v7163_v54, %s9365_s18  ;;  %804 = vrot.lane.b32.xlu1 %v7157_v53, %s9348_s22 }
  0x50   : >> { %806 = vrot.lane.b32.xlu0 %v7163_v54, %s9348_s22  ;;  %767 = vrot.lane.b32.xlu1 %v7160_v49, %s9365_s18 }
  0x54   : >> { %802 = vrot.lane.b32.xlu0 %v7160_v49, %s9348_s22  ;;  %842 = vrot.lane.b32.xlu1 %v7157_v53, %s6635_s19 }
  0x58   : >> { %844 = vrot.lane.b32.xlu0 %v7163_v54, %s6635_s19  ;;  %880 = vrot.lane.b32.xlu1 %v7157_v53, %s9351_s2 }
  0x5c   : >> { %882 = vrot.lane.b32.xlu0 %v7163_v54, %s9351_s2  ;;  %840 = vrot.lane.b32.xlu1 %v7160_v49, %s6635_s19 }
  0x60   : >> { %878 = vrot.lane.b32.xlu0 %v7160_v49, %s9351_s2  ;;  %918 = vrot.lane.b32.xlu1 %v7157_v53, %s9353_s0 }
  0x64   : >> { %920 = vrot.lane.b32.xlu0 %v7163_v54, %s9353_s0  ;;  %956 = vrot.lane.b32.xlu1 %v7157_v53, %s9355_s3 }
  0x68   : >> { %958 = vrot.lane.b32.xlu0 %v7163_v54, %s9355_s3  ;;  %916 = vrot.lane.b32.xlu1 %v7160_v49, %s9353_s0 }
  0x6c   : >> { %954 = vrot.lane.b32.xlu0 %v7160_v49, %s9355_s3  ;;  %668 = vrot.lane.b32.xlu1 %v7172_v55, %s9340_s25 }
  0x70   : >> { %670 = vrot.lane.b32.xlu0 %v7175_v48, %s9340_s25  ;;  %994 = vrot.lane.b32.xlu1 %v7157_v53, %s9372_s1  ;;  %s9375_s25 = smov 62  }
  0x74   : >> { %996 = vrot.lane.b32.xlu0 %v7163_v54, %s9372_s1  ;;  %1032 = vrot.lane.b32.xlu1 %v7157_v53, %s9342_s26 }
  0x78   : >> { %1034 = vrot.lane.b32.xlu0 %v7163_v54, %s9342_s26  ;;  %992 = vrot.lane.b32.xlu1 %v7160_v49, %s9372_s1 }
  0x7c   : >> { %1030 = vrot.lane.b32.xlu0 %v7160_v49, %s9342_s26  ;;  %703 = vrot.lane.b32.xlu1 %v7172_v55, %s9346_s28  ;;  %s9357_s26 = smov 61  }
  0x80   : >> { %705 = vrot.lane.b32.xlu0 %v7175_v48, %s9346_s28  ;;  %738 = vrot.lane.b32.xlu1 %v7172_v55, %s9344_s30  ;;  %s9359_s28 = smov 32  }
  0x84   : >> { %740 = vrot.lane.b32.xlu0 %v7175_v48, %s9344_s30  ;;  %1070 = vrot.lane.b32.xlu1 %v7157_v53, %s9375_s25  ;;  %s9378_s30 = smov 60  }
  0x88   : >> { %1072 = vrot.lane.b32.xlu0 %v7163_v54, %s9375_s25  ;;  %1108 = vrot.lane.b32.xlu1 %v7157_v53, %s9357_s26 }
  0x8c   : >> { %1110 = vrot.lane.b32.xlu0 %v7163_v54, %s9357_s26  ;;  %1068 = vrot.lane.b32.xlu1 %v7160_v49, %s9375_s25 }
  0x90   : >> { %1106 = vrot.lane.b32.xlu0 %v7160_v49, %s9357_s26  ;;  %773 = vrot.lane.b32.xlu1 %v7172_v55, %s9365_s18 }
  0x94   : >> { %775 = vrot.lane.b32.xlu0 %v7175_v48, %s9365_s18  ;;  %808 = vrot.lane.b32.xlu1 %v7172_v55, %s9348_s22 }
  0x98   : >> { %810 = vrot.lane.b32.xlu0 %v7175_v48, %s9348_s22  ;;  %1146 = vrot.lane.b32.xlu1 %v7157_v53, %s9378_s30  ;;  %s9361_s22 = smov 31  }
  0x9c   : >> { %1148 = vrot.lane.b32.xlu0 %v7163_v54, %s9378_s30  ;;  %1184 = vrot.lane.b32.xlu1 %v7157_v53, %s9359_s28 }
  0xa0   : >> { %1186 = vrot.lane.b32.xlu0 %v7163_v54, %s9359_s28  ;;  %1144 = vrot.lane.b32.xlu1 %v7160_v49, %s9378_s30 }
  0xa4   : >> { %1182 = vrot.lane.b32.xlu0 %v7160_v49, %s9359_s28  ;;  %846 = vrot.lane.b32.xlu1 %v7172_v55, %s6635_s19 }
  0xa8   : >> { %848 = vrot.lane.b32.xlu0 %v7175_v48, %s6635_s19  ;;  %884 = vrot.lane.b32.xlu1 %v7172_v55, %s9351_s2 }
  0xaa   : >> { %v665_v46 = vpop.permute.xlu0 %664  ;;  %v663_v45 = vpop.permute.xlu1 %662 }
  0xab   : >> { %v677_v62 = vsel %vm9383_vm1, %v663_v45, %v665_v46 }
  0xac   : >> { %886 = vrot.lane.b32.xlu0 %v7175_v48, %s9351_s2  ;;  %1222 = vrot.lane.b32.xlu1 %v7157_v53, %s9361_s22  ;;  %v5961_v60 = vpack.c.bf16 %v677_v62, %v7160_v49  ;;  %s9363_s2 = smov 29  }
  0xae   : >> { %v7312_v61 = vpop.permute.xlu0 %666  ;;  %v700_v44 = vpop.permute.xlu1 %699 }
  0xaf   : >> { %v7316_v43 = vsel %vm9383_vm1, %v665_v46, %v7312_v61 }
  0xb0   : >> { %1224 = vrot.lane.b32.xlu0 %v7163_v54, %s9361_s22  ;;  %1260 = vrot.lane.b32.xlu1 %v7157_v53, %s9369_s27  ;;  %v5959_v45 = vpack.c.bf16 %v7316_v43, %v7157_v53 }
  0xb2   : >> { %v7325_v59 = vpop.permute.xlu0 %701  ;;  %v735_v42 = vpop.permute.xlu1 %734  ;;  %5960 = vmatprep.subr.bf16.mxu0 %v5959_v45 }
  0xb3   : >> { %v713_v46 = vsel %vm9382_vm2, %v700_v44, %v7325_v59  ;;  %5962 = vmatpush1.bf16.msra.mxu0 %v5961_v60 }
  0xb4   : >> { %1262 = vrot.lane.b32.xlu0 %v7163_v54, %s9369_s27  ;;  %1220 = vrot.lane.b32.xlu1 %v7160_v49, %s9361_s22 }
  0xb6   : >> { %v7333_v41 = vpop.permute.xlu0 %736  ;;  %v698_v50 = vpop.permute.xlu1 %697 }
  0xb7   : >> { %v748_v62 = vsel %vm9381_vm3, %v735_v42, %v7333_v41  ;;  %v712_v51 = vsel %vm9382_vm2, %v698_v50, %v700_v44 }
  0xb8   : >> { %1258 = vrot.lane.b32.xlu0 %v7160_v49, %s9369_s27  ;;  %922 = vrot.lane.b32.xlu1 %v7172_v55, %s9353_s0  ;;  %v7342_v60 = vpack.c.bf16 %v748_v62, %v713_v46 }
  0xba   : >> { %v733_v45 = vpop.permute.xlu0 %732  ;;  %v770_v52 = vpop.permute.xlu1 %769  ;;  %5964 = vmatprep.subr.bf16.mxu0 %v7342_v60 }
  0xbb   : >> { %v747_v58 = vsel %vm9381_vm3, %v733_v45, %v735_v42 }
  0xbc   : >> { %924 = vrot.lane.b32.xlu0 %v7175_v48, %s9353_s0  ;;  %960 = vrot.lane.b32.xlu1 %v7172_v55, %s9355_s3  ;;  %v5965_v44 = vpack.c.bf16 %v747_v58, %v712_v51  ;;  %s9367_s0 = smov 28  }
  0xbe   : >> { %v7350_v50 = vpop.permute.xlu0 %771  ;;  %v805_v57 = vpop.permute.xlu1 %804  ;;  %5966 = vmatpush1.bf16.msra.mxu0 %v5965_v44 }
  0xbf   : >> { %v7354_v46 = vsel %vm653_vm0, %v770_v52, %v7350_v50 }
  0xc0   : >> { %962 = vrot.lane.b32.xlu0 %v7175_v48, %s9355_s3  ;;  %1298 = vrot.lane.b32.xlu1 %v7157_v53, %s9363_s2  ;;  %s9451_s3 = smov 63  }
  0xc2   : >> { %v7360_v42 = vpop.permute.xlu0 %806  ;;  %v768_v62 = vpop.permute.xlu1 %767 }
  0xc3   : >> { %v820_v51 = vsel %vm818_vm4, %v805_v57, %v7360_v42  ;;  %v781_v58 = vsel %vm653_vm0, %v768_v62, %v770_v52 }
  0xc4   : >> { %1300 = vrot.lane.b32.xlu0 %v7163_v54, %s9363_s2  ;;  %1336 = vrot.lane.b32.xlu1 %v7157_v53, %s9367_s0  ;;  %v5967_v45 = vpack.c.bf16 %v820_v51, %v7354_v46 }
  0xc6   : >> { %v803_v44 = vpop.permute.xlu0 %802  ;;  %v843_v24 = vpop.permute.xlu1 %842  ;;  %5968 = vmatprep.subr.bf16.mxu0 %v5967_v45 }
  0xc7   : >> { %v819_v23 = vsel %vm818_vm4, %v803_v44, %v805_v57 }
  0xc8   : >> { %1338 = vrot.lane.b32.xlu0 %v7163_v54, %s9367_s0  ;;  %1296 = vrot.lane.b32.xlu1 %v7160_v49, %s9363_s2  ;;  %v5969_v52 = vpack.c.bf16 %v819_v23, %v781_v58 }
  0xca   : >> { %v7375_v62 = vpop.permute.xlu0 %844  ;;  %v881_v40 = vpop.permute.xlu1 %880  ;;  %5970 = vmatpush1.bf16.msra.mxu0 %v5969_v52 }
  0xcb   : >> { %v858_v53 = vsel %vm9371_vm5, %v843_v24, %v7375_v62 }
  0xcc   : >> { %1334 = vrot.lane.b32.xlu0 %v7160_v49, %s9367_s0  ;;  %998 = vrot.lane.b32.xlu1 %v7172_v55, %s9372_s1 }
  0xce   : >> { %v7383_v57 = vpop.permute.xlu0 %882  ;;  %v841_v51 = vpop.permute.xlu1 %840 }
  0xcf   : >> { %v896_v23 = vsel %vm9374_vm6, %v881_v40, %v7383_v57  ;;  %v857_v58 = vsel %vm9371_vm5, %v841_v51, %v843_v24 }
  0xd0   : >> { %1000 = vrot.lane.b32.xlu0 %v7175_v48, %s9372_s1  ;;  %1036 = vrot.lane.b32.xlu1 %v7172_v55, %s9451_s3  ;;  %v5971_v45 = vpack.c.bf16 %v896_v23, %v858_v53 }
  0xd2   : >> { %v879_v49 = vpop.permute.xlu0 %878  ;;  %v919_v44 = vpop.permute.xlu1 %918  ;;  %5972 = vmatprep.subr.bf16.mxu0 %v5971_v45 }
  0xd3   : >> { %v895_v52 = vsel %vm9374_vm6, %v879_v49, %v881_v40 }
  0xd4   : >> { %1038 = vrot.lane.b32.xlu0 %v7175_v48, %s9451_s3  ;;  %1074 = vrot.lane.b32.xlu1 %v7172_v55, %s9375_s25  ;;  %v5973_v24 = vpack.c.bf16 %v895_v52, %v857_v58 }
  0xd6   : >> { %v7397_v51 = vpop.permute.xlu0 %920  ;;  %v957_v39 = vpop.permute.xlu1 %956  ;;  %5974 = vmatpush1.bf16.msra.mxu0 %v5973_v24 }
  0xd7   : >> { %v934_v53 = vsel %vm9377_vm7, %v919_v44, %v7397_v51 }
  0xd8   : >> { %1076 = vrot.lane.b32.xlu0 %v7175_v48, %s9375_s25  ;;  %1112 = vrot.lane.b32.xlu1 %v7172_v55, %s9357_s26 }
  0xda   : >> { %v7405_v40 = vpop.permute.xlu0 %958  ;;  %v917_v23 = vpop.permute.xlu1 %916 }
  0xdb   : >> { %v972_v58 = vsel %vm9380_vm8, %v957_v39, %v7405_v40  ;;  %v933_v45 = vsel %vm9377_vm7, %v917_v23, %v919_v44 }
  0xdc   : >> { %1114 = vrot.lane.b32.xlu0 %v7175_v48, %s9357_s26  ;;  %1150 = vrot.lane.b32.xlu1 %v7172_v55, %s9378_s30  ;;  %v5975_v49 = vpack.c.bf16 %v972_v58, %v934_v53  ;;  %s9452_s26 = smov 127  }
  0xde   : >> { %v955_v52 = vpop.permute.xlu0 %954  ;;  %v669_v24 = vpop.permute.xlu1 %668  ;;  %5976 = vmatprep.subr.bf16.mxu0 %v5975_v49 }
  0xdf   : >> { %v971_v22 = vsel %vm9380_vm8, %v955_v52, %v957_v39  ;;  %v7419_v21 = vsel %vm9383_vm1, %v7312_v61, %v669_v24 }
  0xe0   : >> { %1152 = vrot.lane.b32.xlu0 %v7175_v48, %s9378_s30  ;;  %1188 = vrot.lane.b32.xlu1 %v7172_v55, %s9359_s28  ;;  %v5977_v44 = vpack.c.bf16 %v971_v22, %v933_v45  ;;  %v6009_v22 = vpack.c.bf16 %v7419_v21, %v7163_v54 }
  0xe2   : >> { %v7427_v53 = vpop.permute.xlu0 %670  ;;  %v995_v23 = vpop.permute.xlu1 %994  ;;  %5978 = vmatpush1.bf16.msra.mxu0 %v5977_v44 }
  0xe3   : >> { %v7431_v39 = vsel %vm9383_vm1, %v669_v24, %v7427_v53 }
  0xe4   : >> { %1190 = vrot.lane.b32.xlu0 %v7175_v48, %s9359_s28  ;;  %672 = vrot.lane.b32.xlu1 %v7221_v47, %s9452_s26  ;;  %v6007_v61 = vpack.c.bf16 %v7431_v39, %v7172_v55  ;;  %s9453_s28 = smov 126  }
  0xe6   : >> { %v7441_v58 = vpop.permute.xlu0 %996  ;;  %v1033_v45 = vpop.permute.xlu1 %1032  ;;  %6008 = vmatprep.subr.bf16.mxu1 %v6007_v61 }
  0xe7   : >> { %v1010_v49 = vsel %vm1008_vm10, %v995_v23, %v7441_v58  ;;  %6010 = vmatpush1.bf16.msra.mxu1 %v6009_v22 }
  0xe8   : >> { %674 = vrot.lane.b32.xlu0 %v7229_v56, %s9452_s26  ;;  %1226 = vrot.lane.b32.xlu1 %v7172_v55, %s9361_s22 }
  0xea   : >> { %v7449_v52 = vpop.permute.xlu0 %1034  ;;  %v993_v24 = vpop.permute.xlu1 %992 }
  0xeb   : >> { %v1048_v54 = vsel %vm1046_vm11, %v1033_v45, %v7449_v52  ;;  %v1009_v44 = vsel %vm1008_vm10, %v993_v24, %v995_v23 }
  0xec   : >> { %1228 = vrot.lane.b32.xlu0 %v7175_v48, %s9361_s22  ;;  %1264 = vrot.lane.b32.xlu1 %v7172_v55, %s9369_s27  ;;  %v5979_v61 = vpack.c.bf16 %v1048_v54, %v1010_v49  ;;  %s9454_s22 = smov 125  }
  0xee   : >> { %v1031_v22 = vpop.permute.xlu0 %1030  ;;  %v704_v38 = vpop.permute.xlu1 %703  ;;  %5980 = vmatprep.subr.bf16.mxu0 %v5979_v61 }
  0xef   : >> { %v1047_v37 = vsel %vm1046_vm11, %v1031_v22, %v1033_v45  ;;  %v714_v20 = vsel %vm9382_vm2, %v7325_v59, %v704_v38 }
  0xf0   : >> { %1266 = vrot.lane.b32.xlu0 %v7175_v48, %s9369_s27  ;;  %707 = vrot.lane.b32.xlu1 %v7221_v47, %s9453_s28  ;;  %v5981_v23 = vpack.c.bf16 %v1047_v37, %v1009_v44  ;;  %s9458_s27 = smov 92  }
  0xf2   : >> { %v7465_v24 = vpop.permute.xlu0 %705  ;;  %v739_v19 = vpop.permute.xlu1 %738  ;;  %5982 = vmatpush1.bf16.msra.mxu0 %v5981_v23 }
  0xf3   : >> { %v715_v49 = vsel %vm9382_vm2, %v704_v38, %v7465_v24  ;;  %v749_v45 = vsel %vm9381_vm3, %v7333_v41, %v739_v19 }
  0xf4   : >> { %709 = vrot.lane.b32.xlu0 %v7229_v56, %s9453_s28  ;;  %742 = vrot.lane.b32.xlu1 %v7221_v47, %s9454_s22  ;;  %v7485_v41 = vpack.c.bf16 %v749_v45, %v714_v20 }
  0xf6   : >> { %v7475_v59 = vpop.permute.xlu0 %740  ;;  %v1071_v54 = vpop.permute.xlu1 %1070 }
  0xf7   : >> { %v750_v37 = vsel %vm9381_vm3, %v739_v19, %v7475_v59 }
  0xf8   : >> { %744 = vrot.lane.b32.xlu0 %v7229_v56, %s9454_s22  ;;  %1302 = vrot.lane.b32.xlu1 %v7172_v55, %s9363_s2  ;;  %v7483_v38 = vpack.c.bf16 %v750_v37, %v715_v49 }
  0xfa   : >> { %v7487_v44 = vpop.permute.xlu0 %1072  ;;  %v1109_v61 = vpop.permute.xlu1 %1108  ;;  %6012 = vmatprep.subr.bf16.mxu1 %v7483_v38 }
  0xfb   : >> { %v1086_v22 = vsel %vm1084_vm12, %v1071_v54, %v7487_v44  ;;  %6014 = vmatpush1.bf16.msra.mxu1 %v7485_v41 }
  0xfc   : >> { %1304 = vrot.lane.b32.xlu0 %v7175_v48, %s9363_s2  ;;  %1340 = vrot.lane.b32.xlu1 %v7172_v55, %s9367_s0  ;;  %s9455_s2 = smov 96  }
  0xfe   : >> { %v7497_v19 = vpop.permute.xlu0 %1110  ;;  %v1069_v20 = vpop.permute.xlu1 %1068 }
  0xff   : >> { %v1124_v23 = vsel %vm1122_vm13, %v1109_v61, %v7497_v19  ;;  %v1085_v49 = vsel %vm1084_vm12, %v1069_v20, %v1071_v54 }
 0x100   : >> { %1342 = vrot.lane.b32.xlu0 %v7175_v48, %s9367_s0  ;;  %777 = vrot.lane.b32.xlu1 %v7221_v47, %s9365_s18  ;;  %v5983_v45 = vpack.c.bf16 %v1124_v23, %v1086_v22  ;;  %s9457_s0 = smov 93  }
 0x102   : >> { %v1107_v37 = vpop.permute.xlu0 %1106  ;;  %v774_v36 = vpop.permute.xlu1 %773  ;;  %5984 = vmatprep.subr.bf16.mxu0 %v5983_v45 }
 0x103   : >> { %v1123_v55 = vsel %vm1122_vm13, %v1107_v37, %v1109_v61  ;;  %v7509_v35 = vsel %vm653_vm0, %v7350_v50, %v774_v36 }
 0x104   : >> { %779 = vrot.lane.b32.xlu0 %v7229_v56, %s9365_s18  ;;  %812 = vrot.lane.b32.xlu1 %v7221_v47, %s9455_s2  ;;  %v5985_v48 = vpack.c.bf16 %v1123_v55, %v1085_v49  ;;  %s9456_s18 = smov 94  }
 0x106   : >> { %v7515_v54 = vpop.permute.xlu0 %775  ;;  %v809_v20 = vpop.permute.xlu1 %808  ;;  %5986 = vmatpush1.bf16.msra.mxu0 %v5985_v48 }
 0x107   : >> { %v7519_v22 = vsel %vm653_vm0, %v774_v36, %v7515_v54  ;;  %v821_v61 = vsel %vm818_vm4, %v7360_v42, %v809_v20 }
 0x108   : >> { %814 = vrot.lane.b32.xlu0 %v7229_v56, %s9455_s2  ;;  %850 = vrot.lane.b32.xlu1 %v7221_v47, %s6635_s19  ;;  %v6017_v42 = vpack.c.bf16 %v821_v61, %v7509_v35 }
 0x10a   : >> { %v7527_v50 = vpop.permute.xlu0 %810  ;;  %v1147_v23 = vpop.permute.xlu1 %1146 }
 0x10b   : >> { %v822_v49 = vsel %vm818_vm4, %v809_v20, %v7527_v50 }
 0x10c   : >> { %852 = vrot.lane.b32.xlu0 %v7229_v56, %s6635_s19  ;;  %888 = vrot.lane.b32.xlu1 %v7221_v47, %s9456_s18  ;;  %v6015_v36 = vpack.c.bf16 %v822_v49, %v7519_v22 }
 0x10e   : >> { %v7537_v45 = vpop.permute.xlu0 %1148  ;;  %v1185_v37 = vpop.permute.xlu1 %1184  ;;  %6016 = vmatprep.subr.bf16.mxu1 %v6015_v36 }
 0x10f   : >> { %v1162_v55 = vsel %vm1160_vm14, %v1147_v23, %v7537_v45  ;;  %6018 = vmatpush1.bf16.msra.mxu1 %v6017_v42 }
 0x110   : >> { %890 = vrot.lane.b32.xlu0 %v7229_v56, %s9456_s18  ;;  %926 = vrot.lane.b32.xlu1 %v7221_v47, %s9457_s0 }
 0x112   : >> { %v7545_v48 = vpop.permute.xlu0 %1186  ;;  %v1145_v20 = vpop.permute.xlu1 %1144 }
 0x113   : >> { %v1200_v61 = vsel %vm1198_vm15, %v1185_v37, %v7545_v48  ;;  %v1161_v49 = vsel %vm1160_vm14, %v1145_v20, %v1147_v23 }
 0x114   : >> { %928 = vrot.lane.b32.xlu0 %v7229_v56, %s9457_s0  ;;  %964 = vrot.lane.b32.xlu1 %v7221_v47, %s9458_s27  ;;  %v5987_v36 = vpack.c.bf16 %v1200_v61, %v1162_v55 }
 0x116   : >> { %v1183_v42 = vpop.permute.xlu0 %1182  ;;  %v847_v18 = vpop.permute.xlu1 %846  ;;  %5988 = vmatprep.subr.bf16.mxu0 %v5987_v36 }
 0x117   : >> { %v1199_v17 = vsel %vm1198_vm15, %v1183_v42, %v1185_v37  ;;  %v859_v34 = vsel %vm9371_vm5, %v7375_v62, %v847_v18 }
 0x118   : >> { %966 = vrot.lane.b32.xlu0 %v7229_v56, %s9458_s27  ;;  %1002 = vrot.lane.b32.xlu1 %v7221_v47, %s9372_s1  ;;  %v5989_v23 = vpack.c.bf16 %v1199_v17, %v1161_v49 }
 0x11a   : >> { %v7561_v20 = vpop.permute.xlu0 %848  ;;  %v885_v33 = vpop.permute.xlu1 %884  ;;  %5990 = vmatpush1.bf16.msra.mxu0 %v5989_v23 }
 0x11b   : >> { %v860_v55 = vsel %vm9371_vm5, %v847_v18, %v7561_v20  ;;  %v897_v37 = vsel %vm9374_vm6, %v7383_v57, %v885_v33  ;;  %vm1236_vm5 = vcmask 252928  }
 0x11c   : >> { %1004 = vrot.lane.b32.xlu0 %v7229_v56, %s9372_s1  ;;  %1040 = vrot.lane.b32.xlu1 %v7221_v47, %s9451_s3  ;;  %v6021_v57 = vpack.c.bf16 %v897_v37, %v859_v34  ;;  %s9459_s1 = smov 61  }
 0x11e   : >> { %v7571_v62 = vpop.permute.xlu0 %886  ;;  %v1223_v61 = vpop.permute.xlu1 %1222 }
 0x11f   : >> { %v898_v17 = vsel %vm9374_vm6, %v885_v33, %v7571_v62  ;;  %vm1274_vm6 = vcmask 244736  }
 0x120   : >> { %1042 = vrot.lane.b32.xlu0 %v7229_v56, %s9451_s3  ;;  %1078 = vrot.lane.b32.xlu1 %v7221_v47, %s9375_s25  ;;  %v6019_v18 = vpack.c.bf16 %v898_v17, %v860_v55 }
 0x122   : >> { %v7579_v49 = vpop.permute.xlu0 %1224  ;;  %v1261_v36 = vpop.permute.xlu1 %1260  ;;  %6020 = vmatprep.subr.bf16.mxu1 %v6019_v18 }
 0x123   : >> { %v1238_v42 = vsel %vm1236_vm5, %v1223_v61, %v7579_v49  ;;  %6022 = vmatpush1.bf16.msra.mxu1 %v6021_v57 }
 0x124   : >> { %1080 = vrot.lane.b32.xlu0 %v7229_v56, %s9375_s25  ;;  %1116 = vrot.lane.b32.xlu1 %v7221_v47, %s9459_s1  ;;  %s9460_s25 = smov 32  }
 0x126   : >> { %v7587_v33 = vpop.permute.xlu0 %1262  ;;  %v1221_v23 = vpop.permute.xlu1 %1220 }
 0x127   : >> { %v1276_v34 = vsel %vm1274_vm6, %v1261_v36, %v7587_v33  ;;  %v1237_v55 = vsel %vm1236_vm5, %v1221_v23, %v1223_v61 }
 0x128   : >> { %1118 = vrot.lane.b32.xlu0 %v7229_v56, %s9459_s1  ;;  %816 = vrot.lane.b32.xlu1 %v7299_v63, %s9455_s2  ;;  %v5991_v37 = vpack.c.bf16 %v1276_v34, %v1238_v42 }
 0x12a   : >> { %v1259_v17 = vpop.permute.xlu0 %1258  ;;  %v923_v18 = vpop.permute.xlu1 %922  ;;  %5992 = vmatprep.subr.bf16.mxu0 %v5991_v37 }
 0x12b   : >> { %v1275_v57 = vsel %vm1274_vm6, %v1259_v17, %v1261_v36  ;;  %v935_v16 = vsel %vm9377_vm7, %v7397_v51, %v923_v18 }
 0x12c   : >> { %1154 = vrot.lane.b32.xlu0 %v7221_v47, %s9378_s30  ;;  %1156 = vrot.lane.b32.xlu1 %v7229_v56, %s9378_s30  ;;  %v5993_v61 = vpack.c.bf16 %v1275_v57, %v1237_v55  ;;  %s9461_s30 = smov 31  }
 0x12e   : >> { %v7603_v23 = vpop.permute.xlu0 %924  ;;  %v961_v15 = vpop.permute.xlu1 %960  ;;  %5994 = vmatpush1.bf16.msra.mxu0 %v5993_v61 }
 0x12f   : >> { %v936_v42 = vsel %vm9377_vm7, %v923_v18, %v7603_v23  ;;  %v973_v36 = vsel %vm9380_vm8, %v7405_v40, %v961_v15  ;;  %vm1312_vm7 = vcmask 236544  }
 0x130   : >> { %1192 = vrot.lane.b32.xlu0 %v7221_v47, %s9460_s25  ;;  %1194 = vrot.lane.b32.xlu1 %v7229_v56, %s9460_s25  ;;  %v6025_v37 = vpack.c.bf16 %v973_v36, %v935_v16 }
 0x132   : >> { %v7613_v51 = vpop.permute.xlu0 %962  ;;  %v1299_v34 = vpop.permute.xlu1 %1298 }
 0x133   : >> { %v974_v55 = vsel %vm9380_vm8, %v961_v15, %v7613_v51  ;;  %vm9384_vm8 = vcmask 228352  }
 0x134   : >> { %854 = vrot.lane.b32.xlu0 %v7299_v63, %s6635_s19  ;;  %892 = vrot.lane.b32.xlu1 %v7299_v63, %s9456_s18  ;;  %v6023_v40 = vpack.c.bf16 %v974_v55, %v936_v42  ;;  %s9462_s18 = smov 30   ;;  %s9463_s19 = smov 29  }
 0x136   : >> { %v7621_v17 = vpop.permute.xlu0 %1300  ;;  %v1337_v18 = vpop.permute.xlu1 %1336  ;;  %6024 = vmatprep.subr.bf16.mxu1 %v6023_v40 }
 0x137   : >> { %v1314_v57 = vsel %vm1312_vm7, %v1299_v34, %v7621_v17  ;;  %6026 = vmatpush1.bf16.msra.mxu1 %v6025_v37  ;;  %v1568_v37 = vld [vmem:[#allocation2 + $0x468] sm:$0xff] }
 0x138   : >> { %1230 = vrot.lane.b32.xlu0 %v7221_v47, %s9461_s30  ;;  %1232 = vrot.lane.b32.xlu1 %v7229_v56, %s9461_s30 }
 0x13a   : >> { %v7629_v15 = vpop.permute.xlu0 %1338  ;;  %v1297_v61 = vpop.permute.xlu1 %1296 }
 0x13b   : >> { %v1352_v16 = vsel %vm9384_vm8, %v1337_v18, %v7629_v15  ;;  %v1313_v42 = vsel %vm1312_vm7, %v1297_v61, %v1299_v34  ;;  %v5999_v61 = vpack.c.bf16 %v7419_v21, %v1568_v37  ;;  %v6001_v21 = vpack.c.bf16 %v7316_v43, %v1567_v14 }
 0x13c   : >> { %1268 = vrot.lane.b32.xlu0 %v7221_v47, %s9462_s18  ;;  %1270 = vrot.lane.b32.xlu1 %v7229_v56, %s9462_s18  ;;  %v5995_v36 = vpack.c.bf16 %v1352_v16, %v1314_v57 }
 0x13e   : >> { %v1335_v55 = vpop.permute.xlu0 %1334  ;;  %v999_v40 = vpop.permute.xlu1 %998  ;;  %5996 = vmatprep.subr.bf16.mxu0 %v5995_v36 }
 0x13f   : >> { %v1351_v32 = vsel %vm9384_vm8, %v1335_v55, %v1337_v18  ;;  %v1011_v31 = vsel %vm1008_vm10, %v7441_v58, %v999_v40 }
 0x140   : >> { %930 = vrot.lane.b32.xlu0 %v7299_v63, %s9457_s0  ;;  %968 = vrot.lane.b32.xlu1 %v7299_v63, %s9458_s27  ;;  %v5997_v34 = vpack.c.bf16 %v1351_v32, %v1313_v42  ;;  %s9464_s0 = smov 28   ;;  %s9465_s27 = smov 64  }
 0x142   : >> { %v7646_v57 = vpop.permute.xlu0 %1000  ;;  %v1037_v16 = vpop.permute.xlu1 %1036  ;;  %5998 = vmatpush1.bf16.msra.mxu0 %v5997_v34 }
 0x143   : >> { %v1012_v18 = vsel %vm1008_vm10, %v999_v40, %v7646_v57  ;;  %v1049_v58 = vsel %vm1046_vm11, %v7449_v52, %v1037_v16  ;;  %6000 = vmatprep.subr.bf16.mxu0 %v5999_v61 }
 0x144   : >> { %1306 = vrot.lane.b32.xlu0 %v7221_v47, %s9463_s19  ;;  %1308 = vrot.lane.b32.xlu1 %v7229_v56, %s9463_s19  ;;  %v6029_v14 = vpack.c.bf16 %v1049_v58, %v1011_v31 }
 0x146   : >> { %v7657_v32 = vpop.permute.xlu0 %1038  ;;  %v1075_v42 = vpop.permute.xlu1 %1074  ;;  %6002 = vmatpush1.bf16.msra.mxu0 %v6001_v21 }
 0x147   : >> { %v1050_v36 = vsel %vm1046_vm11, %v1037_v16, %v7657_v32  ;;  %v1087_v55 = vsel %vm1084_vm12, %v7487_v44, %v1075_v42  ;;  %6004 = vmatprep.subr.bf16.mxu0 %v7485_v41 }
 0x148   : >> { %1344 = vrot.lane.b32.xlu0 %v7221_v47, %s9464_s0  ;;  %1346 = vrot.lane.b32.xlu1 %v7229_v56, %s9464_s0  ;;  %v6027_v52 = vpack.c.bf16 %v1050_v36, %v1012_v18 }
 0x14a   : >> { %v7668_v43 = vpop.permute.xlu0 %1076  ;;  %v1113_v40 = vpop.permute.xlu1 %1112  ;;  %6028 = vmatprep.subr.bf16.mxu1 %v6027_v52  ;;  %6006 = vmatpush1.bf16.msra.mxu0 %v7342_v60 }
 0x14b   : >> { %v1088_v37 = vsel %vm1084_vm12, %v1075_v42, %v7668_v43  ;;  %v1125_v41 = vsel %vm1122_vm13, %v7497_v19, %v1113_v40  ;;  %1659 = vmatprep.subr.mxu0 %v7509_v35  ;;  %6030 = vmatpush1.bf16.msra.mxu1 %v6029_v14  ;;  %v6649_v42 = vmov 0   ;;  %v1431_v14 = vld [vmem:[#allocation2 + $0x20] sm:$0xff] }
 0x14c   : >> { %1006 = vrot.lane.b32.xlu0 %v7299_v63, %s9465_s27  ;;  %1044 = vrot.lane.b32.xlu1 %v7299_v63, %s9451_s3  ;;  %v6033_v19 = vpack.c.bf16 %v1125_v41, %v1087_v55  ;;  %s9467_s3 = smov 60  }
 0x14d   : >> { %6577 = vset.pattern.permute.xlu0 %v6649_v42  ;;  %6578 = vset.pattern.permute.xlu1 %v6649_v42 }
 0x14e   : >> { %v7680_v31 = vpop.permute.xlu0 %1114  ;;  %v1151_v56 = vpop.permute.xlu1 %1150  ;;  %1660 = vmatpush1.msra.mxu0 %v7354_v46 }
 0x14f   : >> { %v1126_v60 = vsel %vm1122_vm13, %v1113_v40, %v7680_v31  ;;  %v1163_v44 = vsel %vm1160_vm14, %v7537_v45, %v1151_v56  ;;  %1676 = vmatmul.mubr.f32.vlgmr.msra.gmra.mrb[0].mxu0 %v6760_v0 }
 0x150   : >> { %1379 = vrot.lane.b32.xlu0 %v7299_v63, %s9452_s26  ;;  %1082 = vrot.lane.b32.xlu1 %v7299_v63, %s9466_s4  ;;  %v6031_v35 = vpack.c.bf16 %v1126_v60, %v1088_v37 }
 0x151   : >> { %5308 = vmatprep.mubr.msk.f32.mxu0 %vm1607_vm9, %v6765_v1 }
 0x152   : >> { %v7694_v46 = vpop.permute.xlu0 %1152  ;;  %v1189_v34 = vpop.permute.xlu1 %1188  ;;  %6032 = vmatprep.subr.bf16.mxu1 %v6031_v35 }
 0x153   : >> { %v1164_v45 = vsel %vm1160_vm14, %v1151_v56, %v7694_v46  ;;  %v1201_v61 = vsel %vm1198_vm15, %v7545_v48, %v1189_v34  ;;  %6034 = vmatpush1.bf16.msra.mxu1 %v6033_v19 }
 0x154   : >> { %1120 = vrot.lane.b32.xlu0 %v7299_v63, %s9459_s1  ;;  %1391 = vrot.lane.b32.xlu1 %v7299_v63, %s9453_s28  ;;  %v6037_v36 = vpack.c.bf16 %v1201_v61, %v1163_v44  ;;  %s6655_s1 = smov 58  }
 0x156   : >> { %v7704_v16 = vpop.permute.xlu0 %1190  ;;  %v673_v18 = vpop.permute.xlu1 %672 }
 0x157   : >> { %v1202_v58 = vsel %vm1198_vm15, %v1189_v34, %v7704_v16  ;;  %v7710_v21 = vsel %vm9383_vm1, %v7427_v53, %v673_v18 }
 0x158   : >> { %1403 = vrot.lane.b32.xlu0 %v7299_v63, %s9454_s22  ;;  %1158 = vrot.lane.b32.xlu1 %v7299_v63, %s9467_s3  ;;  %v6035_v48 = vpack.c.bf16 %v1202_v58, %v1164_v45  ;;  %s9468_s22 = smov 124   ;;  %v6057_v41 = vpack.c.bf16 %v7710_v21, %v1431_v14 }
 0x15a   : >> { %v7716_v55 = vpop.permute.xlu0 %674  ;;  %v1227_v52 = vpop.permute.xlu1 %1226  ;;  %6036 = vmatprep.subr.bf16.mxu1 %v6035_v48 }
 0x15b   : >> { %v7720_v53 = vsel %vm9383_vm1, %v673_v18, %v7716_v55  ;;  %696 = vst.msk [vmem:[#allocation2 + $0x68] sm:$0xff] %vm653_vm0, %v7716_v55  ;;  %v1239_v40 = vsel %vm1236_vm5, %v7579_v49, %v1227_v52  ;;  %6038 = vmatpush1.bf16.msra.mxu1 %v6037_v36  ;;  %vm9471_vm1 = vcmask 769024  }
 0x15c   : >> { %1196 = vrot.lane.b32.xlu0 %v7299_v63, %s9460_s25  ;;  %1415 = vrot.lane.b32.xlu1 %v7299_v63, %s9468_s22  ;;  %v6055_v37 = vpack.c.bf16 %v7720_v53, %v7221_v47  ;;  %s6652_s25 = smov 122  }
 0x15e   : >> { %v7733_v56 = vpop.permute.xlu0 %1228  ;;  %v1265_v60 = vpop.permute.xlu1 %1264  ;;  %6056 = vmatprep.subr.bf16.mxu0 %v6055_v37 }
 0x15f   : >> { %v1240_v44 = vsel %vm1236_vm5, %v1227_v52, %v7733_v56  ;;  %v1277_v49 = vsel %vm1274_vm6, %v7587_v33, %v1265_v60  ;;  %6058 = vmatpush1.bf16.msra.mxu0 %v6057_v41 }
 0x160   : >> { %1234 = vrot.lane.b32.xlu0 %v7299_v63, %s9461_s30  ;;  %1272 = vrot.lane.b32.xlu1 %v7299_v63, %s9462_s18  ;;  %v6041_v45 = vpack.c.bf16 %v1277_v49, %v1239_v40  ;;  %s6653_s30 = smov 120  }
 0x162   : >> { %v7743_v47 = vpop.permute.xlu0 %1266  ;;  %v708_v35 = vpop.permute.xlu1 %707 }
 0x163   : >> { %v1278_v19 = vsel %vm1274_vm6, %v1265_v60, %v7743_v47  ;;  %v716_v34 = vsel %vm9382_vm2, %v7465_v24, %v708_v35 }
 0x164   : >> { %1310 = vrot.lane.b32.xlu0 %v7299_v63, %s9463_s19  ;;  %1348 = vrot.lane.b32.xlu1 %v7299_v63, %s9464_s0  ;;  %v6039_v33 = vpack.c.bf16 %v1278_v19, %v1240_v44 }
 0x166   : >> { %v7753_v61 = vpop.permute.xlu0 %709  ;;  %v743_v18 = vpop.permute.xlu1 %742  ;;  %6040 = vmatprep.subr.bf16.mxu1 %v6039_v33 }
 0x167   : >> { %v717_v58 = vsel %vm9382_vm2, %v708_v35, %v7753_v61  ;;  %731 = vst.msk [vmem:[#allocation2 + $0xa0] sm:$0xff] %vm653_vm0, %v7753_v61  ;;  %v751_v24 = vsel %vm9381_vm3, %v7475_v59, %v743_v18  ;;  %6042 = vmatpush1.bf16.msra.mxu1 %v6041_v45  ;;  %v1570_v35 = vld [vmem:[#allocation2 + $0x478] sm:$0xff] }
 0x168   : >> { %1604 = vperm.xlu0 %6577, %v6790_v6   ;;  %v6061_v14 = vpack.c.bf16 %v751_v24, %v716_v34 }
 0x16a   : >> { %v7762_v42 = vpop.permute.xlu0 %744  ;;  %v1303_v63 = vpop.permute.xlu1 %1302 }
 0x16b   : >> { %v752_v48 = vsel %vm9381_vm3, %v743_v18, %v7762_v42  ;;  %766 = vst.msk [vmem:[#allocation2 + $0xd8] sm:$0xff] %vm653_vm0, %v7762_v42  ;;  %v1315_v36 = vsel %vm1312_vm7, %v7621_v17, %v1303_v63  ;;  %v6047_v18 = vpack.c.bf16 %v7710_v21, %v1570_v35  ;;  %vm9469_vm3 = vcmask 777216  }
 0x16c   : >> { %v7770_v52 = vpack.c.bf16 %v752_v48, %v717_v58  ;;  %vm9470_vm2 = vmmov %vm9469_vm3 }
 0x16e   : >> { %v7772_v40 = vpop.permute.xlu0 %1304  ;;  %v1341_v59 = vpop.permute.xlu1 %1340  ;;  %6060 = vmatprep.subr.bf16.mxu0 %v7770_v52 }
 0x16f   : >> { %v1316_v37 = vsel %vm1312_vm7, %v1303_v63, %v7772_v40  ;;  %v1353_v41 = vsel %vm9384_vm8, %v7629_v15, %v1341_v59  ;;  %6062 = vmatpush1.bf16.msra.mxu0 %v6061_v14  ;;  %v1569_v15 = vld [vmem:[#allocation2 + $0x470] sm:$0xff] }
 0x170   : >> { %v6045_v34 = vpack.c.bf16 %v1353_v41, %v1315_v36  ;;  %v6049_v24 = vpack.c.bf16 %v7431_v39, %v1569_v15 }
 0x172   : >> { %v7779_v60 = vpop.permute.xlu0 %1342  ;;  %v778_v44 = vpop.permute.xlu1 %777 }
 0x173   : >> { %v1354_v17 = vsel %vm9384_vm8, %v1341_v59, %v7779_v60  ;;  %v785_v49 = vsel %vm653_vm0, %v7515_v54, %v778_v44  ;;  %vm9473_vm8 = vcmask 760832  }
 0x174   : >> { %v6043_v19 = vpack.c.bf16 %v1354_v17, %v1316_v37  ;;  %v1440_v17 = vld [vmem:[#allocation2 + $0x68] sm:$0xff] }
 0x176   : >> { %v7785_v33 = vpop.permute.xlu0 %779  ;;  %v813_v45 = vpop.permute.xlu1 %812  ;;  %6044 = vmatprep.subr.bf16.mxu1 %v6043_v19 }
 0x177   : >> { %v7790_v58 = vsel %vm653_vm0, %v778_v44, %v7785_v33  ;;  %800 = vst.msk [vmem:[#allocation2 + $0x110] sm:$0xff] %vm653_vm0, %v7785_v33  ;;  %v823_v54 = vsel %vm818_vm4, %v7527_v50, %v813_v45  ;;  %6046 = vmatpush1.bf16.msra.mxu1 %v6045_v34 }
 0x178   : >> { %6048 = vmatprep.subr.bf16.mxu1 %v6047_v18  ;;  %v6065_v37 = vpack.c.bf16 %v823_v54, %v785_v49 }
 0x17a   : >> { %v7797_v63 = vpop.permute.xlu0 %814  ;;  %v851_v48 = vpop.permute.xlu1 %850 }
 0x17b   : >> { %v824_v21 = vsel %vm818_vm4, %v813_v45, %v7797_v63  ;;  %v861_v36 = vsel %vm9469_vm3, %v7561_v20, %v851_v48  ;;  %6050 = vmatpush1.bf16.msra.mxu1 %v6049_v24  ;;  %v1433_v20 = vld [vmem:[#allocation2 + $0x30] sm:$0xff]  ;;  %vm9472_vm3 = vmmov %vm9471_vm1 }
 0x17c   : >> { %6052 = vmatprep.subr.bf16.mxu1 %v6061_v14  ;;  %v6063_v59 = vpack.c.bf16 %v824_v21, %v7790_v58  ;;  %v6104_v45 = vpack.c.bf16 %v1440_v17, %v1433_v20 }
 0x17e   : >> { %v7804_v41 = vpop.permute.xlu0 %852  ;;  %v889_v50 = vpop.permute.xlu1 %888  ;;  %6064 = vmatprep.subr.bf16.mxu0 %v6063_v59 }
 0x17f   : >> { %v862_v39 = vsel %vm9470_vm2, %v851_v48, %v7804_v41  ;;  %v899_v44 = vsel %vm9471_vm1, %v7571_v62, %v889_v50  ;;  %6054 = vmatpush1.bf16.msra.mxu1 %v7483_v38  ;;  %6066 = vmatpush1.bf16.msra.mxu0 %v6065_v37  ;;  %v6650_v62 = vmov 0.0|0.0   ;;  %vm9474_vm1 = vmmov %vm9473_vm8  ;;  %vm9475_vm2 = vcmask 752640  }
 0x180   : >> { %1730 = vmatprep.subr.mxu1 %v785_v49  ;;  %v1454_v49 = vld [vmem:[#allocation2 + $0xd8] sm:$0xff]  ;;  %v6069_v18 = vpack.c.bf16 %v899_v44, %v861_v36 }
 0x182   : >> { %v7811_v14 = vpop.permute.xlu0 %890  ;;  %v927_v35 = vpop.permute.xlu1 %926 }
 0x183   : >> { %v900_v19 = vsel %vm9472_vm3, %v889_v50, %v7811_v14  ;;  %v937_v34 = vsel %vm9473_vm8, %v7603_v23, %v927_v35  ;;  %1731 = vmatpush1.msra.mxu1 %v7519_v22  ;;  %v1447_v22 = vld [vmem:[#allocation2 + $0xa0] sm:$0xff]  ;;  %vm9476_vm8 = vmmov %vm9475_vm2  ;;  %vm9477_vm3 = vcmask 777216  }
 0x184   : >> { %1747 = vmatmul.mubr.f32.vlgmr.msra.gmra.mrb[0].mxu1 %v6760_v0  ;;  %6103 = vmatprep.subr.bf16.mxu1 %v6650_v62  ;;  %v6067_v38 = vpack.c.bf16 %v900_v19, %v862_v39  ;;  %v6107_v48 = vpack.c.bf16 %v1454_v49, %v1447_v22 }
 0x185   : >> { %6105 = vmatpush1.bf16.msra.mxu1 %v6104_v45  ;;  %5309 = vmatprep.mubr.msk.f32.mxu1 %vm1607_vm9, %v6765_v1 }
 0x186   : >> { %v7822_v15 = vpop.permute.xlu0 %928  ;;  %v965_v54 = vpop.permute.xlu1 %964  ;;  %6068 = vmatprep.subr.bf16.mxu0 %v6067_v38  ;;  %6106 = vmatprep.subr.bf16.mxu1 %v6650_v62 }
 0x187   : >> { %v938_v23 = vsel %vm9474_vm1, %v927_v35, %v7822_v15  ;;  %v975_v24 = vsel %vm9475_vm2, %v7613_v51, %v965_v54  ;;  %6070 = vmatpush1.bf16.msra.mxu0 %v6069_v18  ;;  %vm9478_vm1 = vcmask 769024   ;;  %vm9479_vm2 = vcmask 760832  }
 0x188   : >> { %v6073_v39 = vpack.c.bf16 %v975_v24, %v937_v34 }
 0x189   : >> { %6108 = vmatpush1.bf16.msra.mxu1 %v6107_v48 }
 0x18a   : >> { %v7829_v21 = vpop.permute.xlu0 %966  ;;  %v1003_v36 = vpop.permute.xlu1 %1002  ;;  %6109 = vmatprep.subr.bf16.mxu1 %v6650_v62 }
 0x18b   : >> { %v976_v59 = vsel %vm9476_vm8, %v965_v54, %v7829_v21  ;;  %v1013_v37 = vsel %vm1008_vm10, %v7646_v57, %v1003_v36 }
 0x18c   : >> { %v6071_v50 = vpack.c.bf16 %v976_v59, %v938_v23 }
 0x18e   : >> { %v7836_v44 = vpop.permute.xlu0 %1004  ;;  %v1041_v20 = vpop.permute.xlu1 %1040  ;;  %6072 = vmatprep.subr.bf16.mxu0 %v6071_v50 }
 0x18f   : >> { %v1014_v51 = vsel %vm1008_vm10, %v1003_v36, %v7836_v44  ;;  %v1051_v17 = vsel %vm1046_vm11, %v7657_v32, %v1041_v20  ;;  %6074 = vmatpush1.bf16.msra.mxu0 %v6073_v39 }
 0x190   : >> { %v6077_v38 = vpack.c.bf16 %v1051_v17, %v1013_v37  ;;  %v1461_v17 = vld [vmem:[#allocation2 + $0x110] sm:$0xff] }
 0x192   : >> { %v7842_v35 = vpop.permute.xlu0 %1042  ;;  %v1079_v19 = vpop.permute.xlu1 %1078 }
 0x193   : >> { %v1052_v45 = vsel %vm1046_vm11, %v1041_v20, %v7842_v35  ;;  %v1089_v57 = vsel %vm1084_vm12, %v7668_v43, %v1079_v19 }
 0x194   : >> { %v6075_v34 = vpack.c.bf16 %v1052_v45, %v1014_v51 }
 0x196   : >> { %v7848_v49 = vpop.permute.xlu0 %1080  ;;  %v1117_v18 = vpop.permute.xlu1 %1116  ;;  %6076 = vmatprep.subr.bf16.mxu0 %v6075_v34 }
 0x197   : >> { %v1090_v54 = vsel %vm1084_vm12, %v1079_v19, %v7848_v49  ;;  %v1127_v32 = vsel %vm1122_vm13, %v7680_v31, %v1117_v18  ;;  %6078 = vmatpush1.bf16.msra.mxu0 %v6077_v38 }
 0x198   : >> { %v6081_v36 = vpack.c.bf16 %v1127_v32, %v1089_v57 }
 0x19a   : >> { %v7854_v22 = vpop.permute.xlu0 %1118  ;;  %v817_v23 = vpop.permute.xlu1 %816 }
 0x19b   : >> { %v1128_v24 = vsel %vm1122_vm13, %v1117_v18, %v7854_v22  ;;  %v825_v43 = vsel %vm818_vm4, %v7797_v63, %v817_v23 }
 0x19c   : >> { %839 = vst.msk [vmem:[#allocation2 + $0x148] sm:$0xff] %vm653_vm0, %v825_v43  ;;  %v6079_v48 = vpack.c.bf16 %v1128_v24, %v1090_v54 }
 0x19e   : >> { %v1155_v59 = vpop.permute.xlu0 %1154  ;;  %v7861_v37 = vpop.permute.xlu1 %1156  ;;  %6080 = vmatprep.subr.bf16.mxu0 %v6079_v48 }
 0x19f   : >> { %v1165_v31 = vsel %vm1160_vm14, %v7694_v46, %v1155_v59  ;;  %v1166_v50 = vsel %vm1160_vm14, %v1155_v59, %v7861_v37  ;;  %6082 = vmatpush1.bf16.msra.mxu0 %v6081_v36 }
 0x1a2   : >> { %v1193_v39 = vpop.permute.xlu0 %1192  ;;  %v7867_v20 = vpop.permute.xlu1 %1194 }
 0x1a3   : >> { %v1203_v63 = vsel %vm1198_vm15, %v7704_v16, %v1193_v39  ;;  %v1204_v51 = vsel %vm1198_vm15, %v1193_v39, %v7867_v20  ;;  %v1468_v19 = vld [vmem:[#allocation2 + $0x148] sm:$0xff] }
 0x1a4   : >> { %v6110_v45 = vpack.c.bf16 %v1468_v19, %v1461_v17  ;;  %v6083_v57 = vpack.c.bf16 %v1204_v51, %v1166_v50  ;;  %v6085_v34 = vpack.c.bf16 %v1203_v63, %v1165_v31 }
 0x1a6   : >> { %v855_v38 = vpop.permute.xlu0 %854  ;;  %6111 = vmatpush1.bf16.msra.mxu1 %v6110_v45  ;;  %v893_v46 = vpop.permute.xlu1 %892  ;;  %6084 = vmatprep.subr.bf16.mxu0 %v6083_v57 }
 0x1a7   : >> { %v863_v18 = vsel %vm9477_vm3, %v7804_v41, %v855_v38  ;;  %v901_v54 = vsel %vm9478_vm1, %v7811_v14, %v893_v46  ;;  %6086 = vmatpush1.bf16.msra.mxu0 %v6085_v34  ;;  %6112 = vmatprep.subr.bf16.mxu1 %v6650_v62  ;;  %vm9480_vm3 = vcmask 228352  }
 0x1a8   : >> { %877 = vst.msk [vmem:[#allocation2 + $0x180] sm:$0xff] %vm653_vm0, %v863_v18  ;;  %915 = vst.msk [vmem:[#allocation2 + $0x1b8] sm:$0xff] %vm653_vm0, %v901_v54 }
 0x1a9   : >> { %vm9481_vm1 = vmmov %vm9480_vm3 }
 0x1aa   : >> { %v1231_v16 = vpop.permute.xlu0 %1230  ;;  %v7880_v32 = vpop.permute.xlu1 %1232 }
 0x1ab   : >> { %v1241_v23 = vsel %vm1236_vm5, %v7733_v56, %v1231_v16  ;;  %v1242_v24 = vsel %vm1236_vm5, %v1231_v16, %v7880_v32 }
 0x1ae   : >> { %v1269_v41 = vpop.permute.xlu0 %1268  ;;  %v7886_v43 = vpop.permute.xlu1 %1270 }
 0x1af   : >> { %v1279_v14 = vsel %vm1274_vm6, %v7743_v47, %v1269_v41  ;;  %v1280_v48 = vsel %vm1274_vm6, %v1269_v41, %v7886_v43  ;;  %v1475_v36 = vld [vmem:[#allocation2 + $0x180] sm:$0xff]  ;;  %v1482_v59 = vld [vmem:[#allocation2 + $0x1b8] sm:$0xff] }
 0x1b0   : >> { %v6113_v31 = vpack.c.bf16 %v1482_v59, %v1475_v36  ;;  %v6087_v50 = vpack.c.bf16 %v1280_v48, %v1242_v24  ;;  %v6089_v39 = vpack.c.bf16 %v1279_v14, %v1241_v23  ;;  %v1571_v59 = vld [vmem:[#allocation2 + $0x480] sm:$0xff] }
 0x1b2   : >> { %v931_v63 = vpop.permute.xlu0 %930  ;;  %6114 = vmatpush1.bf16.msra.mxu1 %v6113_v31  ;;  %v969_v56 = vpop.permute.xlu1 %968  ;;  %6088 = vmatprep.subr.bf16.mxu0 %v6087_v50  ;;  %v6097_v50 = vpack.c.bf16 %v7720_v53, %v1571_v59 }
 0x1b3   : >> { %v939_v51 = vsel %vm9479_vm2, %v7822_v15, %v931_v63  ;;  %v977_v17 = vsel %vm9476_vm8, %v7829_v21, %v969_v56  ;;  %6090 = vmatpush1.bf16.msra.mxu0 %v6089_v39  ;;  %6115 = vmatprep.subr.bf16.mxu1 %v6650_v62  ;;  %vm9482_vm2 = vcmask 1039360   ;;  %vm9484_vm8 = vcmask 1022976  }
 0x1b4   : >> { %953 = vst.msk [vmem:[#allocation2 + $0x1f0] sm:$0xff] %vm653_vm0, %v939_v51  ;;  %991 = vst.msk [vmem:[#allocation2 + $0x228] sm:$0xff] %vm653_vm0, %v977_v17 }
 0x1b6   : >> { %v1307_v47 = vpop.permute.xlu0 %1306  ;;  %v7899_v19 = vpop.permute.xlu1 %1308 }
 0x1b7   : >> { %v1317_v45 = vsel %vm1312_vm7, %v7772_v40, %v1307_v47  ;;  %v1318_v57 = vsel %vm1312_vm7, %v1307_v47, %v7899_v19 }
 0x1ba   : >> { %v1345_v15 = vpop.permute.xlu0 %1344  ;;  %v7905_v34 = vpop.permute.xlu1 %1346 }
 0x1bb   : >> { %v1355_v21 = vsel %vm9480_vm3, %v7779_v60, %v1345_v15  ;;  %v1356_v38 = vsel %vm9481_vm1, %v1345_v15, %v7905_v34  ;;  %v1489_v46 = vld [vmem:[#allocation2 + $0x1f0] sm:$0xff]  ;;  %v1496_v18 = vld [vmem:[#allocation2 + $0x228] sm:$0xff]  ;;  %vm9489_vm3 = vmmov %vm9482_vm2 }
 0x1bc   : >> { %v6116_v54 = vpack.c.bf16 %v1496_v18, %v1489_v46  ;;  %v6091_v16 = vpack.c.bf16 %v1356_v38, %v1318_v57  ;;  %v6093_v23 = vpack.c.bf16 %v1355_v21, %v1317_v45  ;;  %v1572_v60 = vld [vmem:[#allocation2 + $0x488] sm:$0xff] }
 0x1be   : >> { %v1007_v24 = vpop.permute.xlu0 %1006  ;;  %6117 = vmatpush1.bf16.msra.mxu1 %v6116_v54  ;;  %v1045_v40 = vpop.permute.xlu1 %1044  ;;  %6092 = vmatprep.subr.bf16.mxu0 %v6091_v16 }
 0x1bf   : >> { %v1015_v41 = vsel %vm1008_vm10, %v7836_v44, %v1007_v24  ;;  %v1053_v14 = vsel %vm1046_vm11, %v7842_v35, %v1045_v40  ;;  %6094 = vmatpush1.bf16.msra.mxu0 %v6093_v23  ;;  %6118 = vmatprep.subr.bf16.mxu1 %v6650_v62  ;;  %vm9483_vm11 = vcmask 1031168  }
 0x1c0   : >> { %1029 = vst.msk [vmem:[#allocation2 + $0x260] sm:$0xff] %vm653_vm0, %v1015_v41  ;;  %1067 = vst.msk [vmem:[#allocation2 + $0x298] sm:$0xff] %vm653_vm0, %v1053_v14 }
 0x1c2   : >> { %v1380_v48 = vpop.permute.xlu0 %1379  ;;  %v1083_v36 = vpop.permute.xlu1 %1082 }
 0x1c3   : >> { %v1381_v31 = vsel %vm9482_vm2, %v7716_v55, %v1380_v48  ;;  %1390 = vst.msk [vmem:[#allocation2 + $0x4c8] sm:$0xff] %vm653_vm0, %v1380_v48  ;;  %v1091_v44 = vsel %vm1084_vm12, %v7848_v49, %v1083_v36 }
 0x1c4   : >> { %1105 = vst.msk [vmem:[#allocation2 + $0x2d0] sm:$0xff] %vm653_vm0, %v1091_v44  ;;  %v6095_v35 = vpack.c.bf16 %v1381_v31, %v1572_v60 }
 0x1c6   : >> { %v1121_v39 = vpop.permute.xlu0 %1120  ;;  %v1392_v63 = vpop.permute.xlu1 %1391  ;;  %6096 = vmatprep.subr.bf16.mxu0 %v6095_v35 }
 0x1c7   : >> { %v1129_v56 = vsel %vm1122_vm13, %v7854_v22, %v1121_v39  ;;  %v1393_v51 = vsel %vm9483_vm11, %v7753_v61, %v1392_v63  ;;  %1402 = vst.msk [vmem:[#allocation2 + $0x500] sm:$0xff] %vm653_vm0, %v1392_v63  ;;  %v1503_v55 = vld [vmem:[#allocation2 + $0x260] sm:$0xff]  ;;  %v1510_v17 = vld [vmem:[#allocation2 + $0x298] sm:$0xff]  ;;  %6098 = vmatpush1.bf16.msra.mxu0 %v6097_v50  ;;  %v6651_v50 = vmov 0.0   ;;  %vm9488_vm13 = vmmov %vm9482_vm2  ;;  %vm1987_vm11 = vcmask 678912  }
 0x1c8   : >> { %1143 = vst.msk [vmem:[#allocation2 + $0x308] sm:$0xff] %vm653_vm0, %v1129_v56  ;;  %v6119_v49 = vpack.c.bf16 %v1510_v17, %v1503_v55 }
 0x1ca   : >> { %v1404_v47 = vpop.permute.xlu0 %1403  ;;  %6120 = vmatpush1.bf16.msra.mxu1 %v6119_v49  ;;  %v1159_v53 = vpop.permute.xlu1 %1158  ;;  %v1580_v36 = vld [vmem:[#allocation2 + $0x4c8] sm:$0xff] }
 0x1cb   : >> { %v1405_v45 = vsel %vm9484_vm8, %v7762_v42, %v1404_v47  ;;  %1414 = vst.msk [vmem:[#allocation2 + $0x538] sm:$0xff] %vm653_vm0, %v1404_v47  ;;  %v1167_v22 = vsel %vm1160_vm14, %v7861_v37, %v1159_v53  ;;  %6121 = vmatprep.subr.bf16.mxu1 %v6650_v62  ;;  %v1517_v42 = vld [vmem:[#allocation2 + $0x2d0] sm:$0xff]  ;;  %vm2052_vm8 = vcmask 998400  }
 0x1cc   : >> { %1181 = vst.msk [vmem:[#allocation2 + $0x340] sm:$0xff] %vm653_vm0, %v1167_v22  ;;  %v6099_v61 = vpack.c.bf16 %v1405_v45, %v1393_v51 }
 0x1ce   : >> { %v1197_v57 = vpop.permute.xlu0 %1196  ;;  %v1416_v15 = vpop.permute.xlu1 %1415  ;;  %6100 = vmatprep.subr.bf16.mxu0 %v6099_v61  ;;  %v1587_v44 = vld [vmem:[#allocation2 + $0x500] sm:$0xff] }
 0x1cf   : >> { %v1205_v21 = vsel %vm1198_vm15, %v7867_v20, %v1197_v57  ;;  %v1417_v38 = vsel %vm653_vm0, %v7785_v33, %v1416_v15  ;;  %1426 = vst.msk [vmem:[#allocation2 + $0x570] sm:$0xff] %vm653_vm0, %v1416_v15  ;;  %v1524_v46 = vld [vmem:[#allocation2 + $0x308] sm:$0xff]  ;;  %6102 = vmatpush1.bf16.msra.mxu0 %v7770_v52 }
 0x1d0   : >> { %1219 = vst.msk [vmem:[#allocation2 + $0x378] sm:$0xff] %vm653_vm0, %v1205_v21  ;;  %v6122_v37 = vpack.c.bf16 %v1524_v46, %v1517_v42  ;;  %1801 = vmatprep.subr.mxu0 %v1417_v38 }
 0x1d2   : >> { %v1235_v18 = vpop.permute.xlu0 %1234  ;;  %6123 = vmatpush1.bf16.msra.mxu1 %v6122_v37  ;;  %v1273_v54 = vpop.permute.xlu1 %1272  ;;  %v1594_v31 = vld [vmem:[#allocation2 + $0x538] sm:$0xff] }
 0x1d3   : >> { %v1243_v16 = vsel %vm1236_vm5, %v7880_v32, %v1235_v18  ;;  %v1281_v20 = vsel %vm1274_vm6, %v7886_v43, %v1273_v54  ;;  %6124 = vmatprep.subr.bf16.mxu1 %v6650_v62  ;;  %1802 = vmatpush1.msra.mxu0 %v7790_v58  ;;  %vm9485_vm5 = vmmov %vm9481_vm1  ;;  %v1531_v23 = vld [vmem:[#allocation2 + $0x340] sm:$0xff]  ;;  %v6137_v35 = vpack.c.bf16 %v1594_v31, %v1587_v44 }
 0x1d4   : >> { %1257 = vst.msk [vmem:[#allocation2 + $0x3b0] sm:$0xff] %vm653_vm0, %v1243_v16  ;;  %1295 = vst.msk [vmem:[#allocation2 + $0x3e8] sm:$0xff] %vm653_vm0, %v1281_v20  ;;  %1818 = vmatmul.mubr.f32.vlgmr.msra.gmra.mrb[2].mxu0 %v6760_v0 }
 0x1d5   : >> { %5310 = vmatprep.mubr.msk.f32.mxu0 %vm1607_vm9, %v6775_v3  ;;  %vm9486_vm6 = vmmov %vm9482_vm2 }
 0x1d6   : >> { %v1311_v52 = vpop.permute.xlu0 %1310  ;;  %v1349_v33 = vpop.permute.xlu1 %1348  ;;  %v1601_v39 = vld [vmem:[#allocation2 + $0x570] sm:$0xff]  ;;  %vm9490_vm1 = vmmov %vm9482_vm2 }
 0x1d7   : >> { %v1319_v32 = vsel %vm1312_vm7, %v7899_v19, %v1311_v52  ;;  %v1357_v43 = vsel %vm9485_vm5, %v7905_v34, %v1349_v33  ;;  %v1538_v24 = vld [vmem:[#allocation2 + $0x378] sm:$0xff]  ;;  %v1573_v34 = vld [vmem:[#allocation2 + $0x490] sm:$0xff]  ;;  %vm9487_vm7 = vmmov %vm9482_vm2  ;;  %vm2077_vm5 = vcmask 982016  }
 0x1d8   : >> { %1333 = vst.msk [vmem:[#allocation2 + $0x420] sm:$0xff] %vm653_vm0, %v1319_v32  ;;  %1371 = vst.msk [vmem:[#allocation2 + $0x458] sm:$0xff] %vm653_vm0, %v1357_v43  ;;  %v6125_v58 = vpack.c.bf16 %v1538_v24, %v1531_v23  ;;  %v6134_v59 = vpack.c.bf16 %v1580_v36, %v1573_v34 }
 0x1d9   : >> { %vm9491_vm2 = vmmov %vm9490_vm1 }
 0x1da   : >> { %6126 = vmatpush1.bf16.msra.mxu1 %v6125_v58 }
 0x1db   : >> { %6127 = vmatprep.subr.bf16.mxu1 %v6650_v62  ;;  %v1545_v40 = vld [vmem:[#allocation2 + $0x3b0] sm:$0xff]  ;;  %v1552_v41 = vld [vmem:[#allocation2 + $0x3e8] sm:$0xff] }
 0x1dc   : >> { %v6128_v14 = vpack.c.bf16 %v1552_v41, %v1545_v40 }
 0x1de   : >> { %6129 = vmatpush1.bf16.msra.mxu1 %v6128_v14 }
 0x1df   : >> { %6130 = vmatprep.subr.bf16.mxu1 %v6650_v62  ;;  %v1559_v19 = vld [vmem:[#allocation2 + $0x420] sm:$0xff]  ;;  %v1566_v60 = vld [vmem:[#allocation2 + $0x458] sm:$0xff] }
 0x1e0   : >> { %v6131_v48 = vpack.c.bf16 %v1566_v60, %v1559_v19 }
 0x1e2   : >> { %6132 = vmatpush1.bf16.msra.mxu1 %v6131_v48 }
 0x1e3   : >> { %6133 = vmatprep.subr.bf16.mxu1 %v6650_v62 }
 0x1e6   : >> { %6135 = vmatpush1.bf16.msra.mxu1 %v6134_v59 }
 0x1e7   : >> { %6136 = vmatprep.subr.bf16.mxu1 %v6650_v62  ;;  %v1605_v51 = vpop.permute.xlu0 %1604 }
 0x1ea   : >> { %6138 = vmatpush1.bf16.msra.mxu1 %v6137_v35 }
 0x1eb   : >> { %1872 = vmatprep.subr.mxu1 %v6651_v50 }
 0x1ee   : >> { %1873 = vmatpush1.msra.mxu1 %v1601_v39 }
 0x1ef   : >> { %1889 = vmatmul.mubr.f32.vlgmr.msra.gmra.mrb[2].mxu1 %v6760_v0 }
 0x1f0   : >> { %5312 = vmatprep.mubr.msk.f32.mxu1 %vm1607_vm9, %v6775_v3 }
 0x222   : >> { %v1677_v63 = vpop.f32.mrb[0].mxu0 }
 0x223   : >> { %v1679_v56 = vpop.f32.mrb[1].mxu0  ;;  %v1678_v45 = vadd.f32 %v1677_v63, %v1605_v51 }
 0x224   : >> { %v1680_v47 = vadd.f32 %v1679_v56, %v1605_v51 }
 0x225   : >> { %v1894_v15 = vmax.f32 %v1678_v45, 0.0 }
 0x226   : >> { %v1895_v57 = vmax.f32 %v1680_v47, 0.0 }
 0x257   : >> { %v1748_v55 = vpop.f32.mrb[0].mxu1 }
 0x258   : >> { %v1749_v17 = vadd.f32 %v1748_v55, %v1605_v51  ;;  %v1750_v49 = vpop.f32.mrb[1].mxu1 }
 0x259   : >> { %v1751_v53 = vadd.f32 %v1750_v49, %v1605_v51 }
 0x25a   : >> { %v1896_v22 = vmax.f32 %v1749_v17, 0.0 }
 0x25b   : >> { %v1897_v61 = vmax.f32 %v1751_v53, 0.0 }
 0x25c   : >> { %1912 = vrot.lane.b32.xlu1 %v1896_v22, %s9452_s26 }
 0x25d   : >> { %1914 = vrot.lane.b32.xlu0 %v1897_v61, %s9452_s26 }
 0x260   : >> { %1910 = vrot.lane.b32.xlu1 %v1895_v57, %s9452_s26 }
 0x261   : >> { %1908 = vrot.lane.b32.xlu0 %v1894_v15, %s9452_s26 }
 0x2a7   : >> { %v1819_v21 = vpop.f32.mrb[2].mxu0 }
 0x2a8   : >> { %v1820_v38 = vadd.f32 %v1819_v21, %v1605_v51  ;;  %v1821_v42 = vpop.f32.mrb[3].mxu0 }
 0x2a9   : >> { %v1822_v37 = vadd.f32 %v1821_v42, %v1605_v51 }
 0x2aa   : >> { %v1898_v46 = vmax.f32 %v1820_v38, 0.0 }
 0x2ab   : >> { %v1899_v18 = vmax.f32 %v1822_v37, 0.0 }
 0x2ac   : >> { %1916 = vrot.lane.b32.xlu1 %v1898_v46, %s9452_s26 }
 0x2b0   : >> { %1918 = vrot.lane.b32.xlu1 %v1899_v18, %s9452_s26 }
 0x2c2   : >> { %v1890_v54 = vpop.f32.mrb[2].mxu1 }
 0x2c3   : >> { %v1891_v16 = vadd.f32 %v1890_v54, %v1605_v51  ;;  %v1892_v20 = vpop.f32.mrb[3].mxu1 }
 0x2c5   : >> { %v1900_v52 = vmax.f32 %v1891_v16, 0.0 }
 0x2c7   : >> { %1920 = vrot.lane.b32.xlu0 %v1900_v52, %s9452_s26 }
 0x2ce   : >> { %v1913_v33 = vpop.permute.xlu1 %1912 }
 0x2cf   : >> { %v1915_v32 = vpop.permute.xlu0 %1914 }
 0x2d0   : >> { %v1924_v43 = vsel %vm9486_vm6, %v1913_v33, %v1915_v32  ;;  %vm2214_vm6 = vcmask 457728  }
 0x2d1   : >> { %v1937_v23 = vmax.f32 %v1896_v22, %v1924_v43 }
 0x2d2   : >> { %v1911_v24 = vpop.permute.xlu1 %1910 }
 0x2d3   : >> { %v1923_v58 = vsel %vm9487_vm7, %v1911_v24, %v1913_v33  ;;  %1953 = vrot.lane.b32.xlu0 %v1937_v23, %s9455_s2  ;;  %v1909_v40 = vpop.permute.xlu0 %1908  ;;  %vm2186_vm7 = vcmask 474112  }
 0x2d4   : >> { %v1936_v41 = vmax.f32 %v1895_v57, %v1923_v58  ;;  %v1922_v14 = vsel %vm9488_vm13, %v1909_v40, %v1911_v24 }
 0x2d5   : >> { %v1935_v19 = vmax.f32 %v1894_v15, %v1922_v14 }
 0x2d6   : >> { %1951 = vrot.lane.b32.xlu1 %v1936_v41, %s9455_s2 }
 0x2d7   : >> { %1949 = vrot.lane.b32.xlu0 %v1935_v19, %s9455_s2 }
 0x31e   : >> { %v1917_v60 = vpop.permute.xlu1 %1916 }
 0x31f   : >> { %v1925_v48 = vsel %vm9489_vm3, %v1915_v32, %v1917_v60 }
 0x320   : >> { %v7984_v34 = vmax.f32 %v1897_v61, %v1925_v48 }
 0x322   : >> { %1955 = vrot.lane.b32.xlu1 %v7984_v34, %s9455_s2  ;;  %v1919_v36 = vpop.permute.xlu1 %1918 }
 0x323   : >> { %v1926_v35 = vsel %vm9491_vm2, %v1917_v60, %v1919_v36 }
 0x324   : >> { %v1939_v63 = vmax.f32 %v1898_v46, %v1926_v35 }
 0x339   : >> { %v1921_v59 = vpop.permute.xlu0 %1920 }
 0x33a   : >> { %v1927_v31 = vsel %vm9490_vm1, %v1919_v36, %v1921_v59  ;;  %v1941_v44 = vmax.f32 %v1900_v52, %v1921_v59 }
 0x33b   : >> { %v1940_v39 = vmax.f32 %v1899_v18, %v1927_v31 }
 0x33c   : >> { %1961 = vrot.lane.b32.xlu1 %v1941_v44, %s9455_s2 }
 0x33d   : >> { %1959 = vrot.lane.b32.xlu0 %v1940_v39, %s9455_s2 }
 0x340   : >> { %1957 = vrot.lane.b32.xlu1 %v1939_v63, %s9455_s2  ;;  %s6654_s2 = smov 56  }
 0x345   : >> { %v1954_v56 = vpop.permute.xlu0 %1953 }
 0x348   : >> { %v1952_v51 = vpop.permute.xlu1 %1951 }
 0x349   : >> { %v1964_v55 = vsel %vm818_vm4, %v1952_v51, %v1954_v56  ;;  %v1950_v17 = vpop.permute.xlu0 %1949 }
 0x34a   : >> { %v7994_v49 = vmax.f32 %v1936_v41, %v1964_v55  ;;  %v1963_v47 = vsel %vm818_vm4, %v1950_v17, %v1952_v51 }
 0x34b   : >> { %v7997_v53 = vmax.f32 %v1935_v19, %v1963_v47 }
 0x34c   : >> { %2020 = vrot.lane.b32.xlu1 %v7994_v49, %s9468_s22  ;;  %1996 = vrot.lane.b32.xlu0 %v7994_v49, %s9453_s28 }
 0x350   : >> { %2044 = vrot.lane.b32.xlu1 %v7994_v49, %s6652_s25  ;;  %1994 = vrot.lane.b32.xlu0 %v7997_v53, %s9453_s28 }
 0x354   : >> { %2018 = vrot.lane.b32.xlu1 %v7997_v53, %s9468_s22  ;;  %2042 = vrot.lane.b32.xlu0 %v7997_v53, %s6652_s25 }
 0x358   : >> { %2069 = vrot.lane.b32.xlu1 %v7994_v49, %s6653_s30  ;;  %2093 = vrot.lane.b32.xlu0 %v7997_v53, %s9465_s27 }
 0x35c   : >> { %2095 = vrot.lane.b32.xlu1 %v7994_v49, %s9465_s27  ;;  %2147 = vrot.lane.b32.xlu0 %v7997_v53, %s9467_s3 }
 0x360   : >> { %2067 = vrot.lane.b32.xlu1 %v7997_v53, %s6653_s30  ;;  %2202 = vrot.lane.b32.xlu0 %v7997_v53, %s6654_s2 }
 0x364   : >> { %2122 = vrot.lane.b32.xlu1 %v7994_v49, %s9466_s4 }
 0x368   : >> { %2149 = vrot.lane.b32.xlu1 %v7994_v49, %s9467_s3 }
 0x36c   : >> { %2120 = vrot.lane.b32.xlu1 %v7997_v53, %s9466_s4 }
 0x370   : >> { %2176 = vrot.lane.b32.xlu1 %v7994_v49, %s6655_s1 }
 0x374   : >> { %2204 = vrot.lane.b32.xlu1 %v7994_v49, %s6654_s2 }
 0x378   : >> { %2174 = vrot.lane.b32.xlu1 %v7997_v53, %s6655_s1 }
 0x394   : >> { %v1956_v45 = vpop.permute.xlu1 %1955 }
 0x395   : >> { %v1965_v22 = vsel %vm818_vm4, %v1954_v56, %v1956_v45 }
 0x396   : >> { %v8036_v61 = vmax.f32 %v1937_v23, %v1965_v22 }
 0x398   : >> { %1998 = vrot.lane.b32.xlu1 %v8036_v61, %s9453_s28  ;;  %2022 = vrot.lane.b32.xlu0 %v8036_v61, %s9468_s22 }
 0x39c   : >> { %2046 = vrot.lane.b32.xlu0 %v8036_v61, %s6652_s25 }
 0x3a0   : >> { %2071 = vrot.lane.b32.xlu0 %v8036_v61, %s6653_s30 }
 0x3a4   : >> { %2097 = vrot.lane.b32.xlu0 %v8036_v61, %s9465_s27 }
 0x3a8   : >> { %2124 = vrot.lane.b32.xlu0 %v8036_v61, %s9466_s4 }
 0x3ac   : >> { %2151 = vrot.lane.b32.xlu0 %v8036_v61, %s9467_s3 }
 0x3ae   : >> { %v1962_v57 = vpop.permute.xlu1 %1961 }
 0x3af   : >> { %v8052_v15 = vmax.f32 %v1941_v44, %v1962_v57  ;;  %v1960_v21 = vpop.permute.xlu0 %1959 }
 0x3b0   : >> { %v1968_v38 = vsel %vm818_vm4, %v1960_v21, %v1962_v57  ;;  %2178 = vrot.lane.b32.xlu0 %v8036_v61, %s6655_s1 }
 0x3b1   : >> { %v8057_v42 = vmax.f32 %v1940_v39, %v1968_v38  ;;  %2325 = vst.msk [vmem:[#allocation3 + $0x340] sm:$0xff] %vm1987_vm11, %v8052_v15 }
 0x3b2   : >> { %v1958_v46 = vpop.permute.xlu1 %1957 }
 0x3b3   : >> { %v1966_v37 = vsel %vm818_vm4, %v1956_v45, %v1958_v46  ;;  %v1967_v18 = vsel %vm818_vm4, %v1958_v46, %v1960_v21  ;;  %2234 = vst.msk [vmem:[#allocation3 + $0x1b0] sm:$0xff] %vm1987_vm11, %v8057_v42  ;;  %vm9492_vm4 = vcmask 1031168  }
 0x3b4   : >> { %v8066_v54 = vmax.f32 %v7984_v34, %v1966_v37  ;;  %v8068_v16 = vmax.f32 %v1939_v63, %v1967_v18  ;;  %2206 = vrot.lane.b32.xlu0 %v8036_v61, %s6654_s2  ;;  %vm9493_vm13 = vmmov %vm9492_vm4 }
 0x3b5   : >> { %vm9494_vm3 = vmmov %vm9492_vm4 }
 0x3b6   : >> { %2000 = vrot.lane.b32.xlu1 %v8066_v54, %s9453_s28  ;;  %1988 = vst.msk [vmem:[#allocation3 + $0x20] sm:$0xff] %vm1987_vm11, %v8068_v16  ;;  %vm9495_vm1 = vmmov %vm9494_vm3 }
 0x3b7   : >> { %vm9496_vm2 = vmmov %vm9495_vm1 }
 0x3b8   : >> { %2002 = vrot.lane.b32.xlu0 %v8068_v16, %s9453_s28 }
 0x3ba   : >> { %2024 = vrot.lane.b32.xlu1 %v8066_v54, %s9468_s22 }
 0x3bc   : >> { %2026 = vrot.lane.b32.xlu0 %v8068_v16, %s9468_s22 }
 0x3be   : >> { %2048 = vrot.lane.b32.xlu1 %v8066_v54, %s6652_s25  ;;  %v8084_v20 = vpop.permute.xlu1 %2020  ;;  %v8086_v52 = vpop.permute.xlu0 %1996 }
 0x3c0   : >> { %2050 = vrot.lane.b32.xlu0 %v8068_v16, %s6652_s25 }
 0x3c2   : >> { %2073 = vrot.lane.b32.xlu1 %v8066_v54, %s6653_s30  ;;  %v8092_v33 = vpop.permute.xlu1 %2044  ;;  %v1995_v32 = vpop.permute.xlu0 %1994 }
 0x3c3   : >> { %v8096_v43 = vsel %vm9492_vm4, %v1995_v32, %v8086_v52  ;;  %vm9497_vm4 = vmmov %vm9495_vm1 }
 0x3c4   : >> { %2075 = vrot.lane.b32.xlu0 %v8068_v16, %s6653_s30  ;;  %v6141_v32 = vpack.c.bf16 %v8096_v43, %v7997_v53 }
 0x3c6   : >> { %2099 = vrot.lane.b32.xlu1 %v8066_v54, %s9465_s27  ;;  %v2019_v23 = vpop.permute.xlu1 %2018  ;;  %v2043_v24 = vpop.permute.xlu0 %2042 }
 0x3c7   : >> { %v8104_v58 = vsel %vm653_vm0, %v2019_v23, %v8084_v20  ;;  %v8108_v40 = vsel %vm2052_vm8, %v2043_v24, %v8092_v33 }
 0x3c8   : >> { %2101 = vrot.lane.b32.xlu0 %v8068_v16, %s9465_s27  ;;  %v6145_v41 = vpack.c.bf16 %v8108_v40, %v8104_v58 }
 0x3ca   : >> { %2126 = vrot.lane.b32.xlu1 %v8066_v54, %s9466_s4  ;;  %v8116_v14 = vpop.permute.xlu1 %2069  ;;  %v2094_v19 = vpop.permute.xlu0 %2093 }
 0x3cc   : >> { %2128 = vrot.lane.b32.xlu0 %v8068_v16, %s9466_s4 }
 0x3ce   : >> { %2153 = vrot.lane.b32.xlu1 %v8066_v54, %s9467_s3  ;;  %v8122_v60 = vpop.permute.xlu1 %2095  ;;  %v2148_v44 = vpop.permute.xlu0 %2147 }
 0x3cf   : >> { %v8126_v48 = vsel %vm1008_vm10, %v2094_v19, %v8122_v60 }
 0x3d0   : >> { %2155 = vrot.lane.b32.xlu0 %v8068_v16, %s9467_s3 }
 0x3d2   : >> { %2180 = vrot.lane.b32.xlu1 %v8066_v54, %s6655_s1  ;;  %v2068_v34 = vpop.permute.xlu1 %2067  ;;  %v2203_v17 = vpop.permute.xlu0 %2202 }
 0x3d3   : >> { %v2078_v36 = vsel %vm2077_vm5, %v2068_v34, %v8116_v14 }
 0x3d4   : >> { %2182 = vrot.lane.b32.xlu0 %v8068_v16, %s6655_s1  ;;  %v6149_v59 = vpack.c.bf16 %v8126_v48, %v2078_v36 }
 0x3d6   : >> { %2208 = vrot.lane.b32.xlu1 %v8066_v54, %s6654_s2  ;;  %v2123_v31 = vpop.permute.xlu1 %2122 }
 0x3d8   : >> { %2210 = vrot.lane.b32.xlu0 %v8068_v16, %s6654_s2 }
 0x3da   : >> { %2235 = vrot.lane.b32.xlu1 %v8057_v42, %s9453_s28  ;;  %v2150_v35 = vpop.permute.xlu1 %2149 }
 0x3db   : >> { %v2159_v39 = vsel %vm1160_vm14, %v2148_v44, %v2150_v35 }
 0x3dc   : >> { %2245 = vrot.lane.b32.xlu0 %v8057_v42, %s9468_s22 }
 0x3de   : >> { %2255 = vrot.lane.b32.xlu1 %v8057_v42, %s6652_s25  ;;  %v2121_v63 = vpop.permute.xlu1 %2120 }
 0x3df   : >> { %v2132_v56 = vsel %vm1084_vm12, %v2121_v63, %v2123_v31 }
 0x3e0   : >> { %2103 = vrot.lane.b32.xlu0 %v8057_v42, %s9465_s27  ;;  %v6153_v51 = vpack.c.bf16 %v2159_v39, %v2132_v56 }
 0x3e2   : >> { %2265 = vrot.lane.b32.xlu1 %v8057_v42, %s6653_s30  ;;  %v2177_v55 = vpop.permute.xlu1 %2176 }
 0x3e4   : >> { %2130 = vrot.lane.b32.xlu0 %v8057_v42, %s9466_s4 }
 0x3e6   : >> { %2157 = vrot.lane.b32.xlu1 %v8057_v42, %s9467_s3  ;;  %v2205_v47 = vpop.permute.xlu1 %2204 }
 0x3e7   : >> { %v2215_v45 = vsel %vm2214_vm6, %v2203_v17, %v2205_v47 }
 0x3e8   : >> { %2184 = vrot.lane.b32.xlu0 %v8057_v42, %s6655_s1 }
 0x3ea   : >> { %2212 = vrot.lane.b32.xlu1 %v8057_v42, %s6654_s2  ;;  %v2175_v22 = vpop.permute.xlu1 %2174 }
 0x3eb   : >> { %v2187_v57 = vsel %vm2186_vm7, %v2175_v22, %v2177_v55 }
 0x3ec   : >> { %2326 = vrot.lane.b32.xlu0 %v8052_v15, %s9453_s28  ;;  %v6157_v44 = vpack.c.bf16 %v2215_v45, %v2187_v57 }
 0x3ee   : >> { %2336 = vrot.lane.b32.xlu1 %v8052_v15, %s9468_s22 }
 0x3f0   : >> { %2346 = vrot.lane.b32.xlu0 %v8052_v15, %s6652_s25 }
 0x3f2   : >> { %2356 = vrot.lane.b32.xlu1 %v8052_v15, %s6653_s30 }
 0x3f4   : >> { %2276 = vrot.lane.b32.xlu0 %v8052_v15, %s9465_s27 }
 0x3f6   : >> { %2285 = vrot.lane.b32.xlu1 %v8052_v15, %s9466_s4  ;;  %s5319_s4 = sshll.u32 %s6628_s20, 4  ;;  %s635_s20 = sadd.s32 1, %s6628_s20  }
 0x3f7   : >> { %p632_p5 = scmp.ge.s32.totalorder %s635_s20, 8  }
 0x3f8   : >> { %2294 = vrot.lane.b32.xlu0 %v8052_v15, %s9467_s3  ;;  %v3111_v0 = vld [vmem:[%s9327_s6 + $0x8] sm:$0xff] (%p632_p5)  ;;  %v5322_v1 = vld [vmem:[%s9327_s6 + $0x30] sm:$0xff] (%p632_p5)  ;;  %v6658_v6 = vmov (%p632_p5), 0.0  }
 0x3fa   : >> { %2303 = vrot.lane.b32.xlu1 %v8052_v15, %s6655_s1 }
 0x3fc   : >> { %2312 = vrot.lane.b32.xlu0 %v8052_v15, %s6654_s2 }
 0x3fe   : >> { %2493 = vperm.xlu1 %6578, %v6795_v7  }
 0x400   : >> { %2498 = vperm.xlu0 %6577, %v6800_v8  }
 0x40a   : >> { %v1999_v21 = vpop.permute.xlu1 %1998  ;;  %v2023_v38 = vpop.permute.xlu0 %2022 }
 0x40b   : >> { %v2005_v46 = vsel %vm9493_vm13, %v8086_v52, %v1999_v21  ;;  %v2029_v37 = vsel %vm653_vm0, %v8084_v20, %v2023_v38  ;;  %vm2862_vm13 = vcmask 138240  }
 0x40c   : >> { %v6139_v18 = vpack.c.bf16 %v2005_v46, %v7994_v49 }
 0x40e   : >> { %v2047_v23 = vpop.permute.xlu0 %2046  ;;  %6140 = vmatprep.subr.bf16.mxu0 %v6139_v18 }
 0x40f   : >> { %v2054_v15 = vsel %vm2052_vm8, %v8092_v33, %v2047_v23  ;;  %6142 = vmatpush1.bf16.msra.mxu0 %v6141_v32 }
 0x410   : >> { %v6143_v24 = vpack.c.bf16 %v2054_v15, %v2029_v37 }
 0x412   : >> { %v2072_v19 = vpop.permute.xlu0 %2071  ;;  %6144 = vmatprep.subr.bf16.mxu0 %v6143_v24 }
 0x413   : >> { %v2079_v52 = vsel %vm2077_vm5, %v8116_v14, %v2072_v19  ;;  %6146 = vmatpush1.bf16.msra.mxu0 %v6145_v41 }
 0x416   : >> { %v2098_v49 = vpop.permute.xlu0 %2097 }
 0x417   : >> { %v2106_v53 = vsel %vm1008_vm10, %v8122_v60, %v2098_v49 }
 0x418   : >> { %v6147_v20 = vpack.c.bf16 %v2106_v53, %v2079_v52 }
 0x41a   : >> { %v2125_v43 = vpop.permute.xlu0 %2124  ;;  %6148 = vmatprep.subr.bf16.mxu0 %v6147_v20 }
 0x41b   : >> { %v2133_v33 = vsel %vm1084_vm12, %v2123_v31, %v2125_v43  ;;  %6150 = vmatpush1.bf16.msra.mxu0 %v6149_v59 }
 0x41e   : >> { %v2152_v48 = vpop.permute.xlu0 %2151 }
 0x41f   : >> { %v2160_v34 = vsel %vm1160_vm14, %v2150_v35, %v2152_v48 }
 0x420   : >> { %v8201_v36 = vpack.c.bf16 %v2160_v34, %v2133_v33 }
 0x422   : >> { %v8203_v14 = vpop.permute.xlu0 %2178  ;;  %6152 = vmatprep.subr.bf16.mxu0 %v8201_v36 }
 0x423   : >> { %v2188_v58 = vsel %vm2186_vm7, %v2177_v55, %v8203_v14  ;;  %6154 = vmatpush1.bf16.msra.mxu0 %v6153_v51 }
 0x426   : >> { %v8208_v40 = vpop.permute.xlu0 %2206 }
 0x427   : >> { %v2216_v41 = vsel %vm2214_vm6, %v2205_v47, %v8208_v40 }
 0x428   : >> { %v2001_v60 = vpop.permute.xlu1 %2000  ;;  %v8212_v59 = vpack.c.bf16 %v2216_v41, %v2188_v58 }
 0x429   : >> { %v2006_v31 = vsel %vm9494_vm3, %v1999_v21, %v2001_v60  ;;  %vm3139_vm3 = vcmask (%p632_p5), 1042434  }
 0x42a   : >> { %v8215_v35 = vpop.permute.xlu0 %2002  ;;  %6156 = vmatprep.subr.bf16.mxu0 %v8212_v59  ;;  %v8219_v39 = vpack.c.bf16 %v2006_v31, %v8036_v61 }
 0x42b   : >> { %v2007_v63 = vsel %vm9495_vm1, %v2001_v60, %v8215_v35  ;;  %2017 = vst.msk [vmem:[#allocation3 + $0x48] sm:$0xff] %vm1987_vm11, %v8215_v35  ;;  %6158 = vmatpush1.bf16.msra.mxu0 %v6157_v44 }
 0x42c   : >> { %v2025_v56 = vpop.permute.xlu1 %2024  ;;  %6160 = vmatprep.subr.bf16.mxu0 %v8219_v39  ;;  %v8227_v51 = vpack.c.bf16 %v2007_v63, %v8066_v54 }
 0x42d   : >> { %v2030_v55 = vsel %vm653_vm0, %v2023_v38, %v2025_v56 }
 0x42e   : >> { %v8230_v17 = vpop.permute.xlu0 %2026  ;;  %6188 = vmatprep.subr.bf16.mxu1 %v8227_v51 }
 0x42f   : >> { %v2031_v61 = vsel %vm653_vm0, %v2025_v56, %v8230_v17  ;;  %2041 = vst.msk [vmem:[#allocation3 + $0x70] sm:$0xff] %vm1987_vm11, %v8230_v17  ;;  %6162 = vmatpush1.bf16.msra.mxu0 %v6139_v18  ;;  %6190 = vmatpush1.bf16.msra.mxu1 %v8219_v39 }
 0x430   : >> { %v2049_v47 = vpop.permute.xlu1 %2048 }
 0x431   : >> { %v2055_v45 = vsel %vm2052_vm8, %v2047_v23, %v2049_v47 }
 0x432   : >> { %v8239_v54 = vpop.permute.xlu0 %2050  ;;  %v8241_v22 = vpack.c.bf16 %v2055_v45, %v2030_v55 }
 0x433   : >> { %v2056_v57 = vsel %vm2052_vm8, %v2049_v47, %v8239_v54  ;;  %2066 = vst.msk [vmem:[#allocation3 + $0x98] sm:$0xff] %vm1987_vm11, %v8239_v54 }
 0x434   : >> { %v2074_v21 = vpop.permute.xlu1 %2073  ;;  %6164 = vmatprep.subr.bf16.mxu0 %v8241_v22  ;;  %v8248_v38 = vpack.c.bf16 %v2056_v57, %v2031_v61 }
 0x435   : >> { %v8251_v46 = vsel %vm2077_vm5, %v2072_v19, %v2074_v21  ;;  %6166 = vmatpush1.bf16.msra.mxu0 %v6143_v24 }
 0x436   : >> { %v8253_v37 = vpop.permute.xlu0 %2075  ;;  %6192 = vmatprep.subr.bf16.mxu1 %v8248_v38 }
 0x437   : >> { %v8258_v18 = vsel %vm2077_vm5, %v2074_v21, %v8253_v37  ;;  %2091 = vst.msk [vmem:[#allocation3 + $0xc0] sm:$0xff] %vm1987_vm11, %v8253_v37  ;;  %6194 = vmatpush1.bf16.msra.mxu1 %v8241_v22 }
 0x438   : >> { %v2100_v32 = vpop.permute.xlu1 %2099 }
 0x439   : >> { %v2107_v23 = vsel %vm1008_vm10, %v2098_v49, %v2100_v32 }
 0x43a   : >> { %v2102_v15 = vpop.permute.xlu0 %2101  ;;  %v6167_v19 = vpack.c.bf16 %v2107_v23, %v8251_v46 }
 0x43b   : >> { %v2108_v24 = vsel %vm1008_vm10, %v2100_v32, %v2102_v15 }
 0x43c   : >> { %v2127_v52 = vpop.permute.xlu1 %2126  ;;  %6168 = vmatprep.subr.bf16.mxu0 %v6167_v19  ;;  %v8267_v53 = vpack.c.bf16 %v2108_v24, %v8258_v18 }
 0x43d   : >> { %v2134_v33 = vsel %vm1084_vm12, %v2125_v43, %v2127_v52  ;;  %6170 = vmatpush1.bf16.msra.mxu0 %v6147_v20 }
 0x43e   : >> { %v2129_v34 = vpop.permute.xlu0 %2128  ;;  %6196 = vmatprep.subr.bf16.mxu1 %v8267_v53 }
 0x43f   : >> { %v2135_v58 = vsel %vm1084_vm12, %v2127_v52, %v2129_v34  ;;  %6198 = vmatpush1.bf16.msra.mxu1 %v6167_v19 }
 0x440   : >> { %v2154_v49 = vpop.permute.xlu1 %2153 }
 0x441   : >> { %v2161_v41 = vsel %vm1160_vm14, %v2152_v48, %v2154_v49 }
 0x442   : >> { %v2156_v60 = vpop.permute.xlu0 %2155  ;;  %v6171_v31 = vpack.c.bf16 %v2161_v41, %v2134_v33 }
 0x443   : >> { %v2162_v44 = vsel %vm1160_vm14, %v2154_v49, %v2156_v60 }
 0x444   : >> { %v2181_v63 = vpop.permute.xlu1 %2180  ;;  %6172 = vmatprep.subr.bf16.mxu0 %v6171_v31  ;;  %v8274_v56 = vpack.c.bf16 %v2162_v44, %v2135_v58 }
 0x445   : >> { %v2189_v20 = vsel %vm2186_vm7, %v8203_v14, %v2181_v63  ;;  %6174 = vmatpush1.bf16.msra.mxu0 %v8201_v36 }
 0x446   : >> { %v2183_v43 = vpop.permute.xlu0 %2182  ;;  %6200 = vmatprep.subr.bf16.mxu1 %v8274_v56 }
 0x447   : >> { %v2190_v55 = vsel %vm2186_vm7, %v2181_v63, %v2183_v43  ;;  %6202 = vmatpush1.bf16.msra.mxu1 %v6171_v31 }
 0x448   : >> { %v2209_v48 = vpop.permute.xlu1 %2208 }
 0x449   : >> { %v2217_v61 = vsel %vm2214_vm6, %v8208_v40, %v2209_v48 }
 0x44a   : >> { %v2211_v47 = vpop.permute.xlu0 %2210  ;;  %v6175_v45 = vpack.c.bf16 %v2217_v61, %v2189_v20 }
 0x44b   : >> { %v2218_v57 = vsel %vm2214_vm6, %v2209_v48, %v2211_v47 }
 0x44c   : >> { %v8284_v21 = vpop.permute.xlu1 %2235  ;;  %6176 = vmatprep.subr.bf16.mxu0 %v6175_v45  ;;  %v8286_v14 = vpack.c.bf16 %v2218_v57, %v2190_v55  ;;  %v2390_v55 = vld [vmem:[#allocation3 + $0xc0] sm:$0xff] }
 0x44d   : >> { %v2237_v36 = vsel %vm9496_vm2, %v8215_v35, %v8284_v21  ;;  %2244 = vst.msk [vmem:[#allocation3 + $0x1d8] sm:$0xff] %vm1987_vm11, %v8284_v21  ;;  %6178 = vmatpush1.bf16.msra.mxu0 %v8212_v59  ;;  %vm3142_vm2 = vcmask (%p632_p5), 1043459  }
 0x44e   : >> { %6180 = vmatprep.subr.bf16.mxu0 %v8227_v51  ;;  %v8295_v40 = vpop.permute.xlu0 %2245  ;;  %6204 = vmatprep.subr.bf16.mxu1 %v8286_v14  ;;  %v8299_v32 = vpack.c.bf16 %v2237_v36, %v8068_v16 }
 0x44f   : >> { %v2247_v23 = vsel %vm653_vm0, %v8230_v17, %v8295_v40  ;;  %2254 = vst.msk [vmem:[#allocation3 + $0x200] sm:$0xff] %vm1987_vm11, %v8295_v40  ;;  %6206 = vmatpush1.bf16.msra.mxu1 %v6175_v45 }
 0x450   : >> { %v8306_v35 = vpop.permute.xlu1 %2255  ;;  %6208 = vmatprep.subr.bf16.mxu1 %v8299_v32 }
 0x451   : >> { %v2257_v59 = vsel %vm2052_vm8, %v8239_v54, %v8306_v35  ;;  %2264 = vst.msk [vmem:[#allocation3 + $0x228] sm:$0xff] %vm1987_vm11, %v8306_v35  ;;  %6182 = vmatpush1.bf16.msra.mxu0 %v8219_v39 }
 0x452   : >> { %6184 = vmatprep.subr.bf16.mxu0 %v8248_v38  ;;  %v8316_v16 = vpop.permute.xlu0 %2103  ;;  %v8318_v17 = vpack.c.bf16 %v2257_v59, %v2247_v23 }
 0x453   : >> { %v2109_v19 = vsel %vm1008_vm10, %v2102_v15, %v8316_v16  ;;  %6210 = vmatpush1.bf16.msra.mxu1 %v8227_v51  ;;  %v2375_v51 = vld [vmem:[#allocation3 + $0x48] sm:$0xff] }
 0x454   : >> { %v8323_v24 = vpop.permute.xlu1 %2265  ;;  %2119 = vst.msk [vmem:[#allocation3 + $0xe8] sm:$0xff] %vm1987_vm11, %v2109_v19  ;;  %6212 = vmatprep.subr.bf16.mxu1 %v8318_v17 }
 0x455   : >> { %v8330_v39 = vsel %vm2077_vm5, %v8253_v37, %v8323_v24  ;;  %2274 = vst.msk [vmem:[#allocation3 + $0x250] sm:$0xff] %vm1987_vm11, %v8323_v24  ;;  %6186 = vmatpush1.bf16.msra.mxu0 %v8241_v22  ;;  %v2370_v37 = vld [vmem:[#allocation3 + $0x20] sm:$0xff] }
 0x456   : >> { %2555 = vmatprep.subr.mxu0 %v8258_v18  ;;  %v8336_v54 = vpop.permute.xlu0 %2130  ;;  %v6215_v15 = vpack.c.bf16 %v2109_v19, %v8330_v39  ;;  %v6236_v18 = vpack.c.bf16 %v2375_v51, %v2370_v37  ;;  %v2425_v37 = vld [vmem:[#allocation3 + $0x1d8] sm:$0xff] }
 0x457   : >> { %v2136_v52 = vsel %vm1084_vm12, %v2129_v34, %v8336_v54  ;;  %6214 = vmatpush1.bf16.msra.mxu1 %v8248_v38  ;;  %v2385_v38 = vld [vmem:[#allocation3 + $0x98] sm:$0xff] }
 0x458   : >> { %v8342_v33 = vpop.permute.xlu1 %2157  ;;  %2146 = vst.msk [vmem:[#allocation3 + $0x110] sm:$0xff] %vm1987_vm11, %v2136_v52  ;;  %6216 = vmatprep.subr.bf16.mxu1 %v6215_v15 }
 0x459   : >> { %v2163_v22 = vsel %vm1160_vm14, %v2156_v60, %v8342_v33  ;;  %2556 = vmatpush1.msra.mxu0 %v8251_v46  ;;  %v2380_v46 = vld [vmem:[#allocation3 + $0x70] sm:$0xff] }
 0x45a   : >> { %2173 = vst.msk [vmem:[#allocation3 + $0x138] sm:$0xff] %vm1987_vm11, %v2163_v22  ;;  %2572 = vmatmul.mubr.f32.vlgmr.msra.gmra.mrb[4].mxu0 %v6770_v2  ;;  %6235 = vmatprep.subr.bf16.mxu0 %v6650_v62  ;;  %v8351_v34 = vpop.permute.xlu0 %2184  ;;  %v6219_v58 = vpack.c.bf16 %v2163_v22, %v2136_v52  ;;  %v6239_v31 = vpack.c.bf16 %v2385_v38, %v2380_v46 }
 0x45b   : >> { %v2191_v49 = vsel %vm2186_vm7, %v2183_v43, %v8351_v34  ;;  %6237 = vmatpush1.bf16.msra.mxu0 %v6236_v18  ;;  %5311 = vmatprep.mubr.msk.f32.mxu0 %vm1607_vm9, %v6785_v5  ;;  %v2395_v63 = vld [vmem:[#allocation3 + $0xe8] sm:$0xff]  ;;  %v2420_v18 = vld [vmem:[#allocation3 + $0x1b0] sm:$0xff] }
 0x45c   : >> { %v8357_v41 = vpop.permute.xlu1 %2212  ;;  %2201 = vst.msk [vmem:[#allocation3 + $0x160] sm:$0xff] %vm1987_vm11, %v2191_v49  ;;  %6238 = vmatprep.subr.bf16.mxu0 %v6650_v62  ;;  %6218 = vmatpush1.bf16.msra.mxu1 %v8267_v53  ;;  %v6242_v61 = vpack.c.bf16 %v2395_v63, %v2390_v55  ;;  %v2440_v46 = vld [vmem:[#allocation3 + $0x250] sm:$0xff] }
 0x45d   : >> { %v2219_v60 = vsel %vm2214_vm6, %v2211_v47, %v8357_v41  ;;  %6220 = vmatprep.subr.bf16.mxu1 %v6219_v58  ;;  %v2435_v58 = vld [vmem:[#allocation3 + $0x228] sm:$0xff] }
 0x45e   : >> { %2229 = vst.msk [vmem:[#allocation3 + $0x188] sm:$0xff] %vm1987_vm11, %v2219_v60  ;;  %2578 = vmatmul.mubr.f32.gmra.mrb[6].mxu0 %v6780_v4  ;;  %v2327_v44 = vpop.permute.xlu0 %2326  ;;  %v6223_v20 = vpack.c.bf16 %v2219_v60, %v2191_v49  ;;  %v2430_v49 = vld [vmem:[#allocation3 + $0x200] sm:$0xff] }
 0x45f   : >> { %v2328_v43 = vsel %vm9497_vm4, %v8284_v21, %v2327_v44  ;;  %2335 = vst.msk [vmem:[#allocation3 + $0x368] sm:$0xff] %vm1987_vm11, %v2327_v44  ;;  %6240 = vmatpush1.bf16.msra.mxu0 %v6239_v31  ;;  %5314 = vmatprep.mubr.msk.f32.mxu0 %vm1607_vm9, %v6775_v3  ;;  %vm3145_vm4 = vcmask (%p632_p5), 1044484  }
 0x460   : >> { %v2337_v53 = vpop.permute.xlu1 %2336  ;;  %6241 = vmatprep.subr.bf16.mxu0 %v6650_v62  ;;  %6222 = vmatpush1.bf16.msra.mxu1 %v8274_v56  ;;  %v6227_v21 = vpack.c.bf16 %v2328_v43, %v8057_v42  ;;  %v2400_v56 = vld [vmem:[#allocation3 + $0x110] sm:$0xff] }
 0x461   : >> { %v2338_v48 = vsel %vm653_vm0, %v8295_v40, %v2337_v53  ;;  %2345 = vst.msk [vmem:[#allocation3 + $0x390] sm:$0xff] %vm1987_vm11, %v2337_v53  ;;  %6224 = vmatprep.subr.bf16.mxu1 %v6223_v20  ;;  %v2405_v45 = vld [vmem:[#allocation3 + $0x138] sm:$0xff]  ;;  %v2470_v53 = vld [vmem:[#allocation3 + $0x340] sm:$0xff]  ;;  %vm9521_vm0 = vmmov %vm9495_vm1  ;;  %vm6657_vm1 = vmmov (%p632_p5), 0  }
 0x462   : >> { %v2347_v47 = vpop.permute.xlu0 %2346  ;;  %v6245_v23 = vpack.c.bf16 %v2405_v45, %v2400_v56 }
 0x463   : >> { %v2348_v57 = vsel %vm2052_vm8, %v8306_v35, %v2347_v47  ;;  %2355 = vst.msk [vmem:[#allocation3 + $0x3b8] sm:$0xff] %vm1987_vm11, %v2347_v47  ;;  %6243 = vmatpush1.bf16.msra.mxu0 %v6242_v61  ;;  %vm2869_vm8 = vcmask 1040384  }
 0x464   : >> { %v2357_v36 = vpop.permute.xlu1 %2356  ;;  %6244 = vmatprep.subr.bf16.mxu0 %v6650_v62  ;;  %6226 = vmatpush1.bf16.msra.mxu1 %v8286_v14  ;;  %v6231_v42 = vpack.c.bf16 %v2348_v57, %v2338_v48  ;;  %v2410_v14 = vld [vmem:[#allocation3 + $0x160] sm:$0xff] }
 0x465   : >> { %v2358_v40 = vsel %vm2077_vm5, %v8323_v24, %v2357_v36  ;;  %2365 = vst.msk [vmem:[#allocation3 + $0x3e0] sm:$0xff] %vm1987_vm11, %v2357_v36  ;;  %6228 = vmatprep.subr.bf16.mxu1 %v6227_v21  ;;  %v2415_v35 = vld [vmem:[#allocation3 + $0x188] sm:$0xff]  ;;  %vm9529_vm5 = vmmov %vm9521_vm0 }
 0x466   : >> { %v2277_v59 = vpop.permute.xlu0 %2276  ;;  %v6248_v15 = vpack.c.bf16 %v2415_v35, %v2410_v14  ;;  %v2475_v43 = vld [vmem:[#allocation3 + $0x368] sm:$0xff] }
 0x467   : >> { %v2278_v19 = vsel %vm1008_vm10, %v8316_v16, %v2277_v59  ;;  %6246 = vmatpush1.bf16.msra.mxu0 %v6245_v23  ;;  %v6266_v55 = vpack.c.bf16 %v2475_v43, %v2470_v53  ;;  %v6277_v53 = vpack.c.bf16 %v6820_v12, %v6815_v11 }
 0x468   : >> { %v2286_v51 = vpop.permute.xlu1 %2285  ;;  %2284 = vst.msk [vmem:[#allocation3 + $0x278] sm:$0xff] %vm1987_vm11, %v2278_v19  ;;  %6247 = vmatprep.subr.bf16.mxu0 %v6650_v62  ;;  %6230 = vmatpush1.bf16.msra.mxu1 %v8299_v32  ;;  %v2480_v61 = vld [vmem:[#allocation3 + $0x390] sm:$0xff] }
 0x469   : >> { %v2287_v24 = vsel %vm1084_vm12, %v8336_v54, %v2286_v51  ;;  %6232 = vmatprep.subr.bf16.mxu1 %v6231_v42  ;;  %v6251_v54 = vpack.c.bf16 %v2425_v37, %v2420_v18  ;;  %vm9523_vm12 = vmmov %vm9521_vm0 }
 0x46a   : >> { %2293 = vst.msk [vmem:[#allocation3 + $0x2a0] sm:$0xff] %vm1987_vm11, %v2287_v24  ;;  %v2295_v52 = vpop.permute.xlu0 %2294  ;;  %v2485_v48 = vld [vmem:[#allocation3 + $0x3b8] sm:$0xff] }
 0x46b   : >> { %v2296_v16 = vsel %vm1160_vm14, %v8342_v33, %v2295_v52  ;;  %6249 = vmatpush1.bf16.msra.mxu0 %v6248_v15  ;;  %v6269_v47 = vpack.c.bf16 %v2485_v48, %v2480_v61  ;;  %v6279_v61 = vpack.c.bf16 %v6920_v30, %v6915_v29  ;;  %vm9524_vm14 = vmmov %vm9521_vm0 }
 0x46c   : >> { %v2304_v22 = vpop.permute.xlu1 %2303  ;;  %2302 = vst.msk [vmem:[#allocation3 + $0x2c8] sm:$0xff] %vm1987_vm11, %v2296_v16  ;;  %6250 = vmatprep.subr.bf16.mxu0 %v6650_v62  ;;  %6234 = vmatpush1.bf16.msra.mxu1 %v8318_v17  ;;  %v6254_v17 = vpack.c.bf16 %v2435_v58, %v2430_v49  ;;  %v2490_v45 = vld [vmem:[#allocation3 + $0x3e0] sm:$0xff] }
 0x46d   : >> { %v2305_v32 = vsel %vm2186_vm7, %v8351_v34, %v2304_v22  ;;  %2632 = vmatprep.subr.mxu1 %v2358_v40  ;;  %vm9531_vm7 = vmmov %vm9521_vm0 }
 0x46e   : >> { %2311 = vst.msk [vmem:[#allocation3 + $0x2f0] sm:$0xff] %vm1987_vm11, %v2305_v32  ;;  %v2313_v38 = vpop.permute.xlu0 %2312 }
 0x46f   : >> { %v2314_v33 = vsel %vm2214_vm6, %v8357_v41, %v2313_v38  ;;  %6252 = vmatpush1.bf16.msra.mxu0 %v6251_v54  ;;  %v2445_v34 = vld [vmem:[#allocation3 + $0x278] sm:$0xff]  ;;  %vm9530_vm6 = vmmov %vm9521_vm0 }
 0x470   : >> { %2320 = vst.msk [vmem:[#allocation3 + $0x318] sm:$0xff] %vm1987_vm11, %v2314_v33  ;;  %6253 = vmatprep.subr.bf16.mxu0 %v6650_v62  ;;  %2633 = vmatpush1.msra.mxu1 %v8330_v39  ;;  %v6257_v41 = vpack.c.bf16 %v2445_v34, %v2440_v46  ;;  %vm9525_vm11 = vmmov %vm9521_vm0 }
 0x471   : >> { %2649 = vmatmul.mubr.f32.vlgmr.msra.gmra.mrb[4].mxu1 %v6770_v2  ;;  %v2450_v31 = vld [vmem:[#allocation3 + $0x2a0] sm:$0xff] }
 0x472   : >> { %5313 = vmatprep.mubr.msk.f32.mxu1 %vm1607_vm9, %v6785_v5 }
 0x473   : >> { %6255 = vmatpush1.bf16.msra.mxu0 %v6254_v17  ;;  %v2455_v60 = vld [vmem:[#allocation3 + $0x2c8] sm:$0xff] }
 0x474   : >> { %6256 = vmatprep.subr.bf16.mxu0 %v6650_v62  ;;  %v6260_v39 = vpack.c.bf16 %v2455_v60, %v2450_v31 }
 0x475   : >> { %2655 = vmatmul.mubr.f32.gmra.mrb[6].mxu1 %v6780_v4  ;;  %v2460_v63 = vld [vmem:[#allocation3 + $0x2f0] sm:$0xff] }
 0x477   : >> { %6258 = vmatpush1.bf16.msra.mxu0 %v6257_v41  ;;  %v2465_v44 = vld [vmem:[#allocation3 + $0x318] sm:$0xff] }
 0x478   : >> { %6259 = vmatprep.subr.bf16.mxu0 %v6650_v62  ;;  %v6263_v20 = vpack.c.bf16 %v2465_v44, %v2460_v63  ;;  %v6273_v44 = vpack.c.bf16 %v6810_v10, %v6805_v9  ;;  %v6275_v63 = vpack.c.bf16 %v6910_v28, %v6905_v27 }
 0x47b   : >> { %6261 = vmatpush1.bf16.msra.mxu0 %v6260_v39  ;;  %v6271_v39 = vpack.c.bf16 %v6900_v26, %v6895_v25 }
 0x47c   : >> { %6262 = vmatprep.subr.bf16.mxu0 %v6650_v62 }
 0x47d   : >> { %v2494_v40 = vpop.permute.xlu1 %2493  ;;  %6272 = vmatprep.subr.bf16.mxu1 %v6271_v39  ;;  %v9509_v39 = vld [vmem:[#allocation10_spill] sm:$0xff] }
 0x47e   : >> { %6274 = vmatpush3.bf16.msra.mxu1 %v6273_v44  ;;  %v9510_v44 = vld [vmem:[#allocation11_spill] sm:$0xff] }
 0x47f   : >> { %6264 = vmatpush1.bf16.msra.mxu0 %v6263_v20  ;;  %v2499_v19 = vpop.permute.xlu0 %2498  ;;  %6276 = vmatprep.subr.bf16.mxu1 %v6275_v63  ;;  %v6293_v63 = vpack.c.bf16 %v9510_v44, %v9509_v39 }
 0x480   : >> { %6265 = vmatprep.subr.bf16.mxu0 %v6650_v62 }
 0x482   : >> { %6278 = vmatpush3.bf16.msra.mxu1 %v6277_v53  ;;  %v9512_v53 = vld [vmem:[#allocation23_spill] sm:$0xff] }
 0x483   : >> { %6267 = vmatpush1.bf16.msra.mxu0 %v6266_v55  ;;  %6280 = vmatprep.subr.bf16.mxu1 %v6279_v61  ;;  %v9513_v61 = vld [vmem:[#allocation12_spill] sm:$0xff] }
 0x484   : >> { %6268 = vmatprep.subr.bf16.mxu0 %v6650_v62 }
 0x487   : >> { %6270 = vmatpush1.bf16.msra.mxu0 %v6269_v47 }
 0x488   : >> { %2709 = vmatprep.subr.mxu0 %v6651_v50 }
 0x48b   : >> { %2710 = vmatpush1.msra.mxu0 %v2490_v45  ;;  %v9498_v45 = vld [vmem:[#allocation5_spill] sm:$0xff] }
 0x48c   : >> { %2726 = vmatmul.mubr.f32.vlgmr.msra.gmra.mrb[8].mxu0 %v6770_v2  ;;  %v5323_v2 = vld [vmem:[%s9327_s6 + $0x38] sm:$0xff] (%p632_p5) }
 0x48d   : >> { %5315 = vmatprep.mubr.msk.f32.mxu0 %vm1607_vm9, %v6785_v5  ;;  %vm9522_vm9 = vmmov %vm9521_vm0  ;;  %v3113_v5 = vld [vmem:[%s9327_s6 + $0x18] sm:$0xff] (%p632_p5)  ;;  %v6343_v8 = vpack.c.bf16 (%p632_p5), %v5323_v2, %v5322_v1 }
 0x490   : >> { %2731 = vmatmul.mubr.f32.gmra.mrb[10].mxu0 %v6780_v4  ;;  %v3112_v4 = vld [vmem:[%s9327_s6 + $0x10] sm:$0xff] (%p632_p5) }
 0x491   : > { %v6349_v12 = vpack.c.bf16 (%p632_p5), %v3113_v5, %v3112_v4  ;;  %v5333_v5 = vld [vmem:[%s9327_s6 + $0x70] sm:$0xff] (%p632_p5) }
 0x52d   : >> { %v2573_v57 = vpop.f32.mrb[4].mxu0 }
 0x52e   : >> { %v2575_v21 = vpop.f32.mrb[5].mxu0  ;;  %v8422_v59 = vadd.f32 %v2573_v57, %v2494_v40  ;;  %v6281_v57 = vpack.c.bf16 %v9498_v45, %v6825_v13  ;;  %v9514_v45 = vld [vmem:[#allocation13_spill] sm:$0xff] }
 0x52f   : >> { %v8420_v62 = vadd.f32 %v2575_v21, %v2494_v40  ;;  %v9499_v21 = vld [vmem:[#allocation16_spill] sm:$0xff] }
 0x530   : >> { %v2736_v52 = vmax.f32 %v8422_v59, 0.0  ;;  %6282 = vmatpush3.bf16.msra.mxu1 %v6281_v57  ;;  %v6297_v57 = vpack.c.bf16 %v9514_v45, %v9513_v61 }
 0x531   : >> { %v2579_v36 = vpop.f32.mrb[6].mxu0  ;;  %v2737_v14 = vmax.f32 %v8420_v62, 0.0 }
 0x532   : >> { %v2581_v56 = vpop.f32.mrb[7].mxu0  ;;  %v8432_v15 = vadd.f32 %v2579_v36, %v2499_v19  ;;  %v9500_v36 = vld [vmem:[#allocation17_spill] sm:$0xff] }
 0x533   : >> { %v8428_v51 = vadd.f32 %v2581_v56, %v2499_v19  ;;  %v6283_v56 = vpack.c.bf16 %v9500_v36, %v9499_v21  ;;  %v9515_v21 = vld [vmem:[#allocation24_spill] sm:$0xff]  ;;  %v9516_v36 = vld [vmem:[#allocation25_spill] sm:$0xff] }
 0x534   : >> { %v2741_v49 = vmax.f32 %v8432_v15, 0.0 }
 0x535   : >> { %v2742_v58 = vmax.f32 %v8428_v51, 0.0  ;;  %6284 = vmatprep.subr.bf16.mxu1 %v6283_v56  ;;  %v6299_v56 = vpack.c.bf16 %v9516_v36, %v9515_v21  ;;  %v9528_v51 = vld [vmem:[#allocation60_spill] sm:$0xff] }
 0x544   : >> { %v2650_v23 = vpop.f32.mrb[4].mxu1 }
 0x545   : >> { %v8424_v50 = vadd.f32 %v2650_v23, %v2494_v40  ;;  %v2652_v35 = vpop.f32.mrb[5].mxu1  ;;  %v9502_v23 = vld [vmem:[#allocation7_spill] sm:$0xff] }
 0x546   : >> { %v8426_v42 = vadd.f32 %v2652_v35, %v2494_v40 }
 0x547   : >> { %v2738_v24 = vmax.f32 %v8424_v50, 0.0 }
 0x548   : >> { %v2739_v37 = vmax.f32 %v8426_v42, 0.0  ;;  %v2656_v16 = vpop.f32.mrb[6].mxu1 }
 0x549   : >> { %v6579_v22 = vpack.i.bf16 %v2738_v24, %v2737_v14  ;;  %v8440_v18 = vadd.f32 %v2656_v16, %v2499_v19  ;;  %v2658_v32 = vpop.f32.mrb[7].mxu1  ;;  %v9504_v16 = vld [vmem:[#allocation19_spill] sm:$0xff] }
 0x54a   : >> { %v6584_v54 = vpack.i.bf16 %v2736_v52, %v2739_v37  ;;  %v8446_v38 = vadd.f32 %v2658_v32, %v2499_v19  ;;  %v9505_v32 = vld [vmem:[#allocation8_spill] sm:$0xff] }
 0x54b   : >> { %v2743_v33 = vmax.f32 %v8440_v18, 0.0  ;;  %6580 = vrot.lane.b32.xlu1 %v6579_v22, %s9453_s28 }
 0x54c   : >> { %v2744_v17 = vmax.f32 %v8446_v38, 0.0  ;;  %6585 = vrot.lane.b32.xlu0 %v6584_v54, %s9453_s28  ;;  %v9506_v54 = vld [vmem:[#allocation9_spill] sm:$0xff]  ;;  %v9532_v38 = vld [vmem:[#allocation26_spill] sm:$0xff] }
 0x54d   : >> { %v6589_v34 = vpack.i.bf16 %v2743_v33, %v2742_v58 }
 0x54e   : >> { %v6594_v46 = vpack.i.bf16 %v2741_v49, %v2744_v17 }
 0x54f   : >> { %6590 = vrot.lane.b32.xlu1 %v6589_v34, %s9453_s28  ;;  %v6289_v34 = vpack.c.bf16 %v9506_v54, %v9505_v32 }
 0x550   : >> { %6595 = vrot.lane.b32.xlu0 %v6594_v46, %s9453_s28  ;;  %v9507_v46 = vld [vmem:[#allocation20_spill] sm:$0xff] }
 0x55f   : >> { %v2727_v41 = vpop.f32.mrb[8].mxu0 }
 0x560   : >> { %v8464_v60 = vadd.f32 %v2727_v41, %v2494_v40  ;;  %v2729_v31 = vpop.f32.mrb[9].mxu0  ;;  %v9501_v40 = vld [vmem:[#allocation6_spill] sm:$0xff]  ;;  %v9508_v41 = vld [vmem:[#allocation21_spill] sm:$0xff] }
 0x561   : >> { %v6285_v35 = vpack.c.bf16 %v9502_v23, %v9501_v40  ;;  %v6291_v31 = vpack.c.bf16 %v9508_v41, %v9507_v46  ;;  %v9517_v40 = vld [vmem:[#allocation14_spill] sm:$0xff]  ;;  %v9518_v23 = vld [vmem:[#allocation15_spill] sm:$0xff] }
 0x562   : >> { %v2740_v20 = vmax.f32 %v8464_v60, 0.0 }
 0x563   : >> { %v2732_v43 = vpop.f32.mrb[10].mxu0  ;;  %6286 = vmatpush3.bf16.msra.mxu1 %v6285_v35  ;;  %v6301_v35 = vpack.c.bf16 %v9518_v23, %v9517_v40  ;;  %v9527_v40 = vld [vmem:[#allocation59_spill] sm:$0xff] }
 0x564   : >> { %v8475_v55 = vadd.f32 %v2732_v43, %v2499_v19  ;;  %2764 = vrot.lane.b32.xlu1 %v2740_v20, %s9453_s28  ;;  %v2734_v48 = vpop.f32.mrb[11].mxu0  ;;  %v9503_v19 = vld [vmem:[#allocation18_spill] sm:$0xff] }
 0x565   : >> { %v6287_v22 = vpack.c.bf16 %v9504_v16, %v9503_v19  ;;  %v9511_v43 = vld [vmem:[#allocation22_spill] sm:$0xff]  ;;  %v9520_v16 = vld [vmem:[#allocation43_spill] sm:$0xff] }
 0x566   : >> { %v2745_v47 = vmax.f32 %v8475_v55, 0.0  ;;  %v6295_v48 = vpack.c.bf16 %v9512_v53, %v9511_v43  ;;  %v9519_v19 = vld [vmem:[#allocation42_spill] sm:$0xff] }
 0x567   : >> { %6288 = vmatprep.subr.bf16.mxu1 %v6287_v22  ;;  %v6303_v22 = vpack.c.bf16 %v9520_v16, %v9519_v19 }
 0x568   : >> { %2774 = vrot.lane.b32.xlu0 %v2745_v47, %s9453_s28  ;;  %6290 = vmatpush3.bf16.msra.mxu1 %v6289_v34  ;;  %s3099_s28 = scalar_lea.vmem [#allocation4], %s5319_s4 }
 0x569   : >> { %6292 = vmatprep.subr.bf16.mxu1 %v6291_v31 }
 0x56c   : >> { %6294 = vmatpush3.bf16.msra.mxu1 %v6293_v63 }
 0x56d   : >> { %6296 = vmatprep.subr.bf16.mxu1 %v6295_v48 }
 0x570   : >> { %6298 = vmatpush3.bf16.msra.mxu1 %v6297_v57 }
 0x571   : >> { %6300 = vmatprep.subr.bf16.mxu1 %v6299_v56 }
 0x574   : >> { %6302 = vmatpush3.bf16.msra.mxu1 %v6301_v35 }
 0x575   : >> { %6304 = vmatprep.subr.bf16.mxu1 %v6303_v22 }
 0x5bd   : >> { %v6581_v32 = vpop.permute.xlu1 %6580 }
 0x5be   : >> { %v6583_v54 = vunpack.i.h.bf16 %v6581_v32  ;;  %v6582_v34 = vunpack.i.l.bf16 %v6581_v32  ;;  %v6586_v46 = vpop.permute.xlu0 %6585 }
 0x5bf   : >> { %v6588_v41 = vunpack.i.h.bf16 %v6586_v46  ;;  %v6587_v31 = vunpack.i.l.bf16 %v6586_v46 }
 0x5c0   : >> { %v2777_v39 = vsel %vm9521_vm0, %v6582_v34, %v6583_v54  ;;  %vm3148_vm0 = vcmask (%p632_p5), 1045509  }
 0x5c1   : >> { %v2795_v44 = vmax.f32 %v2737_v14, %v2777_v39  ;;  %v2776_v63 = vsel %vm9522_vm9, %v6588_v41, %v6582_v34  ;;  %v2778_v43 = vsel %vm9523_vm12, %v6583_v54, %v6587_v31  ;;  %v6591_v53 = vpop.permute.xlu1 %6590  ;;  %vm3151_vm9 = vcmask (%p632_p5), 1046534  }
 0x5c2   : >> { %v2794_v48 = vmax.f32 %v2736_v52, %v2776_v63  ;;  %v8519_v61 = vmax.f32 %v2738_v24, %v2778_v43  ;;  %v6593_v45 = vunpack.i.h.bf16 %v6591_v53  ;;  %v6592_v57 = vunpack.i.l.bf16 %v6591_v53  ;;  %v6596_v21 = vpop.permute.xlu0 %6595  ;;  %v9526_v52 = vld [vmem:[#allocation58_spill] sm:$0xff]  ;;  %v9534_v53 = vld [vmem:[#allocation44_spill] sm:$0xff] }
 0x5c3   : >> { %v6597_v36 = vunpack.i.l.bf16 %v6596_v21  ;;  %v6335_v23 = vpack.c.bf16 %v9527_v40, %v9526_v52  ;;  %v6598_v35 = vunpack.i.h.bf16 %v6596_v21  ;;  %v9540_v52 = vld [vmem:[#allocation30_spill] sm:$0xff]  ;;  %v9541_v40 = vld [vmem:[#allocation31_spill] sm:$0xff]  ;;  %vm3154_vm12 = vcmask (%p632_p5), 1047559  }
 0x5c4   : >> { %v2781_v56 = vsel %vm9524_vm14, %v6592_v57, %v6593_v45  ;;  %2814 = vrot.lane.b32.xlu0 %v2794_v48, %s9465_s27  ;;  %v6599_v62 = vpack.i.bf16 %v8519_v61, %v2795_v44 }
 0x5c5   : >> { %v2800_v14 = vmax.f32 %v2742_v58, %v2781_v56  ;;  %v2782_v59 = vsel %vm9525_vm11, %v6593_v45, %v6597_v36  ;;  %6336 = vmatprep.subr.bf16.mxu0 %v6335_v23  ;;  %v2780_v18 = vsel %vm9529_vm5, %v6598_v35, %v6592_v57  ;;  %v9535_v45 = vld [vmem:[#allocation45_spill] sm:$0xff]  ;;  %v9536_v56 = vld [vmem:[#allocation28_spill] sm:$0xff] }
 0x5c6   : >> { %v8529_v50 = vmax.f32 %v2743_v33, %v2782_v59  ;;  %6600 = vrot.lane.b32.xlu1 %v6599_v62, %s9465_s27  ;;  %6338 = vmatpush3.bf16.msra.mxu0 %v6335_v23  ;;  %v2799_v22 = vmax.f32 %v2741_v49, %v2780_v18  ;;  %v6307_v57 = vpack.c.bf16 %v9535_v45, %v9534_v53  ;;  %v9537_v62 = vld [vmem:[#allocation29_spill] sm:$0xff]  ;;  %v9542_v35 = vld [vmem:[#allocation48_spill] sm:$0xff] }
 0x5c7   : >> { %5638 = vmatprep.subr.msk.mxu0 %vm2869_vm8, %v9528_v51  ;;  %v6309_v59 = vpack.c.bf16 %v9537_v62, %v9536_v56  ;;  %v6313_v23 = vpack.c.bf16 %v9541_v40, %v9540_v52  ;;  %v9543_v18 = vld [vmem:[#allocation49_spill] sm:$0xff]  ;;  %v9557_v40 = vld [vmem:[#allocation39_spill] sm:$0xff] }
 0x5c8   : >> { %v6604_v24 = vpack.i.bf16 %v8529_v50, %v2800_v14  ;;  %v9553_v56 = vld [vmem:[#allocation37_spill] sm:$0xff] }
 0x5ca   : >> { %6605 = vrot.lane.b32.xlu1 %v6604_v24, %s9465_s27  ;;  %5639 = vmatpush3.msk.msra.mxu0 %vm2869_vm8, %v9528_v51 }
 0x5d6   : >> { %v2765_v58 = vpop.permute.xlu1 %2764 }
 0x5d7   : >> { %v2779_v33 = vsel %vm9530_vm6, %v6587_v31, %v2765_v58  ;;  %v2798_v19 = vmax.f32 %v2740_v20, %v2765_v58  ;;  %v6315_v58 = vpack.c.bf16 %v9543_v18, %v9542_v35  ;;  %v9559_v35 = vld [vmem:[#allocation57_spill] sm:$0xff] }
 0x5d8   : >> { %v8544_v16 = vmax.f32 %v2739_v37, %v2779_v33  ;;  %v9544_v33 = vld [vmem:[#allocation32_spill] sm:$0xff] }
 0x5d9   : >> { %2822 = vrot.lane.b32.xlu1 %v2798_v19, %s9465_s27 }
 0x5da   : >> { %v6609_v32 = vpack.i.bf16 %v8544_v16, %v2799_v22  ;;  %v2775_v54 = vpop.permute.xlu0 %2774 }
 0x5db   : >> { %v2783_v34 = vsel %vm9531_vm7, %v6597_v36, %v2775_v54  ;;  %v2803_v46 = vmax.f32 %v2745_v47, %v2775_v54  ;;  %v9546_v54 = vld [vmem:[#allocation50_spill] sm:$0xff] }
 0x5dc   : >> { %6610 = vrot.lane.b32.xlu0 %v6609_v32, %s9465_s27  ;;  %v8557_v42 = vmax.f32 %v2744_v17, %v2783_v34  ;;  %v9533_v17 = vld [vmem:[#allocation27_spill] sm:$0xff]  ;;  %v9545_v32 = vld [vmem:[#allocation33_spill] sm:$0xff] }
 0x5dd   : >> { %2832 = vrot.lane.b32.xlu1 %v2803_v46, %s9465_s27  ;;  %v6305_v39 = vpack.c.bf16 %v9533_v17, %v9532_v38  ;;  %v9547_v34 = vld [vmem:[#allocation51_spill] sm:$0xff] }
 0x5e0   : >> { %2830 = vrot.lane.b32.xlu0 %v8557_v42, %s9465_s27 }
 0x636   : >> { %v2815_v60 = vpop.permute.xlu0 %2814 }
 0x638   : >> { %v8561_v15 = vpop.permute.xlu1 %6600 }
 0x639   : >> { %v6603_v37 = vunpack.i.h.bf16 %v8561_v15  ;;  %v6602_v49 = vunpack.i.l.bf16 %v8561_v15  ;;  %v6319_v15 = vpack.c.bf16 %v9547_v34, %v9546_v54 }
 0x63b   : >> { %v2834_v20 = vsel %vm1008_vm10, %v2815_v60, %v6602_v49  ;;  %v2835_v55 = vsel %vm1008_vm10, %v6602_v49, %v6603_v37 }
 0x63c   : >> { %v2852_v47 = vmax.f32 %v2794_v48, %v2834_v20  ;;  %v6606_v41 = vpop.permute.xlu1 %6605  ;;  %v2853_v31 = vmax.f32 %v2795_v44, %v2835_v55  ;;  %v9538_v48 = vld [vmem:[#allocation46_spill] sm:$0xff]  ;;  %v9539_v44 = vld [vmem:[#allocation47_spill] sm:$0xff] }
 0x63d   : >> { %v6608_v63 = vunpack.i.h.bf16 %v6606_v41  ;;  %v6607_v43 = vunpack.i.l.bf16 %v6606_v41  ;;  %v6311_v24 = vpack.c.bf16 %v9539_v44, %v9538_v48  ;;  %v9548_v20 = vld [vmem:[#allocation34_spill] sm:$0xff]  ;;  %v9549_v55 = vld [vmem:[#allocation35_spill] sm:$0xff]  ;;  %v9550_v41 = vld [vmem:[#allocation52_spill] sm:$0xff] }
 0x63e   : >> { %2937 = vmatprep.mubr.f32.mxu1 %v2853_v31  ;;  %v9551_v31 = vld [vmem:[#allocation53_spill] sm:$0xff]  ;;  %v9554_v44 = vld [vmem:[#allocation54_spill] sm:$0xff] }
 0x63f   : >> { %2938 = vmatmul.mubr.f32.vlgmr.msra.gmra.mrb[8].mxu1 %v2852_v47  ;;  %v2839_v21 = vsel %vm1008_vm10, %v6607_v43, %v6608_v63  ;;  %v6321_v47 = vpack.c.bf16 %v9549_v55, %v9548_v20  ;;  %v6323_v38 = vpack.c.bf16 %v9551_v31, %v9550_v41 }
 0x640   : >> { %6306 = vmatpush3.bf16.msra.mxu1 %v6305_v39  ;;  %v2858_v36 = vmax.f32 %v2800_v14, %v2839_v21  ;;  %v6317_v14 = vpack.c.bf16 %v9545_v32, %v9544_v33  ;;  %v9560_v33 = vld [vmem:[#allocation40_spill] sm:$0xff]  ;;  %v9561_v32 = vld [vmem:[#allocation41_spill] sm:$0xff] }
 0x641   : >> { %6308 = vmatprep.subr.bf16.mxu1 %v6307_v57 }
 0x642   : >> { %2942 = vmatprep.mubr.f32.mxu1 %v2858_v36  ;;  %v9552_v36 = vld [vmem:[#allocation36_spill] sm:$0xff] }
 0x643   : >> { %v6325_v62 = vpack.c.bf16 %v9553_v56, %v9552_v36  ;;  %v5321_v36 = vld [vmem:[%s9327_s6 + $0x28] sm:$0xff] (%p632_p5)  ;;  %v3110_v56 = vld [vmem:[%s9327_s6] sm:$0xff] (%p632_p5) }
 0x644   : >> { %6310 = vmatpush3.bf16.msra.mxu1 %v6309_v59  ;;  %v6346_v3 = vpack.c.bf16 (%p632_p5), %v3111_v0, %v3110_v56 }
 0x645   : >> { %6312 = vmatprep.subr.bf16.mxu1 %v6311_v24  ;;  %v9555_v24 = vld [vmem:[#allocation55_spill] sm:$0xff] }
 0x646   : >> { %v6327_v52 = vpack.c.bf16 %v9555_v24, %v9554_v44 }
 0x648   : >> { %6314 = vmatpush3.bf16.msra.mxu1 %v6313_v23  ;;  %v9558_v23 = vld [vmem:[#allocation56_spill] sm:$0xff] }
 0x649   : >> { %6316 = vmatprep.subr.bf16.mxu1 %v6315_v58  ;;  %v6331_v18 = vpack.c.bf16 %v9559_v35, %v9558_v23  ;;  %v5326_v23 = vld [vmem:[%s9327_s6 + $0x40] sm:$0xff] (%p632_p5) }
 0x64b   : >> { %v2823_v49 = vpop.permute.xlu1 %2822 }
 0x64c   : >> { %v2856_v60 = vmax.f32 %v2798_v19, %v2823_v49  ;;  %6318 = vmatpush3.bf16.msra.mxu1 %v6317_v14 }
 0x64d   : >> { %6320 = vmatprep.subr.bf16.mxu1 %v6319_v15 }
 0x64e   : >> { %v6611_v17 = vpop.permute.xlu0 %6610  ;;  %5640 = vmatprep.mubr.msk.f32.mxu0 %vm2862_vm13, %v2856_v60 }
 0x64f   : >> { %v6613_v39 = vunpack.i.h.bf16 %v6611_v17  ;;  %v6612_v53 = vunpack.i.l.bf16 %v6611_v17  ;;  %v2833_v45 = vpop.permute.xlu1 %2832 }
 0x650   : >> { %v2861_v57 = vmax.f32 %v2803_v46, %v2833_v45  ;;  %6322 = vmatpush3.bf16.msra.mxu1 %v6321_v47  ;;  %v9556_v46 = vld [vmem:[#allocation38_spill] sm:$0xff] }
 0x651   : >> { %v2838_v21 = vsel %vm1008_vm10, %v6612_v53, %v6607_v43  ;;  %v2837_v19 = vsel %vm1008_vm10, %v6613_v39, %v2823_v49  ;;  %6324 = vmatprep.subr.bf16.mxu1 %v6323_v38  ;;  %v6329_v43 = vpack.c.bf16 %v9557_v40, %v9556_v46 }
 0x652   : >> { %5641 = vmatmul.mubr.msk.f32.vlgmr.msra.gmra.mrb[12].mxu0 %vm2862_vm13, %v2861_v57  ;;  %v2857_v59 = vmax.f32 %v2799_v22, %v2838_v21  ;;  %v2855_v48 = vmax.f32 %v8544_v16, %v2837_v19  ;;  %v2831_v58 = vpop.permute.xlu0 %2830  ;;  %v6333_v22 = vpack.c.bf16 %v9561_v32, %v9560_v33  ;;  %v2836_v16 = vsel %vm1008_vm10, %v6603_v37, %v6613_v39  ;;  %v5320_v19 = vld [vmem:[%s9327_s6 + $0x20] sm:$0xff] (%p632_p5) }
 0x653   : >> { %v2841_v14 = vsel %vm1008_vm10, %v2831_v58, %v2833_v45  ;;  %v2854_v54 = vmax.f32 %v8519_v61, %v2836_v16  ;;  %v2840_v34 = vsel %vm1008_vm10, %v6608_v63, %v2831_v58  ;;  %vm3136_vm10 = vcmask (%p632_p5), 1041409   ;;  %5651 = vmatprep.mubr.msk.f32.mxu0 (%p632_p5), %vm6657_vm1, %v6658_v6 }
 0x654   : >> { %2943 = vmatmul.mubr.f32.gmra.mrb[10].mxu1 %v2857_v59  ;;  %v2860_v15 = vmax.f32 %v8557_v42, %v2841_v14  ;;  %v2859_v49 = vmax.f32 %v8529_v50, %v2840_v34  ;;  %v6340_v59 = vpack.c.bf16 (%p632_p5), %v5321_v36, %v5320_v19 }
 0x655   : >> { %3012 = vmatprep.mubr.f32.mxu1 %v2855_v48  ;;  %6326 = vmatpush3.bf16.msra.mxu1 %v6325_v62  ;;  %v6656_v62 = vmov (%p632_p5), 0.0|0.0  }
 0x656   : >> { %6328 = vmatprep.subr.bf16.mxu1 %v6327_v52  ;;  %6339 = vmatprep.subr.bf16.mxu0 (%p632_p5), %v6656_v62 }
 0x657   : > { %6341 = vmatpush3.bf16.msra.mxu0 (%p632_p5), %v6340_v59 }
 0x658   : > { %6342 = vmatprep.subr.bf16.mxu0 (%p632_p5), %v6656_v62 }
 0x659   : >> { %6330 = vmatpush3.bf16.msra.mxu1 %v6329_v43 }
 0x65a   : >> { %6332 = vmatprep.subr.bf16.mxu1 %v6331_v18 }
 0x65b   : > { %6344 = vmatpush3.bf16.msra.mxu0 (%p632_p5), %v6343_v8 }
 0x65c   : > { %6351 = vmatprep.subr.bf16.mxu0 (%p632_p5), %v6656_v62 }
 0x65d   : >> { %6334 = vmatpush3.bf16.msra.mxu1 %v6333_v22 }
 0x65e   : > { %6345 = vmatprep.subr.bf16.mxu1 (%p632_p5), %v6656_v62 }
 0x660   : >> { %3013 = vmatmul.mubr.f32.vlgmr.msra.gmra.mrb[12].mxu1 %v2854_v54 }
 0x661   : >> { %3017 = vmatprep.mubr.f32.mxu1 %v2860_v15  ;;  %6347 = vmatpush3.bf16.msra.mxu1 (%p632_p5), %v6346_v3 }
 0x662   : > { %6348 = vmatprep.subr.bf16.mxu1 (%p632_p5), %v6656_v62 }
 0x664   : >> { %3018 = vmatmul.mubr.f32.gmra.mrb[14].mxu1 %v2859_v49 }
 0x665   : > { %5662 = vmatprep.mubr.msk.f32.mxu1 (%p632_p5), %vm6657_vm1, %v6658_v6  ;;  %6350 = vmatpush3.bf16.msra.mxu1 (%p632_p5), %v6349_v12 }
 0x666   : > { %6357 = vmatprep.subr.bf16.mxu1 (%p632_p5), %v6656_v62 }
 0x712   : >> { %v5437_v60 = vpop.f32.mrb[8].mxu1 }
 0x713   : >> { %v5438_v20 = vpop.f32.mrb[9].mxu1 }
 0x714   : >> { %v5439_v55 = vadd.f32 %v5438_v20, %v5437_v60  ;;  %v5327_v60 = vld [vmem:[%s9327_s6 + $0x48] sm:$0xff] (%p632_p5)  ;;  %v5331_v20 = vld [vmem:[%s9327_s6 + $0x60] sm:$0xff] (%p632_p5) }
 0x725   : >> { %v5642_v47 = vpop.f32.mrb[12].mxu0 }
 0x726   : >> { %v3089_v37 = vpop.f32.mrb[13].mxu0 }
 0x727   : >> { %v5440_v41 = vpop.f32.mrb[10].mxu1 }
 0x728   : >> { %v5441_v31 = vpop.f32.mrb[11].mxu1 }
 0x729   : >> { %v5442_v38 = vadd.f32 %v5441_v31, %v5440_v41  ;;  %v5332_v31 = vld [vmem:[%s9327_s6 + $0x68] sm:$0xff] (%p632_p5) }
 0x72a   : > { %v6358_v59 = vpack.c.bf16 (%p632_p5), %v5332_v31, %v5331_v20 }
 0x733   : >> { %v5475_v17 = vpop.f32.mrb[12].mxu1 }
 0x734   : >> { %v5476_v61 = vpop.f32.mrb[13].mxu1 }
 0x735   : >> { %v5477_v39 = vadd.f32 %v5476_v61, %v5475_v17  ;;  %v5329_v17 = vld [vmem:[%s9327_s6 + $0x58] sm:$0xff] (%p632_p5) }
 0x737   : >> { %v3015_v63 = vadd.f32 %v5477_v39, %v5439_v55  ;;  %v5478_v42 = vpop.f32.mrb[14].mxu1 }
 0x738   : >> { %v5479_v53 = vpop.f32.mrb[15].mxu1 }
 0x739   : >> { %v3090_v45 = vadd.f32 %v3089_v37, %v3015_v63  ;;  %v5480_v57 = vadd.f32 %v5479_v53, %v5478_v42  ;;  %634 = sbr.rel (!%p632_p5) target bundleno = 53 (0x35), region = 142  ;;  %v6352_v42 = vpack.c.bf16 (%p632_p5), %v5327_v60, %v5326_v23  ;;  %v8703_v23 = vld [vmem:[%s9327_s6 + $0xa0] sm:$0xff] (%p632_p5)  ;;  %v5339_v60 = vld [vmem:[%s9327_s6 + $0x98] sm:$0xff] (%p632_p5) }
 0x73b   : >> { %3100 = vst.msk [vmem:[%s3099_s28] sm:$0xff] %vm1198_vm15, %v3090_v45  ;;  %v3020_v50 = vadd.f32 %v5480_v57, %v5442_v38  ;;  %v5328_v38 = vld [vmem:[%s9327_s6 + $0x50] sm:$0xff] (%p632_p5) }
 0x73c   : > { %v6355_v0 = vpack.c.bf16 (%p632_p5), %v5329_v17, %v5328_v38 }
 0x73d   : >> { %v3095_v21 = vadd.f32 %v5642_v47, %v3020_v50 }
 0x73f   : >> { %3101 = vst.msk [vmem:[%s3099_s28 + $0x8] sm:$0xff] %vm1198_vm15, %v3095_v21 }
 0x746   : > { %v3114_v7 = vld [vmem:[#allocation4 + $0x1] sm:$0x1]  ;;  %v3115_v9 = vld [vmem:[#allocation4 + $0x11] sm:$0x1]  ;;  %v3102_v24 = vld [vmem:[#allocation4] sm:$0x1] }
 0x747   : > { %v3116_v10 = vld [vmem:[#allocation4 + $0x21] sm:$0x1]  ;;  %v3117_v11 = vld [vmem:[#allocation4 + $0x31] sm:$0x1]  ;;  %v3135_v28 = vrot.slane %v3115_v9, 7 }
 0x748   : > { %v3118_v13 = vld [vmem:[#allocation4 + $0x41] sm:$0x1]  ;;  %v3119_v25 = vld [vmem:[#allocation4 + $0x51] sm:$0x1]  ;;  %v3138_v29 = vrot.slane %v3116_v10, 6  ;;  %v3141_v30 = vrot.slane %v3117_v11, 5 }
 0x749   : > { %v3120_v26 = vld [vmem:[#allocation4 + $0x61] sm:$0x1]  ;;  %v3121_v27 = vld [vmem:[#allocation4 + $0x71] sm:$0x1]  ;;  %v3144_v51 = vrot.slane %v3118_v13, 4  ;;  %v3147_v48 = vrot.slane %v3119_v25, 3  ;;  %v3137_v52 = vsel %vm3136_vm10, %v3135_v28, %v3114_v7 }
 0x74a   : > { %v3150_v44 = vrot.slane %v3120_v26, 2  ;;  %v3153_v46 = vrot.slane %v3121_v27, 1  ;;  %v3103_v40 = vld [vmem:[#allocation4 + $0x10] sm:$0x1]  ;;  %v3104_v43 = vld [vmem:[#allocation4 + $0x20] sm:$0x1]  ;;  %v3140_v35 = vsel %vm3139_vm3, %v3138_v29, %v3137_v52 }
 0x74b   : > { %v3105_v18 = vld [vmem:[#allocation4 + $0x30] sm:$0x1]  ;;  %v3106_v58 = vld [vmem:[#allocation4 + $0x40] sm:$0x1]  ;;  %v3143_v32 = vsel %vm3142_vm2, %v3141_v30, %v3140_v35  ;;  %v3237_v14 = vrot.slane %v3103_v40, 7  ;;  %v3239_v54 = vrot.slane %v3104_v43, 6 }
 0x74c   : > { %v3107_v33 = vld [vmem:[#allocation4 + $0x50] sm:$0x1]  ;;  %v3108_v22 = vld [vmem:[#allocation4 + $0x60] sm:$0x1]  ;;  %v3146_v34 = vsel %vm3145_vm4, %v3144_v51, %v3143_v32  ;;  %v3241_v15 = vrot.slane %v3105_v18, 5  ;;  %v3243_v49 = vrot.slane %v3106_v58, 4 }
 0x74d   : > { %v3109_v16 = vld [vmem:[#allocation4 + $0x70] sm:$0x1]  ;;  %v3149_v55 = vsel %vm3148_vm0, %v3147_v48, %v3146_v34  ;;  %v3238_v47 = vsel %vm3136_vm10, %v3237_v14, %v3102_v24  ;;  %v3245_v37 = vrot.slane %v3107_v33, 3  ;;  %v3247_v41 = vrot.slane %v3108_v22, 2  ;;  %v3323_v53 = vld [vmem:[#allocation4 + $0x2] sm:$0x1] }
 0x74e   : > { %v3152_v61 = vsel %vm3151_vm9, %v3150_v44, %v3149_v55  ;;  %v3240_v39 = vsel %vm3139_vm3, %v3239_v54, %v3238_v47  ;;  %v3249_v63 = vrot.slane %v3109_v16, 1  ;;  %v3324_v45 = vld [vmem:[#allocation4 + $0x12] sm:$0x1]  ;;  %v3325_v21 = vld [vmem:[#allocation4 + $0x22] sm:$0x1]  ;;  %v5334_v7 = vld [vmem:[%s9327_s6 + $0x78] sm:$0xff] }
 0x74f   : > { %v3155_v57 = vsel %vm3154_vm12, %v3153_v46, %v3152_v61  ;;  %v3242_v50 = vsel %vm3142_vm2, %v3241_v15, %v3240_v39  ;;  %v3326_v19 = vld [vmem:[#allocation4 + $0x32] sm:$0x1]  ;;  %v3327_v36 = vld [vmem:[#allocation4 + $0x42] sm:$0x1]  ;;  %v3344_v8 = vrot.slane %v3324_v45, 7  ;;  %v3346_v9 = vrot.slane %v3325_v21, 6 }
 0x750   : > { %5652 = vmatmul.mubr.msk.f32.vlgmr.msra.gmra.mrb[0].mxu0 %vm1198_vm15, %v3155_v57  ;;  %v3244_v56 = vsel %vm3145_vm4, %v3243_v49, %v3242_v50  ;;  %v3328_v1 = vld [vmem:[#allocation4 + $0x52] sm:$0x1]  ;;  %v3329_v2 = vld [vmem:[#allocation4 + $0x62] sm:$0x1]  ;;  %v3348_v10 = vrot.slane %v3326_v19, 5  ;;  %v3350_v12 = vrot.slane %v3327_v36, 4  ;;  %v6361_v24 = vpack.c.bf16 %v5334_v7, %v5333_v5 }
 0x751   : > { %v3330_v3 = vld [vmem:[#allocation4 + $0x72] sm:$0x1]  ;;  %v3246_v4 = vsel %vm3148_vm0, %v3245_v37, %v3244_v56  ;;  %6353 = vmatpush3.bf16.msra.mxu0 %v6352_v42  ;;  %5673 = vmatprep.mubr.msk.f32.mxu0 %vm6657_vm1, %v6658_v6  ;;  %v3352_v13 = vrot.slane %v3328_v1, 3  ;;  %v5336_v25 = vld [vmem:[%s9327_s6 + $0x80] sm:$0xff]  ;;  %v5337_v26 = vld [vmem:[%s9327_s6 + $0x88] sm:$0xff]  ;;  %v3345_v29 = vsel %vm3136_vm10, %v3344_v8, %v3323_v53  ;;  %v3354_v30 = vrot.slane %v3329_v2, 2 }
 0x752   : > { %v3248_v11 = vsel %vm3151_vm9, %v3247_v41, %v3246_v4  ;;  %6354 = vmatprep.subr.bf16.mxu0 %v6656_v62  ;;  %v3431_v27 = vld [vmem:[#allocation4 + $0x3] sm:$0x1]  ;;  %v3356_v51 = vrot.slane %v3330_v3, 1  ;;  %v3432_v48 = vld [vmem:[#allocation4 + $0x13] sm:$0x1]  ;;  %v3347_v52 = vsel %vm3139_vm3, %v3346_v9, %v3345_v29  ;;  %v6364_v18 = vpack.c.bf16 %v5337_v26, %v5336_v25  ;;  %v5342_v15 = vld [vmem:[%s9327_s6 + $0xa8] sm:$0xff] }
 0x753   : > { %v3250_v28 = vsel %vm3154_vm12, %v3249_v63, %v3248_v11  ;;  %v3433_v44 = vld [vmem:[#allocation4 + $0x23] sm:$0x1]  ;;  %v3434_v46 = vld [vmem:[#allocation4 + $0x33] sm:$0x1]  ;;  %v3349_v35 = vsel %vm3142_vm2, %v3348_v10, %v3347_v52  ;;  %v3452_v32 = vrot.slane %v3432_v48, 7  ;;  %v6370_v45 = vpack.c.bf16 %v5342_v15, %v8703_v23  ;;  %v8740_v56 = vld [vmem:[%s9327_s6 + $0xb8] sm:$0xff] }
 0x754   : > { %5663 = vmatmul.mubr.msk.f32.vlgmr.msra.gmra.mrb[0].mxu1 %vm1198_vm15, %v3250_v28  ;;  %v3435_v40 = vld [vmem:[#allocation4 + $0x43] sm:$0x1]  ;;  %v3436_v43 = vld [vmem:[#allocation4 + $0x53] sm:$0x1]  ;;  %v3454_v22 = vrot.slane %v3433_v44, 6  ;;  %v3351_v16 = vsel %vm3145_vm4, %v3350_v12, %v3349_v35  ;;  %v3456_v14 = vrot.slane %v3434_v46, 5 }
 0x755   : > { %6359 = vmatpush3.bf16.msra.mxu1 %v6358_v59  ;;  %6356 = vmatpush3.bf16.msra.mxu0 %v6355_v0  ;;  %v3437_v58 = vld [vmem:[#allocation4 + $0x63] sm:$0x1]  ;;  %v3438_v33 = vld [vmem:[#allocation4 + $0x73] sm:$0x1]  ;;  %v3458_v54 = vrot.slane %v3435_v40, 4  ;;  %v3460_v34 = vrot.slane %v3436_v43, 3  ;;  %v3353_v20 = vsel %vm3148_vm0, %v3352_v13, %v3351_v16  ;;  %v3453_v55 = vsel %vm3136_vm10, %v3452_v32, %v3431_v27 }
 0x756   : > { %6360 = vmatprep.subr.bf16.mxu1 %v6656_v62  ;;  %6363 = vmatprep.subr.bf16.mxu0 %v6656_v62  ;;  %v5338_v49 = vld [vmem:[%s9327_s6 + $0x90] sm:$0xff]  ;;  %v3462_v47 = vrot.slane %v3437_v58, 2  ;;  %v3464_v37 = vrot.slane %v3438_v33, 1  ;;  %v3539_v41 = vld [vmem:[#allocation4 + $0x4] sm:$0x1]  ;;  %v3355_v38 = vsel %vm3151_vm9, %v3354_v30, %v3353_v20  ;;  %v3455_v17 = vsel %vm3139_vm3, %v3454_v22, %v3453_v55  ;;  %v5347_v8 = vld [vmem:[%s9327_s6 + $0xc8] sm:$0xff] }
 0x757   : > { %5684 = vmatprep.mubr.msk.f32.mxu1 %vm6657_vm1, %v6658_v6  ;;  %v3540_v31 = vld [vmem:[#allocation4 + $0x14] sm:$0x1]  ;;  %v3541_v61 = vld [vmem:[#allocation4 + $0x24] sm:$0x1]  ;;  %v3357_v42 = vsel %vm3154_vm12, %v3356_v51, %v3355_v38  ;;  %v3457_v53 = vsel %vm3142_vm2, %v3456_v14, %v3455_v17  ;;  %v6367_v3 = vpack.c.bf16 %v5339_v60, %v5338_v49  ;;  %v3647_v9 = vld [vmem:[#allocation4 + $0x5] sm:$0x1] }
 0x758   : > { %v3542_v39 = vld [vmem:[#allocation4 + $0x34] sm:$0x1]  ;;  %v3543_v63 = vld [vmem:[#allocation4 + $0x44] sm:$0x1]  ;;  %5674 = vmatmul.mubr.msk.f32.vlgmr.msra.gmra.mrb[2].mxu0 %vm1198_vm15, %v3357_v42  ;;  %v3459_v19 = vsel %vm3145_vm4, %v3458_v54, %v3457_v53  ;;  %v3560_v59 = vrot.slane %v3540_v31, 7  ;;  %v3562_v0 = vrot.slane %v3541_v61, 6 }
 0x759   : > { %6362 = vmatpush3.bf16.msra.mxu1 %v6361_v24  ;;  %v3544_v57 = vld [vmem:[#allocation4 + $0x54] sm:$0x1]  ;;  %v3545_v50 = vld [vmem:[#allocation4 + $0x64] sm:$0x1]  ;;  %v3564_v1 = vrot.slane %v3542_v39, 5  ;;  %6365 = vmatpush3.bf16.msra.mxu0 %v6364_v18  ;;  %v3461_v2 = vsel %vm3148_vm0, %v3460_v34, %v3459_v19  ;;  %v3566_v4 = vrot.slane %v3543_v63, 4 }
 0x75a   : > { %v8727_v21 = vld [vmem:[#allocation4 + $0x74] sm:$0x1]  ;;  %6369 = vmatprep.subr.bf16.mxu1 %v6656_v62  ;;  %5695 = vmatprep.mubr.msk.f32.mxu0 %vm6657_vm1, %v6658_v6  ;;  %v3568_v5 = vrot.slane %v3544_v57, 3  ;;  %v5346_v7 = vld [vmem:[%s9327_s6 + $0xc0] sm:$0xff]  ;;  %v3463_v10 = vsel %vm3151_vm9, %v3462_v47, %v3461_v2  ;;  %v3561_v11 = vsel %vm3136_vm10, %v3560_v59, %v3539_v41  ;;  %v3570_v12 = vrot.slane %v3545_v50, 2  ;;  %v5352_v32 = vld [vmem:[%s9327_s6 + $0xe8] sm:$0xff] }
 0x75b   : > { %v8735_v36 = vld [vmem:[%s9327_s6 + $0xb0] sm:$0xff]  ;;  %6366 = vmatprep.subr.bf16.mxu0 %v6656_v62  ;;  %v3572_v13 = vrot.slane %v8727_v21, 1  ;;  %v3649_v26 = vld [vmem:[#allocation4 + $0x25] sm:$0x1]  ;;  %v3465_v27 = vsel %vm3154_vm12, %v3464_v37, %v3463_v10  ;;  %v3563_v29 = vsel %vm3139_vm3, %v3562_v0, %v3561_v11  ;;  %v6376_v52 = vpack.c.bf16 %v5347_v8, %v5346_v7  ;;  %v5349_v16 = vld [vmem:[%s9327_s6 + $0xd8] sm:$0xff] }
 0x75c   : > { %v3648_v25 = vld [vmem:[#allocation4 + $0x15] sm:$0x1]  ;;  %v6373_v28 = vpack.c.bf16 %v8740_v56, %v8735_v36  ;;  %v3651_v51 = vld [vmem:[#allocation4 + $0x45] sm:$0x1]  ;;  %5685 = vmatmul.mubr.msk.f32.vlgmr.msra.gmra.mrb[2].mxu1 %vm1198_vm15, %v3465_v27  ;;  %v3565_v24 = vsel %vm3142_vm2, %v3564_v1, %v3563_v29  ;;  %v3670_v23 = vrot.slane %v3649_v26, 6  ;;  %v5357_v1 = vld [vmem:[%s9327_s6 + $0x108] sm:$0xff] }
 0x75d   : > { %v3650_v30 = vld [vmem:[#allocation4 + $0x35] sm:$0x1]  ;;  %v8762_v44 = vld [vmem:[%s9327_s6 + $0xe0] sm:$0xff]  ;;  %v3668_v43 = vrot.slane %v3648_v25, 7  ;;  %6371 = vmatpush3.bf16.msra.mxu1 %v6370_v45  ;;  %6368 = vmatpush3.bf16.msra.mxu0 %v6367_v3  ;;  %v3567_v35 = vsel %vm3145_vm4, %v3566_v4, %v3565_v24  ;;  %v3674_v58 = vrot.slane %v3651_v51, 4  ;;  %v8799_v45 = vld [vmem:[%s9327_s6 + $0xf8] sm:$0xff] }
 0x75e   : > { %v3652_v48 = vld [vmem:[#allocation4 + $0x55] sm:$0x1]  ;;  %v3653_v46 = vld [vmem:[#allocation4 + $0x65] sm:$0x1]  ;;  %v3672_v18 = vrot.slane %v3650_v30, 5  ;;  %6372 = vmatprep.subr.bf16.mxu1 %v6656_v62  ;;  %v3569_v14 = vsel %vm3148_vm0, %v3568_v5, %v3567_v35  ;;  %6375 = vmatprep.subr.bf16.mxu0 %v6656_v62  ;;  %v6382_v17 = vpack.c.bf16 %v5352_v32, %v8762_v44  ;;  %v5359_v35 = vld [vmem:[%s9327_s6 + $0x118] sm:$0xff] }
 0x75f   : > { %v3654_v40 = vld [vmem:[#allocation4 + $0x75] sm:$0x1]  ;;  %v3676_v33 = vrot.slane %v3652_v48, 3  ;;  %v3669_v54 = vsel %vm3136_vm10, %v3668_v43, %v3647_v9  ;;  %v3678_v34 = vrot.slane %v3653_v46, 2  ;;  %v3755_v49 = vld [vmem:[#allocation4 + $0x6] sm:$0x1]  ;;  %v3571_v20 = vsel %vm3151_vm9, %v3570_v12, %v3569_v14  ;;  %5706 = vmatprep.mubr.msk.f32.mxu1 %vm6657_vm1, %v6658_v6 }
 0x760   : > { %v5348_v22 = vld [vmem:[%s9327_s6 + $0xd0] sm:$0xff]  ;;  %v3680_v15 = vrot.slane %v3654_v40, 1  ;;  %v3671_v55 = vsel %vm3139_vm3, %v3670_v23, %v3669_v54  ;;  %v3757_v47 = vld [vmem:[#allocation4 + $0x26] sm:$0x1]  ;;  %v3573_v31 = vsel %vm3154_vm12, %v3572_v13, %v3571_v20  ;;  %v3863_v2 = vld [vmem:[#allocation4 + $0x7] sm:$0x1] }
 0x761   : > { %v3756_v60 = vld [vmem:[#allocation4 + $0x16] sm:$0x1]  ;;  %v3759_v41 = vld [vmem:[#allocation4 + $0x46] sm:$0x1]  ;;  %v3673_v38 = vsel %vm3142_vm2, %v3672_v18, %v3671_v55  ;;  %6374 = vmatpush3.bf16.msra.mxu1 %v6373_v28  ;;  %5696 = vmatmul.mubr.msk.f32.vlgmr.msra.gmra.mrb[4].mxu0 %vm1198_vm15, %v3573_v31  ;;  %v3778_v50 = vrot.slane %v3757_v47, 6  ;;  %v6379_v36 = vpack.c.bf16 %v5349_v16, %v5348_v22  ;;  %v5362_v43 = vld [vmem:[%s9327_s6 + $0x128] sm:$0xff] }
 0x762   : > { %v3758_v37 = vld [vmem:[#allocation4 + $0x36] sm:$0x1]  ;;  %v3761_v39 = vld [vmem:[#allocation4 + $0x66] sm:$0x1]  ;;  %v3675_v42 = vsel %vm3145_vm4, %v3674_v58, %v3673_v38  ;;  %v3776_v57 = vrot.slane %v3756_v60, 7  ;;  %6377 = vmatpush3.bf16.msra.mxu0 %v6376_v52  ;;  %6381 = vmatprep.subr.bf16.mxu1 %v6656_v62  ;;  %v3782_v56 = vrot.slane %v3759_v41, 4 }
 0x763   : > { %v3760_v61 = vld [vmem:[#allocation4 + $0x56] sm:$0x1]  ;;  %v3780_v21 = vrot.slane %v3758_v37, 5  ;;  %v3677_v19 = vsel %vm3148_vm0, %v3676_v33, %v3675_v42  ;;  %v5356_v0 = vld [vmem:[%s9327_s6 + $0x100] sm:$0xff]  ;;  %6378 = vmatprep.subr.bf16.mxu0 %v6656_v62  ;;  %5717 = vmatprep.mubr.msk.f32.mxu0 %vm6657_vm1, %v6658_v6  ;;  %v3786_v5 = vrot.slane %v3761_v39, 2 }
 0x764   : > { %v8787_v63 = vld [vmem:[#allocation4 + $0x76] sm:$0x1]  ;;  %v3784_v59 = vrot.slane %v3760_v61, 3  ;;  %v3679_v3 = vsel %vm3151_vm9, %v3678_v34, %v3677_v19  ;;  %v3777_v4 = vsel %vm3136_vm10, %v3776_v57, %v3755_v49  ;;  %v3864_v8 = vld [vmem:[#allocation4 + $0x17] sm:$0x1]  ;;  %v8822_v27 = vld [vmem:[%s9327_s6 + $0x120] sm:$0xff]  ;;  %v6388_v29 = vpack.c.bf16 %v5357_v1, %v5356_v0 }
 0x765   : > { %v8794_v53 = vld [vmem:[%s9327_s6 + $0xf0] sm:$0xff]  ;;  %v3788_v7 = vrot.slane %v8787_v63, 1  ;;  %v3865_v9 = vld [vmem:[#allocation4 + $0x27] sm:$0x1]  ;;  %v3681_v10 = vsel %vm3154_vm12, %v3680_v15, %v3679_v3  ;;  %v3779_v12 = vsel %vm3139_vm3, %v3778_v50, %v3777_v4  ;;  %v3884_v48 = vrot.slane %v3864_v8, 7 }
 0x766   : > { %v6385_v11 = vpack.c.bf16 %v8799_v45, %v8794_v53  ;;  %v3866_v13 = vld [vmem:[#allocation4 + $0x37] sm:$0x1]  ;;  %v3867_v25 = vld [vmem:[#allocation4 + $0x47] sm:$0x1]  ;;  %5707 = vmatmul.mubr.msk.f32.vlgmr.msra.gmra.mrb[4].mxu1 %vm1198_vm15, %v3681_v10  ;;  %v3781_v28 = vsel %vm3142_vm2, %v3780_v21, %v3779_v12  ;;  %v3886_v44 = vrot.slane %v3865_v9, 6  ;;  %6380 = vmatpush3.bf16.msra.mxu0 %v6379_v36  ;;  %v6394_v55 = vpack.c.bf16 %v5362_v43, %v8822_v27  ;;  %v5367_v21 = vld [vmem:[%s9327_s6 + $0x148] sm:$0xff] }
 0x767   : > { %v3868_v26 = vld [vmem:[#allocation4 + $0x57] sm:$0x1]  ;;  %v3869_v30 = vld [vmem:[#allocation4 + $0x67] sm:$0x1]  ;;  %6383 = vmatpush3.bf16.msra.mxu1 %v6382_v17  ;;  %v3783_v24 = vsel %vm3145_vm4, %v3782_v56, %v3781_v28  ;;  %v3888_v52 = vrot.slane %v3866_v13, 5  ;;  %v3890_v46 = vrot.slane %v3867_v25, 4  ;;  %6387 = vmatprep.subr.bf16.mxu0 %v6656_v62  ;;  %v3885_v58 = vsel %vm3136_vm10, %v3884_v48, %v3863_v2 }
 0x768   : > { %v3870_v51 = vld [vmem:[#allocation4 + $0x77] sm:$0x1]  ;;  %v3892_v40 = vrot.slane %v3868_v26, 3  ;;  %6384 = vmatprep.subr.bf16.mxu1 %v6656_v62  ;;  %v3785_v18 = vsel %vm3148_vm0, %v3784_v59, %v3783_v24  ;;  %v3894_v33 = vrot.slane %v3869_v30, 2  ;;  %v3971_v22 = vld [vmem:[#allocation4 + $0x8] sm:$0x1]  ;;  %5728 = vmatprep.mubr.msk.f32.mxu1 %vm6657_vm1, %v6658_v6  ;;  %v3887_v54 = vsel %vm3139_vm3, %v3886_v44, %v3885_v58 }
 0x769   : > { %v5358_v23 = vld [vmem:[%s9327_s6 + $0x110] sm:$0xff]  ;;  %v3896_v32 = vrot.slane %v3870_v51, 1  ;;  %v3972_v16 = vld [vmem:[#allocation4 + $0x18] sm:$0x1]  ;;  %v3787_v14 = vsel %vm3151_vm9, %v3786_v5, %v3785_v18  ;;  %v3973_v34 = vld [vmem:[#allocation4 + $0x28] sm:$0x1]  ;;  %v3889_v20 = vsel %vm3142_vm2, %v3888_v52, %v3887_v54 }
 0x76a   : > { %v3974_v15 = vld [vmem:[#allocation4 + $0x38] sm:$0x1]  ;;  %v3975_v49 = vld [vmem:[#allocation4 + $0x48] sm:$0x1]  ;;  %v3789_v60 = vsel %vm3154_vm12, %v3788_v7, %v3787_v14  ;;  %v3891_v31 = vsel %vm3145_vm4, %v3890_v46, %v3889_v20  ;;  %v8854_v38 = vld [vmem:[%s9327_s6 + $0x130] sm:$0xff]  ;;  %v3992_v61 = vrot.slane %v3972_v16, 7  ;;  %v6391_v53 = vpack.c.bf16 %v5359_v35, %v5358_v23 }
 0x76b   : > { %v3976_v47 = vld [vmem:[#allocation4 + $0x58] sm:$0x1]  ;;  %v3977_v37 = vld [vmem:[#allocation4 + $0x68] sm:$0x1]  ;;  %6386 = vmatpush3.bf16.msra.mxu1 %v6385_v11  ;;  %5718 = vmatmul.mubr.msk.f32.vlgmr.msra.gmra.mrb[6].mxu0 %vm1198_vm15, %v3789_v60  ;;  %v3994_v39 = vrot.slane %v3973_v34, 6  ;;  %v3996_v63 = vrot.slane %v3974_v15, 5  ;;  %v3893_v42 = vsel %vm3148_vm0, %v3892_v40, %v3891_v31 }
 0x76c   : > { %v8847_v41 = vld [vmem:[#allocation4 + $0x78] sm:$0x1]  ;;  %6389 = vmatpush3.bf16.msra.mxu0 %v6388_v29  ;;  %6393 = vmatprep.subr.bf16.mxu1 %v6656_v62  ;;  %v3998_v45 = vrot.slane %v3975_v49, 4  ;;  %v4000_v57 = vrot.slane %v3976_v47, 3  ;;  %v5366_v50 = vld [vmem:[%s9327_s6 + $0x140] sm:$0xff]  ;;  %v3895_v36 = vsel %vm3151_vm9, %v3894_v33, %v3893_v42  ;;  %v3993_v56 = vsel %vm3136_vm10, %v3992_v61, %v3971_v22  ;;  %v5372_v48 = vld [vmem:[%s9327_s6 + $0x168] sm:$0xff] }
 0x76d   : > { %v8859_v17 = vld [vmem:[%s9327_s6 + $0x138] sm:$0xff]  ;;  %v4079_v19 = vld [vmem:[#allocation4 + $0x9] sm:$0x1]  ;;  %6390 = vmatprep.subr.bf16.mxu0 %v6656_v62  ;;  %5739 = vmatprep.mubr.msk.f32.mxu0 %vm6657_vm1, %v6658_v6  ;;  %v4002_v59 = vrot.slane %v3977_v37, 2  ;;  %v4004_v0 = vrot.slane %v8847_v41, 1  ;;  %v3897_v3 = vsel %vm3154_vm12, %v3896_v32, %v3895_v36  ;;  %v3995_v5 = vsel %vm3139_vm3, %v3994_v39, %v3993_v56  ;;  %v8882_v10 = vld [vmem:[%s9327_s6 + $0x160] sm:$0xff] }
 0x76e   : > { %v4080_v1 = vld [vmem:[#allocation4 + $0x19] sm:$0x1]  ;;  %v4081_v2 = vld [vmem:[#allocation4 + $0x29] sm:$0x1]  ;;  %v6397_v4 = vpack.c.bf16 %v8859_v17, %v8854_v38  ;;  %5729 = vmatmul.mubr.msk.f32.vlgmr.msra.gmra.mrb[6].mxu1 %vm1198_vm15, %v3897_v3  ;;  %v3997_v11 = vsel %vm3142_vm2, %v3996_v63, %v3995_v5  ;;  %v6400_v12 = vpack.c.bf16 %v5367_v21, %v5366_v50  ;;  %v5368_v44 = vld [vmem:[%s9327_s6 + $0x150] sm:$0xff]  ;;  %v6406_v54 = vpack.c.bf16 %v5372_v48, %v8882_v10 }
 0x76f   : > { %v4082_v7 = vld [vmem:[#allocation4 + $0x39] sm:$0x1]  ;;  %v4083_v8 = vld [vmem:[#allocation4 + $0x49] sm:$0x1]  ;;  %v4100_v26 = vrot.slane %v4080_v1, 7  ;;  %v4102_v27 = vrot.slane %v4081_v2, 6  ;;  %6395 = vmatpush3.bf16.msra.mxu1 %v6394_v55  ;;  %v3999_v28 = vsel %vm3145_vm4, %v3998_v45, %v3997_v11  ;;  %5750 = vmatprep.mubr.msk.f32.mxu1 %vm6657_vm1, %v6658_v6 }
 0x770   : > { %v4084_v9 = vld [vmem:[#allocation4 + $0x59] sm:$0x1]  ;;  %v4085_v13 = vld [vmem:[#allocation4 + $0x69] sm:$0x1]  ;;  %6392 = vmatpush3.bf16.msra.mxu0 %v6391_v53  ;;  %v4104_v29 = vrot.slane %v4082_v7, 5  ;;  %v4106_v30 = vrot.slane %v4083_v8, 4  ;;  %6396 = vmatprep.subr.bf16.mxu1 %v6656_v62  ;;  %v4001_v52 = vsel %vm3148_vm0, %v4000_v57, %v3999_v28 }
 0x771   : > { %v4086_v25 = vld [vmem:[#allocation4 + $0x79] sm:$0x1]  ;;  %v4108_v51 = vrot.slane %v4084_v9, 3  ;;  %6399 = vmatprep.subr.bf16.mxu0 %v6656_v62  ;;  %v4101_v46 = vsel %vm3136_vm10, %v4100_v26, %v4079_v19  ;;  %v4110_v40 = vrot.slane %v4085_v13, 2  ;;  %v4187_v23 = vld [vmem:[#allocation4 + $0xa] sm:$0x1]  ;;  %v4003_v18 = vsel %vm3151_vm9, %v4002_v59, %v4001_v52 }
 0x772   : > { %v5369_v24 = vld [vmem:[%s9327_s6 + $0x158] sm:$0xff]  ;;  %v4112_v43 = vrot.slane %v4086_v25, 1  ;;  %v4103_v58 = vsel %vm3139_vm3, %v4102_v27, %v4101_v46  ;;  %v4189_v33 = vld [vmem:[#allocation4 + $0x2a] sm:$0x1]  ;;  %v4005_v16 = vsel %vm3154_vm12, %v4004_v0, %v4003_v18  ;;  %v8914_v20 = vld [vmem:[%s9327_s6 + $0x170] sm:$0xff] }
 0x773   : > { %v4188_v35 = vld [vmem:[#allocation4 + $0x1a] sm:$0x1]  ;;  %v4191_v22 = vld [vmem:[#allocation4 + $0x4a] sm:$0x1]  ;;  %v4105_v14 = vsel %vm3142_vm2, %v4104_v29, %v4103_v58  ;;  %6398 = vmatpush3.bf16.msra.mxu1 %v6397_v4  ;;  %5740 = vmatmul.mubr.msk.f32.vlgmr.msra.gmra.mrb[8].mxu0 %vm1198_vm15, %v4005_v16  ;;  %v4210_v37 = vrot.slane %v4189_v33, 6  ;;  %v6403_v38 = vpack.c.bf16 %v5369_v24, %v5368_v44  ;;  %v5376_v39 = vld [vmem:[%s9327_s6 + $0x180] sm:$0xff] }
 0x774   : > { %v4190_v32 = vld [vmem:[#allocation4 + $0x3a] sm:$0x1]  ;;  %v4193_v15 = vld [vmem:[#allocation4 + $0x6a] sm:$0x1]  ;;  %v4107_v60 = vsel %vm3145_vm4, %v4106_v30, %v4105_v14  ;;  %v4208_v47 = vrot.slane %v4188_v35, 7  ;;  %6401 = vmatpush3.bf16.msra.mxu0 %v6400_v12  ;;  %6405 = vmatprep.subr.bf16.mxu1 %v6656_v62  ;;  %v4214_v17 = vrot.slane %v4191_v22, 4 }
 0x775   : > { %v4192_v34 = vld [vmem:[#allocation4 + $0x5a] sm:$0x1]  ;;  %v4212_v41 = vrot.slane %v4190_v32, 5  ;;  %v4109_v31 = vsel %vm3148_vm0, %v4108_v51, %v4107_v60  ;;  %v5377_v63 = vld [vmem:[%s9327_s6 + $0x188] sm:$0xff]  ;;  %6402 = vmatprep.subr.bf16.mxu0 %v6656_v62  ;;  %5761 = vmatprep.mubr.msk.f32.mxu0 %vm6657_vm1, %v6658_v6  ;;  %v4218_v57 = vrot.slane %v4193_v15, 2  ;;  %v8942_v3 = vld [vmem:[%s9327_s6 + $0x1a0] sm:$0xff] }
 0x776   : > { %v8907_v49 = vld [vmem:[#allocation4 + $0x7a] sm:$0x1]  ;;  %v4216_v61 = vrot.slane %v4192_v34, 3  ;;  %v4295_v42 = vld [vmem:[#allocation4 + $0xb] sm:$0x1]  ;;  %v4111_v53 = vsel %vm3151_vm9, %v4110_v40, %v4109_v31  ;;  %v4209_v45 = vsel %vm3136_vm10, %v4208_v47, %v4187_v23  ;;  %v6412_v5 = vpack.c.bf16 %v5377_v63, %v5376_v39  ;;  %v5378_v27 = vld [vmem:[%s9327_s6 + $0x190] sm:$0xff] }
 0x777   : > { %v8919_v55 = vld [vmem:[%s9327_s6 + $0x178] sm:$0xff]  ;;  %v4220_v50 = vrot.slane %v8907_v49, 1  ;;  %v4297_v19 = vld [vmem:[#allocation4 + $0x2b] sm:$0x1]  ;;  %v4113_v36 = vsel %vm3154_vm12, %v4112_v43, %v4111_v53  ;;  %v4211_v59 = vsel %vm3139_vm3, %v4210_v37, %v4209_v45  ;;  %v4403_v44 = vld [vmem:[#allocation4 + $0xc] sm:$0x1] }
 0x778   : > { %v4296_v21 = vld [vmem:[#allocation4 + $0x1b] sm:$0x1]  ;;  %v6409_v56 = vpack.c.bf16 %v8919_v55, %v8914_v20  ;;  %v4299_v1 = vld [vmem:[#allocation4 + $0x4b] sm:$0x1]  ;;  %5751 = vmatmul.mubr.msk.f32.vlgmr.msra.gmra.mrb[8].mxu1 %vm1198_vm15, %v4113_v36  ;;  %v4213_v4 = vsel %vm3142_vm2, %v4212_v41, %v4211_v59  ;;  %v4318_v10 = vrot.slane %v4297_v19, 6  ;;  %6404 = vmatpush3.bf16.msra.mxu0 %v6403_v38  ;;  %v8974_v14 = vld [vmem:[%s9327_s6 + $0x1b0] sm:$0xff] }
 0x779   : > { %v4298_v0 = vld [vmem:[#allocation4 + $0x3b] sm:$0x1]  ;;  %v4301_v7 = vld [vmem:[#allocation4 + $0x6b] sm:$0x1]  ;;  %v4316_v9 = vrot.slane %v4296_v21, 7  ;;  %6407 = vmatpush3.bf16.msra.mxu1 %v6406_v54  ;;  %v4215_v11 = vsel %vm3145_vm4, %v4214_v17, %v4213_v4  ;;  %v4322_v13 = vrot.slane %v4299_v1, 4  ;;  %6411 = vmatprep.subr.bf16.mxu0 %v6656_v62 }
 0x77a   : > { %v4300_v2 = vld [vmem:[#allocation4 + $0x5b] sm:$0x1]  ;;  %v4320_v12 = vrot.slane %v4298_v0, 5  ;;  %v5382_v26 = vld [vmem:[%s9327_s6 + $0x1a8] sm:$0xff]  ;;  %6408 = vmatprep.subr.bf16.mxu1 %v6656_v62  ;;  %v4217_v29 = vsel %vm3148_vm0, %v4216_v61, %v4215_v11  ;;  %v4326_v51 = vrot.slane %v4301_v7, 2  ;;  %5772 = vmatprep.mubr.msk.f32.mxu1 %vm6657_vm1, %v6658_v6  ;;  %v8986_v37 = vld [vmem:[%s9327_s6 + $0x1c0] sm:$0xff] }
 0x77b   : > { %v4302_v8 = vld [vmem:[#allocation4 + $0x7b] sm:$0x1]  ;;  %v4324_v25 = vrot.slane %v4300_v2, 3  ;;  %v4317_v30 = vsel %vm3136_vm10, %v4316_v9, %v4295_v42  ;;  %v4404_v24 = vld [vmem:[#allocation4 + $0x1c] sm:$0x1]  ;;  %v4219_v52 = vsel %vm3151_vm9, %v4218_v57, %v4217_v29  ;;  %v6418_v58 = vpack.c.bf16 %v5382_v26, %v8942_v3  ;;  %v5387_v41 = vld [vmem:[%s9327_s6 + $0x1c8] sm:$0xff] }
 0x77c   : > { %v5379_v28 = vld [vmem:[%s9327_s6 + $0x198] sm:$0xff]  ;;  %v4328_v48 = vrot.slane %v4302_v8, 1  ;;  %v4319_v46 = vsel %vm3139_vm3, %v4318_v10, %v4317_v30  ;;  %v4405_v40 = vld [vmem:[#allocation4 + $0x2c] sm:$0x1]  ;;  %v4221_v35 = vsel %vm3154_vm12, %v4220_v50, %v4219_v52  ;;  %v4424_v34 = vrot.slane %v4404_v24, 7  ;;  %v9004_v36 = vld [vmem:[%s9327_s6 + $0x1e0] sm:$0xff] }
 0x77d   : > { %v4406_v43 = vld [vmem:[#allocation4 + $0x3c] sm:$0x1]  ;;  %v4407_v23 = vld [vmem:[#allocation4 + $0x4c] sm:$0x1]  ;;  %v4321_v18 = vsel %vm3142_vm2, %v4320_v12, %v4319_v46  ;;  %6410 = vmatpush3.bf16.msra.mxu1 %v6409_v56  ;;  %5762 = vmatmul.mubr.msk.f32.vlgmr.msra.gmra.mrb[10].mxu0 %vm1198_vm15, %v4221_v35  ;;  %v4426_v15 = vrot.slane %v4405_v40, 6  ;;  %v6415_v20 = vpack.c.bf16 %v5379_v28, %v5378_v27  ;;  %v6424_v59 = vpack.c.bf16 %v5387_v41, %v8986_v37  ;;  %v5388_v10 = vld [vmem:[%s9327_s6 + $0x1d0] sm:$0xff] }
 0x77e   : > { %v4408_v33 = vld [vmem:[#allocation4 + $0x5c] sm:$0x1]  ;;  %v4409_v32 = vld [vmem:[#allocation4 + $0x6c] sm:$0x1]  ;;  %v4323_v16 = vsel %vm3145_vm4, %v4322_v13, %v4321_v18  ;;  %v4428_v49 = vrot.slane %v4406_v43, 5  ;;  %6413 = vmatpush3.bf16.msra.mxu0 %v6412_v5  ;;  %6417 = vmatprep.subr.bf16.mxu1 %v6656_v62  ;;  %v4430_v55 = vrot.slane %v4407_v23, 4  ;;  %v4425_v17 = vsel %vm3136_vm10, %v4424_v34, %v4403_v44 }
 0x77f   : > { %v8967_v22 = vld [vmem:[#allocation4 + $0x7c] sm:$0x1]  ;;  %v4325_v60 = vsel %vm3148_vm0, %v4324_v25, %v4323_v16  ;;  %v4432_v47 = vrot.slane %v4408_v33, 3  ;;  %v4511_v31 = vld [vmem:[#allocation4 + $0xd] sm:$0x1]  ;;  %6414 = vmatprep.subr.bf16.mxu0 %v6656_v62  ;;  %5783 = vmatprep.mubr.msk.f32.mxu0 %vm6657_vm1, %v6658_v6  ;;  %v4434_v61 = vrot.slane %v4409_v32, 2  ;;  %v4427_v57 = vsel %vm3139_vm3, %v4426_v15, %v4425_v17 }
 0x780   : > { %v8979_v54 = vld [vmem:[%s9327_s6 + $0x1b8] sm:$0xff]  ;;  %v4327_v38 = vsel %vm3151_vm9, %v4326_v51, %v4325_v60  ;;  %v4436_v39 = vrot.slane %v8967_v22, 1  ;;  %v4513_v42 = vld [vmem:[#allocation4 + $0x2d] sm:$0x1]  ;;  %v4429_v56 = vsel %vm3142_vm2, %v4428_v49, %v4427_v57  ;;  %v4619_v27 = vld [vmem:[#allocation4 + $0xe] sm:$0x1] }
 0x781   : > { %v4512_v63 = vld [vmem:[#allocation4 + $0x1d] sm:$0x1]  ;;  %v4329_v53 = vsel %vm3154_vm12, %v4328_v48, %v4327_v38  ;;  %v6421_v45 = vpack.c.bf16 %v8979_v54, %v8974_v14  ;;  %v4515_v21 = vld [vmem:[#allocation4 + $0x4d] sm:$0x1]  ;;  %v4534_v3 = vrot.slane %v4513_v42, 6  ;;  %v4431_v4 = vsel %vm3145_vm4, %v4430_v55, %v4429_v56 }
 0x782   : > { %v4514_v50 = vld [vmem:[#allocation4 + $0x3d] sm:$0x1]  ;;  %5773 = vmatmul.mubr.msk.f32.vlgmr.msra.gmra.mrb[10].mxu1 %vm1198_vm15, %v4329_v53  ;;  %v4517_v0 = vld [vmem:[#allocation4 + $0x6d] sm:$0x1]  ;;  %v4532_v2 = vrot.slane %v4512_v63, 7  ;;  %6416 = vmatpush3.bf16.msra.mxu0 %v6415_v20  ;;  %v4538_v7 = vrot.slane %v4515_v21, 4  ;;  %v4433_v12 = vsel %vm3148_vm0, %v4432_v47, %v4431_v4 }
 0x783   : > { %v4516_v19 = vld [vmem:[#allocation4 + $0x5d] sm:$0x1]  ;;  %6419 = vmatpush3.bf16.msra.mxu1 %v6418_v58  ;;  %v4536_v5 = vrot.slane %v4514_v50, 5  ;;  %v5392_v9 = vld [vmem:[%s9327_s6 + $0x1e8] sm:$0xff]  ;;  %6423 = vmatprep.subr.bf16.mxu0 %v6656_v62  ;;  %v4542_v25 = vrot.slane %v4517_v0, 2  ;;  %v4435_v29 = vsel %vm3151_vm9, %v4434_v61, %v4433_v12  ;;  %v5393_v58 = vld [vmem:[%s9327_s6 + $0x1f0] sm:$0xff] }
 0x784   : > { %v4518_v1 = vld [vmem:[#allocation4 + $0x7d] sm:$0x1]  ;;  %v4540_v8 = vrot.slane %v4516_v19, 3  ;;  %6420 = vmatprep.subr.bf16.mxu1 %v6656_v62  ;;  %v4533_v13 = vsel %vm3136_vm10, %v4532_v2, %v4511_v31  ;;  %v4620_v28 = vld [vmem:[#allocation4 + $0x1e] sm:$0x1]  ;;  %5794 = vmatprep.mubr.msk.f32.mxu1 %vm6657_vm1, %v6658_v6  ;;  %v4437_v24 = vsel %vm3154_vm12, %v4436_v39, %v4435_v29  ;;  %v6430_v46 = vpack.c.bf16 %v5392_v9, %v9004_v36  ;;  %v4845_v12 = vld [vmem:[%s9329_s8 + $0x8] sm:$0xff] }
 0x785   : > { %v5389_v11 = vld [vmem:[%s9327_s6 + $0x1d8] sm:$0xff]  ;;  %v4544_v26 = vrot.slane %v4518_v1, 1  ;;  %v4535_v30 = vsel %vm3139_vm3, %v4534_v3, %v4533_v13  ;;  %v4621_v51 = vld [vmem:[#allocation4 + $0x2e] sm:$0x1]  ;;  %5784 = vmatmul.mubr.msk.f32.vlgmr.msra.gmra.mrb[12].mxu0 %vm1198_vm15, %v4437_v24  ;;  %v4640_v33 = vrot.slane %v4620_v28, 7  ;;  %v4848_v28 = vld [vmem:[%s9329_s8 + $0x20] sm:$0xff] }
 0x786   : > { %v4622_v48 = vld [vmem:[#allocation4 + $0x3e] sm:$0x1]  ;;  %v4623_v44 = vld [vmem:[#allocation4 + $0x4e] sm:$0x1]  ;;  %v4537_v52 = vsel %vm3142_vm2, %v4536_v5, %v4535_v30  ;;  %v6427_v40 = vpack.c.bf16 %v5389_v11, %v5388_v10  ;;  %v4642_v32 = vrot.slane %v4621_v51, 6  ;;  %6425 = vmatpush3.bf16.msra.mxu0 %v6424_v59  ;;  %5805 = vmatprep.mubr.msk.f32.mxu0 %vm6657_vm1, %v6658_v6  ;;  %v4844_v11 = vld [vmem:[%s9329_s8] sm:$0xff] }
 0x787   : > { %v4624_v43 = vld [vmem:[#allocation4 + $0x5e] sm:$0x1]  ;;  %v4625_v23 = vld [vmem:[#allocation4 + $0x6e] sm:$0x1]  ;;  %6422 = vmatpush3.bf16.msra.mxu1 %v6421_v45  ;;  %v4539_v18 = vsel %vm3145_vm4, %v4538_v7, %v4537_v52  ;;  %v4644_v22 = vrot.slane %v4622_v48, 5  ;;  %v4646_v34 = vrot.slane %v4623_v44, 4  ;;  %6426 = vmatprep.subr.bf16.mxu0 %v6656_v62  ;;  %v4641_v55 = vsel %vm3136_vm10, %v4640_v33, %v4619_v27 }
 0x788   : > { %v4626_v35 = vld [vmem:[#allocation4 + $0x7e] sm:$0x1]  ;;  %v4727_v16 = vld [vmem:[#allocation4 + $0xf] sm:$0x1]  ;;  %6429 = vmatprep.subr.bf16.mxu1 %v6656_v62  ;;  %v4541_v14 = vsel %vm3148_vm0, %v4540_v8, %v4539_v18  ;;  %v4648_v15 = vrot.slane %v4624_v43, 3  ;;  %v4650_v49 = vrot.slane %v4625_v23, 2  ;;  %v4643_v17 = vsel %vm3139_vm3, %v4642_v32, %v4641_v55 }
 0x789   : > { %v5394_v54 = vld [vmem:[%s9327_s6 + $0x1f8] sm:$0xff]  ;;  %v4543_v20 = vsel %vm3151_vm9, %v4542_v25, %v4541_v14  ;;  %v4652_v47 = vrot.slane %v4626_v35, 1  ;;  %v4729_v37 = vld [vmem:[#allocation4 + $0x2f] sm:$0x1]  ;;  %v4645_v42 = vsel %vm3142_vm2, %v4644_v22, %v4643_v17  ;;  %v6436_v13 = vpack.c.bf16 %v4845_v12, %v4844_v11  ;;  %v4846_v25 = vld [vmem:[%s9329_s8 + $0x10] sm:$0xff] }
 0x78a   : > { %v4728_v60 = vld [vmem:[#allocation4 + $0x1f] sm:$0x1]  ;;  %v4545_v38 = vsel %vm3154_vm12, %v4544_v26, %v4543_v20  ;;  %v4731_v61 = vld [vmem:[#allocation4 + $0x4f] sm:$0x1]  ;;  %v4750_v57 = vrot.slane %v4729_v37, 6  ;;  %6428 = vmatpush3.bf16.msra.mxu0 %v6427_v40  ;;  %v6433_v21 = vpack.c.bf16 %v5394_v54, %v5393_v58  ;;  %v4647_v19 = vsel %vm3145_vm4, %v4646_v34, %v4645_v42  ;;  %v4850_v51 = vld [vmem:[%s9329_s8 + $0x30] sm:$0xff] }
 0x78b   : > { %v4730_v41 = vld [vmem:[#allocation4 + $0x3f] sm:$0x1]  ;;  %v4748_v31 = vrot.slane %v4728_v60, 7  ;;  %v4733_v63 = vld [vmem:[#allocation4 + $0x6f] sm:$0x1]  ;;  %5795 = vmatmul.mubr.msk.f32.vlgmr.msra.gmra.mrb[12].mxu1 %vm1198_vm15, %v4545_v38  ;;  %v4754_v36 = vrot.slane %v4731_v61, 4  ;;  %v4649_v59 = vsel %vm3148_vm0, %v4648_v15, %v4647_v19  ;;  %6435 = vmatprep.subr.bf16.mxu0 %v6656_v62 }
 0x78c   : > { %v4732_v39 = vld [vmem:[#allocation4 + $0x5f] sm:$0x1]  ;;  %v4752_v50 = vrot.slane %v4730_v41, 5  ;;  %6431 = vmatpush3.bf16.msra.mxu1 %v6430_v46  ;;  %5816 = vmatprep.mubr.msk.f32.mxu1 %vm6657_vm1, %v6658_v6  ;;  %v4758_v1 = vrot.slane %v4733_v63, 2  ;;  %v4651_v2 = vsel %vm3151_vm9, %v4650_v49, %v4649_v59  ;;  %v4849_v29 = vld [vmem:[%s9329_s8 + $0x28] sm:$0xff]  ;;  %v4852_v24 = vld [vmem:[%s9329_s8 + $0x40] sm:$0xff] }
 0x78d   : > { %v4734_v53 = vld [vmem:[#allocation4 + $0x7f] sm:$0x1]  ;;  %v4749_v45 = vsel %vm3136_vm10, %v4748_v31, %v4727_v16  ;;  %v4756_v56 = vrot.slane %v4732_v39, 3  ;;  %6432 = vmatprep.subr.bf16.mxu1 %v6656_v62  ;;  %v4653_v5 = vsel %vm3154_vm12, %v4652_v47, %v4651_v2  ;;  %v6442_v30 = vpack.c.bf16 %v4849_v29, %v4848_v28  ;;  %v4853_v52 = vld [vmem:[%s9329_s8 + $0x48] sm:$0xff]  ;;  %v4854_v40 = vld [vmem:[%s9329_s8 + $0x50] sm:$0xff] }
 0x78e   : > { %v4751_v0 = vsel %vm3139_vm3, %v4750_v57, %v4749_v45  ;;  %v4760_v4 = vrot.slane %v4734_v53, 1  ;;  %5806 = vmatmul.mubr.msk.f32.vlgmr.msra.gmra.mrb[14].mxu0 %vm1198_vm15, %v4653_v5  ;;  %v4847_v26 = vld [vmem:[%s9329_s8 + $0x18] sm:$0xff]  ;;  %v6448_v46 = vpack.c.bf16 %v4853_v52, %v4852_v24  ;;  %v4856_v35 = vld [vmem:[%s9329_s8 + $0x60] sm:$0xff]  ;;  %v4857_v18 = vld [vmem:[%s9329_s8 + $0x68] sm:$0xff] }
 0x78f   : > { %v4753_v3 = vsel %vm3142_vm2, %v4752_v50, %v4751_v0  ;;  %5851 = vmatprep.mubr.msk.f32.mxu0 %vm6657_vm1, %v6658_v6  ;;  %6437 = vmatpush3.bf16.msra.mxu0 %v6436_v13  ;;  %v6439_v27 = vpack.c.bf16 %v4847_v26, %v4846_v25  ;;  %v4851_v48 = vld [vmem:[%s9329_s8 + $0x38] sm:$0xff]  ;;  %v6454_v58 = vpack.c.bf16 %v4857_v18, %v4856_v35  ;;  %v4858_v33 = vld [vmem:[%s9329_s8 + $0x70] sm:$0xff]  ;;  %v4948_v16 = vld [vmem:[%s9332_s11] sm:$0xff] }
 0x790   : > { %v4755_v7 = vsel %vm3145_vm4, %v4754_v36, %v4753_v3  ;;  %6434 = vmatpush3.bf16.msra.mxu1 %v6433_v21  ;;  %6438 = vmatprep.subr.bf16.mxu0 %v6656_v62  ;;  %v6445_v44 = vpack.c.bf16 %v4851_v48, %v4850_v51  ;;  %v4855_v43 = vld [vmem:[%s9329_s8 + $0x58] sm:$0xff]  ;;  %v4949_v14 = vld [vmem:[%s9332_s11 + $0x8] sm:$0xff]  ;;  %v4950_v54 = vld [vmem:[%s9332_s11 + $0x10] sm:$0xff] }
 0x791   : > { %v4757_v8 = vsel %vm3148_vm0, %v4756_v56, %v4755_v7  ;;  %6459 = vmatprep.subr.bf16.mxu1 %v6656_v62  ;;  %v6451_v23 = vpack.c.bf16 %v4855_v43, %v4854_v40  ;;  %v4859_v32 = vld [vmem:[%s9329_s8 + $0x78] sm:$0xff]  ;;  %v6460_v34 = vpack.c.bf16 %v4949_v14, %v4948_v16  ;;  %v4952_v60 = vld [vmem:[%s9332_s11 + $0x20] sm:$0xff]  ;;  %v4953_v20 = vld [vmem:[%s9332_s11 + $0x28] sm:$0xff] }
 0x792   : > { %v4759_v9 = vsel %vm3151_vm9, %v4758_v1, %v4757_v8  ;;  %v6457_v22 = vpack.c.bf16 %v4859_v32, %v4858_v33  ;;  %v4951_v15 = vld [vmem:[%s9332_s11 + $0x18] sm:$0xff]  ;;  %v6466_v55 = vpack.c.bf16 %v4953_v20, %v4952_v60  ;;  %v4954_v47 = vld [vmem:[%s9332_s11 + $0x30] sm:$0xff]  ;;  %v4956_v31 = vld [vmem:[%s9332_s11 + $0x40] sm:$0xff] }
 0x793   : > { %v4761_v10 = vsel %vm3154_vm12, %v4760_v4, %v4759_v9  ;;  %6440 = vmatpush3.bf16.msra.mxu0 %v6439_v27  ;;  %v6463_v49 = vpack.c.bf16 %v4951_v15, %v4950_v54  ;;  %v4955_v37 = vld [vmem:[%s9332_s11 + $0x38] sm:$0xff]  ;;  %v4957_v38 = vld [vmem:[%s9332_s11 + $0x48] sm:$0xff]  ;;  %v4958_v61 = vld [vmem:[%s9332_s11 + $0x50] sm:$0xff] }
 0x794   : > { %5817 = vmatmul.mubr.msk.f32.vlgmr.msra.gmra.mrb[14].mxu1 %vm1198_vm15, %v4761_v10  ;;  %6441 = vmatprep.subr.bf16.mxu0 %v6656_v62  ;;  %v6469_v41 = vpack.c.bf16 %v4955_v37, %v4954_v47  ;;  %v6472_v17 = vpack.c.bf16 %v4957_v38, %v4956_v31  ;;  %v4959_v39 = vld [vmem:[%s9332_s11 + $0x58] sm:$0xff]  ;;  %v5396_v14 = vld [vmem:[%s9328_s7] ss:$0 sm:$0xff]  ;;  %v4961_v20 = vld [vmem:[%s9332_s11 + $0x68] sm:$0xff] }
 0x795   : > { %5886 = vmatprep.mubr.msk.f32.mxu1 %vm6657_vm1, %v6658_v6  ;;  %6461 = vmatpush3.bf16.msra.mxu1 %v6460_v34  ;;  %v6475_v63 = vpack.c.bf16 %v4959_v39, %v4958_v61  ;;  %v4960_v60 = vld [vmem:[%s9332_s11 + $0x60] sm:$0xff]  ;;  %v4962_v47 = vld [vmem:[%s9332_s11 + $0x70] sm:$0xff]  ;;  %v4963_v37 = vld [vmem:[%s9332_s11 + $0x78] sm:$0xff] }
 0x796   : > { %6462 = vmatprep.subr.bf16.mxu1 %v6656_v62  ;;  %v5042_v31 = vld [vmem:[%s9334_s13] sm:$0xff]  ;;  %v5043_v38 = vld [vmem:[%s9334_s13 + $0x8] sm:$0xff]  ;;  %v5045_v39 = vld [vmem:[%s9334_s13 + $0x18] sm:$0xff] }
 0x797   : > { %6443 = vmatpush3.bf16.msra.mxu0 %v6442_v30  ;;  %v6484_v61 = vpack.c.bf16 %v5043_v38, %v5042_v31  ;;  %v5149_v31 = vld [vmem:[%s9336_s15 + $0x70] sm:$0xff]  ;;  %v5150_v38 = vld [vmem:[%s9336_s15 + $0x78] sm:$0xff] }
 0x798   : > { %6444 = vmatprep.subr.bf16.mxu0 %v6656_v62 }
 0x799   : > { %6464 = vmatpush3.bf16.msra.mxu1 %v6463_v49 }
 0x79a   : > { %6465 = vmatprep.subr.bf16.mxu1 %v6656_v62 }
 0x79b   : > { %6446 = vmatpush3.bf16.msra.mxu0 %v6445_v44 }
 0x79c   : > { %6447 = vmatprep.subr.bf16.mxu0 %v6656_v62 }
 0x79d   : > { %6467 = vmatpush3.bf16.msra.mxu1 %v6466_v55  ;;  %v6478_v55 = vpack.c.bf16 %v4961_v20, %v4960_v60  ;;  %v5398_v20 = vld [vmem:[%s9333_s12] ss:$0 sm:$0xff] }
 0x79e   : > { %6468 = vmatprep.subr.bf16.mxu1 %v6656_v62 }
 0x79f   : > { %6449 = vmatpush3.bf16.msra.mxu0 %v6448_v46 }
 0x7a0   : > { %6450 = vmatprep.subr.bf16.mxu0 %v6656_v62 }
 0x7a1   : > { %6470 = vmatpush3.bf16.msra.mxu1 %v6469_v41  ;;  %v6481_v41 = vpack.c.bf16 %v4963_v37, %v4962_v47 }
 0x7a2   : > { %6471 = vmatprep.subr.bf16.mxu1 %v6656_v62 }
 0x7a3   : > { %6452 = vmatpush3.bf16.msra.mxu0 %v6451_v23 }
 0x7a4   : > { %6453 = vmatprep.subr.bf16.mxu0 %v6656_v62 }
 0x7a5   : > { %6473 = vmatpush3.bf16.msra.mxu1 %v6472_v17  ;;  %v5044_v17 = vld [vmem:[%s9334_s13 + $0x10] sm:$0xff] }
 0x7a6   : > { %6474 = vmatprep.subr.bf16.mxu1 %v6656_v62 }
 0x7a7   : > { %6455 = vmatpush3.bf16.msra.mxu0 %v6454_v58 }
 0x7a8   : > { %6456 = vmatprep.subr.bf16.mxu0 %v6656_v62 }
 0x7a9   : > { %6476 = vmatpush3.bf16.msra.mxu1 %v6475_v63  ;;  %v6487_v63 = vpack.c.bf16 %v5045_v39, %v5044_v17  ;;  %v6529_v17 = vpack.c.bf16 %v5150_v38, %v5149_v31 }
 0x7aa   : > { %6477 = vmatprep.subr.bf16.mxu1 %v6656_v62 }
 0x7ab   : > { %6458 = vmatpush3.bf16.msra.mxu0 %v6457_v22 }
 0x7ac   : > { %6483 = vmatprep.subr.bf16.mxu0 %v6656_v62 }
 0x7ad   : > { %6479 = vmatpush3.bf16.msra.mxu1 %v6478_v55 }
 0x7ae   : > { %6480 = vmatprep.subr.bf16.mxu1 %v6656_v62 }
 0x7b1   : > { %6482 = vmatpush3.bf16.msra.mxu1 %v6481_v41 }
 0x7b2   : > { %6507 = vmatprep.subr.bf16.mxu1 %v6656_v62 }
 0x823   : > { %v3225_v42 = vpop.f32.mrb[0].mxu0 }
 0x824   : > { %v5653_v53 = vpop.f32.mrb[1].mxu0 }
 0x825   : > { %v5047_v53 = vld [vmem:[%s9334_s13 + $0x28] sm:$0xff] }
 0x827   : > { %v3319_v45 = vpop.f32.mrb[0].mxu1 }
 0x828   : > { %v3320_v57 = vadd.f32 %v3319_v45, %v3225_v42  ;;  %v5664_v50 = vpop.f32.mrb[1].mxu1  ;;  %v5046_v42 = vld [vmem:[%s9334_s13 + $0x20] sm:$0xff] }
 0x829   : > { %v6490_v45 = vpack.c.bf16 %v5047_v53, %v5046_v42  ;;  %v5049_v50 = vld [vmem:[%s9334_s13 + $0x38] sm:$0xff]  ;;  %v5400_v42 = vld [vmem:[%s9337_s16] ss:$0 sm:$0xff] }
 0x82b   : > { %v3426_v21 = vpop.f32.mrb[2].mxu0 }
 0x82c   : > { %v3430_v19 = vadd.f32 %v3426_v21, %v3320_v57  ;;  %v5675_v36 = vpop.f32.mrb[3].mxu0  ;;  %v5048_v57 = vld [vmem:[%s9334_s13 + $0x30] sm:$0xff] }
 0x82d   : > { %v6493_v21 = vpack.c.bf16 %v5049_v50, %v5048_v57  ;;  %v5051_v36 = vld [vmem:[%s9334_s13 + $0x48] sm:$0xff] }
 0x82f   : > { %v3534_v56 = vpop.f32.mrb[2].mxu1 }
 0x830   : > { %v3538_v59 = vadd.f32 %v3534_v56, %v3430_v19  ;;  %v5686_v0 = vpop.f32.mrb[3].mxu1  ;;  %v5050_v19 = vld [vmem:[%s9334_s13 + $0x40] sm:$0xff] }
 0x831   : > { %v6496_v56 = vpack.c.bf16 %v5051_v36, %v5050_v19  ;;  %v5053_v0 = vld [vmem:[%s9334_s13 + $0x58] sm:$0xff] }
 0x834   : > { %v3642_v1 = vpop.f32.mrb[4].mxu0 }
 0x835   : > { %v3646_v2 = vadd.f32 %v3642_v1, %v3538_v59  ;;  %v5697_v3 = vpop.f32.mrb[5].mxu0  ;;  %v5052_v59 = vld [vmem:[%s9334_s13 + $0x50] sm:$0xff] }
 0x836   : > { %v6499_v1 = vpack.c.bf16 %v5053_v0, %v5052_v59  ;;  %v5055_v3 = vld [vmem:[%s9334_s13 + $0x68] sm:$0xff] }
 0x839   : > { %v3750_v4 = vpop.f32.mrb[4].mxu1 }
 0x83a   : > { %v3754_v5 = vadd.f32 %v3750_v4, %v3646_v2  ;;  %v5708_v7 = vpop.f32.mrb[5].mxu1  ;;  %v5054_v2 = vld [vmem:[%s9334_s13 + $0x60] sm:$0xff] }
 0x83b   : > { %v6502_v4 = vpack.c.bf16 %v5055_v3, %v5054_v2 }
 0x83e   : > { %v3858_v8 = vpop.f32.mrb[6].mxu0 }
 0x83f   : > { %v3862_v9 = vadd.f32 %v3858_v8, %v3754_v5  ;;  %v5719_v10 = vpop.f32.mrb[7].mxu0  ;;  %v4942_v5 = vlaneseq  ;;  %v4939_v8 = vld [vmem:[%s9331_s10] sm:$0x1] }
 0x840   : > { %v4940_v10 = vmul.f32 0.1, %v4939_v8 }
 0x841   : > { %v3966_v11 = vpop.f32.mrb[6].mxu1  ;;  %v4943_v7 = vshrl.u32 %v4942_v5, 7 }
 0x842   : > { %v3970_v12 = vadd.f32 %v3966_v11, %v3862_v9  ;;  %v5730_v13 = vpop.f32.mrb[7].mxu1  ;;  %v5397_v9 = vld [vmem:[%s9330_s9] ss:$0 sm:$0xff] }
 0x843   : > { %v4944_v11 = vsub.s32 0, %v4943_v7 }
 0x846   : > { %v4074_v25 = vpop.f32.mrb[8].mxu0 }
 0x847   : > { %v4078_v26 = vadd.f32 %v4074_v25, %v3970_v12  ;;  %v5741_v27 = vpop.f32.mrb[9].mxu0 }
 0x848   : > { %v4945_v27 = vrot.slane %v4940_v10, %v4944_v11 }
 0x84b   : > { %v4182_v28 = vpop.f32.mrb[8].mxu1 }
 0x84c   : > { %v4186_v29 = vadd.f32 %v4182_v28, %v4078_v26  ;;  %v5752_v30 = vpop.f32.mrb[9].mxu1 }
 0x84d   : > { %v5056_v30 = vld [vmem:[%s9334_s13 + $0x70] sm:$0xff] }
 0x850   : > { %v4290_v51 = vpop.f32.mrb[10].mxu0 }
 0x851   : > { %v4294_v48 = vadd.f32 %v4290_v51, %v4186_v29  ;;  %v5763_v44 = vpop.f32.mrb[11].mxu0  ;;  %v5057_v51 = vld [vmem:[%s9334_s13 + $0x78] sm:$0xff] }
 0x852   : > { %v5135_v44 = vld [vmem:[%s9336_s15] sm:$0xff] }
 0x855   : > { %v4398_v24 = vpop.f32.mrb[10].mxu1 }
 0x856   : > { %v4402_v52 = vadd.f32 %v4398_v24, %v4294_v48  ;;  %v5774_v46 = vpop.f32.mrb[11].mxu1  ;;  %v6505_v48 = vpack.c.bf16 %v5057_v51, %v5056_v30  ;;  %v5136_v24 = vld [vmem:[%s9336_s15 + $0x8] sm:$0xff] }
 0x857   : > { %v5138_v46 = vld [vmem:[%s9336_s15 + $0x18] sm:$0xff] }
 0x858   : > { %v4506_v40 = vpop.f32.mrb[12].mxu0 }
 0x859   : > { %v4510_v43 = vadd.f32 %v4506_v40, %v4402_v52  ;;  %v5785_v23 = vpop.f32.mrb[13].mxu0  ;;  %v6508_v52 = vpack.c.bf16 %v5136_v24, %v5135_v44 }
 0x85a   : > { %v5140_v23 = vld [vmem:[%s9336_s15 + $0x28] sm:$0xff] }
 0x85e   : > { %v4614_v35 = vpop.f32.mrb[12].mxu1 }
 0x85f   : > { %v4618_v18 = vadd.f32 %v4614_v35, %v4510_v43  ;;  %v5796_v58 = vpop.f32.mrb[13].mxu1  ;;  %v5139_v43 = vld [vmem:[%s9336_s15 + $0x20] sm:$0xff] }
 0x860   : > { %v6514_v35 = vpack.c.bf16 %v5140_v23, %v5139_v43  ;;  %v5142_v58 = vld [vmem:[%s9336_s15 + $0x38] sm:$0xff] }
 0x861   : > { %v4722_v33 = vpop.f32.mrb[14].mxu0 }
 0x862   : > { %v4726_v32 = vadd.f32 %v4722_v33, %v4618_v18  ;;  %v5807_v22 = vpop.f32.mrb[15].mxu0  ;;  %v5141_v18 = vld [vmem:[%s9336_s15 + $0x30] sm:$0xff] }
 0x863   : > { %v6517_v33 = vpack.c.bf16 %v5142_v58, %v5141_v18  ;;  %v5144_v22 = vld [vmem:[%s9336_s15 + $0x48] sm:$0xff] }
 0x867   : > { %v4830_v16 = vpop.f32.mrb[14].mxu1 }
 0x868   : > { %v4834_v54 = vadd.f32 %v4830_v16, %v4726_v32  ;;  %v5818_v34 = vpop.f32.mrb[15].mxu1  ;;  %v5143_v32 = vld [vmem:[%s9336_s15 + $0x40] sm:$0xff] }
 0x869   : > { %v6520_v16 = vpack.c.bf16 %v5144_v22, %v5143_v32 }
 0x86a   : > { %v4842_v15 = vadd.f32 %v5396_v14, %v4834_v54  ;;  %v5145_v14 = vld [vmem:[%s9336_s15 + $0x50] sm:$0xff]  ;;  %v5146_v54 = vld [vmem:[%s9336_s15 + $0x58] sm:$0xff] }
 0x86b   : > { %v6523_v34 = vpack.c.bf16 %v5146_v54, %v5145_v14 }
 0x86c   : > { %v4843_v49 = vmax.f32 %v4842_v15, 0.0  ;;  %v5147_v15 = vld [vmem:[%s9336_s15 + $0x60] sm:$0xff] }
 0x86e   : > { %5852 = vmatmul.mubr.f32.vlgmr.msra.gmra.mrb[16].mxu0 %v4843_v49  ;;  %v5148_v49 = vld [vmem:[%s9336_s15 + $0x68] sm:$0xff] }
 0x86f   : > { %5921 = vmatprep.mubr.msk.f32.mxu0 %vm6657_vm1, %v6658_v6  ;;  %6485 = vmatpush3.bf16.msra.mxu0 %v6484_v61  ;;  %v6526_v60 = vpack.c.bf16 %v5148_v49, %v5147_v15 }
 0x870   : > { %6486 = vmatprep.subr.bf16.mxu0 %v6656_v62 }
 0x873   : > { %6488 = vmatpush3.bf16.msra.mxu0 %v6487_v63 }
 0x874   : > { %6489 = vmatprep.subr.bf16.mxu0 %v6656_v62 }
 0x877   : > { %6491 = vmatpush3.bf16.msra.mxu0 %v6490_v45 }
 0x878   : > { %6492 = vmatprep.subr.bf16.mxu0 %v6656_v62 }
 0x87b   : > { %6494 = vmatpush3.bf16.msra.mxu0 %v6493_v21 }
 0x87c   : > { %6495 = vmatprep.subr.bf16.mxu0 %v6656_v62 }
 0x87f   : > { %6497 = vmatpush3.bf16.msra.mxu0 %v6496_v56 }
 0x880   : > { %6498 = vmatprep.subr.bf16.mxu0 %v6656_v62 }
 0x883   : > { %6500 = vmatpush3.bf16.msra.mxu0 %v6499_v1 }
 0x884   : > { %6501 = vmatprep.subr.bf16.mxu0 %v6656_v62 }
 0x887   : > { %6503 = vmatpush3.bf16.msra.mxu0 %v6502_v4 }
 0x888   : > { %6504 = vmatprep.subr.bf16.mxu0 %v6656_v62 }
 0x88b   : > { %6506 = vmatpush3.bf16.msra.mxu0 %v6505_v48 }
 0x941   : > { %v4933_v12 = vpop.f32.mrb[16].mxu0 }
 0x942   : > { %v4934_v13 = vadd.f32 %v5397_v9, %v4933_v12  ;;  %v5853_v25 = vpop.f32.mrb[17].mxu0 }
 0x944   : > { %v4937_v26 = vmax.f32 %v4934_v13, 0.0 }
 0x946   : > { %v4938_v28 = vmul.f32 0.9, %v4937_v26  ;;  %5228 = vst [vmem:[%s6855_s23] sm:$0xff] %v4937_v26 }
 0x948   : > { %v4947_v29 = vadd.f32 %v4945_v27, %v4938_v28 }
 0x94a   : > { %5887 = vmatmul.mubr.f32.vlgmr.msra.gmra.mrb[16].mxu1 %v4947_v29 }
 0x94b   : > { %5956 = vmatprep.mubr.msk.f32.mxu1 %vm6657_vm1, %v6658_v6  ;;  %v5137_v6 = vld [vmem:[%s9336_s15 + $0x10] sm:$0xff]  ;;  %6509 = vmatpush3.bf16.msra.mxu1 %v6508_v52 }
 0x94c   : > { %v6511_v40 = vpack.c.bf16 %v5138_v46, %v5137_v6  ;;  %6510 = vmatprep.subr.bf16.mxu1 %v6656_v62 }
 0x94f   : > { %6512 = vmatpush3.bf16.msra.mxu1 %v6511_v40 }
 0x950   : > { %6513 = vmatprep.subr.bf16.mxu1 %v6656_v62 }
 0x953   : > { %6515 = vmatpush3.bf16.msra.mxu1 %v6514_v35 }
 0x954   : > { %6516 = vmatprep.subr.bf16.mxu1 %v6656_v62 }
 0x957   : > { %6518 = vmatpush3.bf16.msra.mxu1 %v6517_v33 }
 0x958   : > { %6519 = vmatprep.subr.bf16.mxu1 %v6656_v62 }
 0x95b   : > { %6521 = vmatpush3.bf16.msra.mxu1 %v6520_v16 }
 0x95c   : > { %6522 = vmatprep.subr.bf16.mxu1 %v6656_v62 }
 0x95f   : > { %6524 = vmatpush3.bf16.msra.mxu1 %v6523_v34 }
 0x960   : > { %6525 = vmatprep.subr.bf16.mxu1 %v6656_v62 }
 0x963   : > { %6527 = vmatpush3.bf16.msra.mxu1 %v6526_v60 }
 0x964   : > { %6528 = vmatprep.subr.bf16.mxu1 %v6656_v62  ;;  %v5399_v62 = vld [vmem:[%s9335_s14] ss:$0 sm:$0xff] }
 0x967   : > { %6530 = vmatpush3.bf16.msra.mxu1 %v6529_v17 }
 0xa1d   : > { %v5037_v55 = vpop.f32.mrb[16].mxu1 }
 0xa1e   : > { %v5038_v47 = vadd.f32 %v5398_v20, %v5037_v55  ;;  %v5888_v37 = vpop.f32.mrb[17].mxu1 }
 0xa20   : > { %v5041_v41 = vmax.f32 %v5038_v47, 0.0 }
 0xa22   : > { %5922 = vmatmul.mubr.f32.vlgmr.msra.gmra.mrb[18].mxu0 %v5041_v41 }
 0xaf5   : > { %v5131_v61 = vpop.f32.mrb[18].mxu0 }
 0xaf6   : > { %v5132_v39 = vadd.f32 %v5399_v62, %v5131_v61  ;;  %v5923_v63 = vpop.f32.mrb[19].mxu0 }
 0xaf8   : > { %5229 = vst [vmem:[%s6855_s23 + $0x8] sm:$0xff] %v5132_v39  ;;  %5957 = vmatmul.mubr.f32.vlgmr.msra.gmra.mrb[18].mxu1 %v5132_v39 }
 0xbcb   : > { %v5224_v53 = vpop.f32.mrb[18].mxu1 }
 0xbcc   : > { %v5225_v45 = vadd.f32 %v5400_v42, %v5224_v53  ;;  %v5958_v57 = vpop.f32.mrb[19].mxu1 }
 0xbce   : > { %5230 = vst [vmem:[%s6855_s23 + $0x10] sm:$0xff] %v5225_v45 }
 0xbcf PF: > { %s27_s24 = sadd.s32 1, %s6624_s24  }
 0xbd0   : > { %p24_p6 = scmp.ge.s32.totalorder %s27_s24, 4  }
 0xbd2   :  { %26 = sbr.rel (!%p24_p6) target bundleno = 6 (0x6), region = 153 }

</bundles_post_ra>
